<compile_context>
chip_gen: v7x
topology: tpu7x:2x2x1
jax: 0.10.0
libtpu: 0.0.40
codegen_flags: <defaults>
</compile_context>

<pallas_src>
import functools
import math

import numpy as np
import jax
import jax.numpy as jnp
from jax import lax
from jax.experimental import pallas as pl
from jax.experimental.pallas import tpu as pltpu


# ----------------------------------------------------------------------------
# tiling helpers
# ----------------------------------------------------------------------------
def _row_tile(M, target=512):
    """Largest row tile <= target that divides M and is sublane aligned."""
    if M <= target:
        return M
    for t in range(target, 7, -8):
        if M % t == 0:
            return t
    return M


def _hw_tile(HW, target=1024):
    """HW tile (lane axis of the scale tensors): multiple of 128 or the full extent."""
    if HW <= target:
        return HW
    for t in range(target, 127, -128):
        if HW % t == 0:
            return t
    return HW


# ----------------------------------------------------------------------------
# Pallas kernels: linear family (tiled over M, parallel grid)
# ----------------------------------------------------------------------------
def _linear_kernel(x_ref, w_ref, b_ref, o_ref, *, act):
    x = x_ref[...].astype(jnp.float32)
    w = w_ref[...].astype(jnp.float32)
    y = jnp.dot(x, w, preferred_element_type=jnp.float32) + b_ref[...].astype(jnp.float32)
    if act == "silu":
        y = y * jax.nn.sigmoid(y)
    elif act == "relu":
        y = jnp.maximum(y, 0.0)
    o_ref[...] = y.astype(o_ref.dtype)


def linear(x, w, b=None, act="none"):
    """x: (M, K) @ w: (K, N) + b: (N,), optional fused activation. M-tiled."""
    M, K = x.shape
    N = w.shape[1]
    if b is None:
        b = jnp.zeros((N,), x.dtype)
    TM = _row_tile(M)
    return pl.pallas_call(
        functools.partial(_linear_kernel, act=act),
        grid=(M // TM,),
        in_specs=[pl.BlockSpec((TM, K), lambda i: (i, 0)),
                  pl.BlockSpec((K, N), lambda i: (0, 0)),
                  pl.BlockSpec((1, N), lambda i: (0, 0))],
        out_specs=pl.BlockSpec((TM, N), lambda i: (i, 0)),
        out_shape=jax.ShapeDtypeStruct((M, N), x.dtype),
        compiler_params=pltpu.CompilerParams(dimension_semantics=("parallel",)),
    )(x, w, b.reshape(1, N))


def _ln_linear_kernel(x_ref, g_ref, b_ref, w_ref, wb_ref, o_ref, *, eps):
    x = x_ref[...].astype(jnp.float32)
    mu = jnp.mean(x, axis=-1, keepdims=True)
    xc = x - mu
    var = jnp.mean(xc * xc, axis=-1, keepdims=True)
    ln = xc * lax.rsqrt(var + eps) * g_ref[...].astype(jnp.float32) \
        + b_ref[...].astype(jnp.float32)
    y = jnp.dot(ln, w_ref[...].astype(jnp.float32), preferred_element_type=jnp.float32)
    y = y + wb_ref[...].astype(jnp.float32)
    o_ref[...] = y.astype(o_ref.dtype)


def ln_linear(x, g, b, w, wb=None, eps=1e-5):
    """Fused LayerNorm(x) @ w (+ wb): one HBM round trip instead of two."""
    M, K = x.shape
    N = w.shape[1]
    if wb is None:
        wb = jnp.zeros((N,), x.dtype)
    TM = _row_tile(M)
    return pl.pallas_call(
        functools.partial(_ln_linear_kernel, eps=eps),
        grid=(M // TM,),
        in_specs=[pl.BlockSpec((TM, K), lambda i: (i, 0)),
                  pl.BlockSpec((1, K), lambda i: (0, 0)),
                  pl.BlockSpec((1, K), lambda i: (0, 0)),
                  pl.BlockSpec((K, N), lambda i: (0, 0)),
                  pl.BlockSpec((1, N), lambda i: (0, 0))],
        out_specs=pl.BlockSpec((TM, N), lambda i: (i, 0)),
        out_shape=jax.ShapeDtypeStruct((M, N), x.dtype),
        compiler_params=pltpu.CompilerParams(dimension_semantics=("parallel",)),
    )(x, g.reshape(1, K), b.reshape(1, K), w, wb.reshape(1, N))


def _linear_rowscale_kernel(x_ref, w_ref, b_ref, s_ref, o_ref):
    x = x_ref[...].astype(jnp.float32)
    w = w_ref[...].astype(jnp.float32)
    y = jnp.dot(x, w, preferred_element_type=jnp.float32) + b_ref[...].astype(jnp.float32)
    o_ref[...] = (y * s_ref[...].astype(jnp.float32)).astype(o_ref.dtype)


def linear_rowscale(x, w, b, row_scale):
    """(x @ w + b) * row_scale, row_scale: (M, 1). Fuses the EA out-proj with the
    guidance-mask / ea_scale multiply (removes one full activation round trip)."""
    M, K = x.shape
    N = w.shape[1]
    TM = _row_tile(M)
    return pl.pallas_call(
        _linear_rowscale_kernel,
        grid=(M // TM,),
        in_specs=[pl.BlockSpec((TM, K), lambda i: (i, 0)),
                  pl.BlockSpec((K, N), lambda i: (0, 0)),
                  pl.BlockSpec((1, N), lambda i: (0, 0)),
                  pl.BlockSpec((TM, 1), lambda i: (i, 0))],
        out_specs=pl.BlockSpec((TM, N), lambda i: (i, 0)),
        out_shape=jax.ShapeDtypeStruct((M, N), x.dtype),
        compiler_params=pltpu.CompilerParams(dimension_semantics=("parallel",)),
    )(x, w, b.reshape(1, N), row_scale)


# ----------------------------------------------------------------------------
# PositionNet: whole 3-layer MLP fused into one kernel (M is tiny)
# ----------------------------------------------------------------------------
def _pos_mlp_kernel(x_ref, w1_ref, b1_ref, w2_ref, b2_ref, w3_ref, b3_ref, o_ref):
    def silu(t):
        return t * jax.nn.sigmoid(t)

    h = jnp.dot(x_ref[...].astype(jnp.float32), w1_ref[...].astype(jnp.float32),
                preferred_element_type=jnp.float32) + b1_ref[...].astype(jnp.float32)
    h = silu(h)
    h = jnp.dot(h, w2_ref[...].astype(jnp.float32),
                preferred_element_type=jnp.float32) + b2_ref[...].astype(jnp.float32)
    h = silu(h)
    h = jnp.dot(h, w3_ref[...].astype(jnp.float32),
                preferred_element_type=jnp.float32) + b3_ref[...].astype(jnp.float32)
    o_ref[...] = h.astype(o_ref.dtype)


def fourier_embed(x, num_freqs=8, temperature=100.0):
    freqs = temperature ** (jnp.arange(num_freqs, dtype=jnp.float32) / num_freqs)
    xb = x[..., None, :] * freqs[:, None]                       # (..., F, 4)
    emb = jnp.concatenate([jnp.sin(xb), jnp.cos(xb)], axis=-1)  # [sin, cos] per freq
    return emb.reshape(*x.shape[:-1], num_freqs * 2 * x.shape[-1])


def position_net(p, boxes):
    """boxes: (N, 1, 4) -> (N, 1, 768)."""
    N = boxes.shape[0]
    emb = fourier_embed(boxes).reshape(N, -1)                   # (N, 64)
    D0 = emb.shape[1]
    H1 = p['pos_w1'].shape[1]
    H2 = p['pos_w2'].shape[1]
    DO = p['pos_w3'].shape[1]
    out = pl.pallas_call(
        _pos_mlp_kernel,
        grid=(1,),
        in_specs=[pl.BlockSpec((N, D0), lambda i: (0, 0)),
                  pl.BlockSpec((D0, H1), lambda i: (0, 0)),
                  pl.BlockSpec((1, H1), lambda i: (0, 0)),
                  pl.BlockSpec((H1, H2), lambda i: (0, 0)),
                  pl.BlockSpec((1, H2), lambda i: (0, 0)),
                  pl.BlockSpec((H2, DO), lambda i: (0, 0)),
                  pl.BlockSpec((1, DO), lambda i: (0, 0))],
        out_specs=pl.BlockSpec((N, DO), lambda i: (0, 0)),
        out_shape=jax.ShapeDtypeStruct((N, DO), jnp.float32),
    )(emb, p['pos_w1'], p['pos_b1'].reshape(1, H1),
      p['pos_w2'], p['pos_b2'].reshape(1, H2),
      p['pos_w3'], p['pos_b3'].reshape(1, DO))
    return out.reshape(N, 1, DO)


# ----------------------------------------------------------------------------
# EA cross-attention (2 context keys), all heads per grid step
# ----------------------------------------------------------------------------
def _ea_attn_kernel(q_ref, k_ref, v_ref, o_ref, *rest, scale, heads, with_attn):
    q = q_ref[0].astype(jnp.float32)                            # (HW, C)
    k = k_ref[0].astype(jnp.float32)                            # (2, C)
    v = v_ref[0].astype(jnp.float32)                            # (2, C)
    HW, C = q.shape
    d = C // heads
    # head segment-sum matrix (C, heads) and its transpose (heads, C) via iota
    c_i = lax.broadcasted_iota(jnp.int32, (C, heads), 0)
    h_i = lax.broadcasted_iota(jnp.int32, (C, heads), 1)
    hsum = jnp.logical_and(c_i >= h_i * d, c_i < (h_i + 1) * d).astype(jnp.float32)
    h_j = lax.broadcasted_iota(jnp.int32, (heads, C), 0)
    c_j = lax.broadcasted_iota(jnp.int32, (heads, C), 1)
    hexp = jnp.logical_and(c_j >= h_j * d, c_j < (h_j + 1) * d).astype(jnp.float32)
    # per-head scores against the two context tokens: VPU multiply + MXU head-sum
    s0 = jnp.dot(q * k[0:1], hsum, preferred_element_type=jnp.float32)   # (HW, heads)
    s1 = jnp.dot(q * k[1:2], hsum, preferred_element_type=jnp.float32)
    # 2-way softmax over the key axis == sigmoid of the scaled score difference
    p0 = jax.nn.sigmoid((s0 - s1) * scale)
    p1 = 1.0 - p0
    out = (jnp.dot(p0, hexp, preferred_element_type=jnp.float32) * v[0:1]
           + jnp.dot(p1, hexp, preferred_element_type=jnp.float32) * v[1:2])
    o_ref[0] = out.astype(o_ref.dtype)
    if with_attn:
        a_ref = rest[0]
        a_ref[0, :, 0:1] = jnp.mean(p0, axis=1, keepdims=True).astype(a_ref.dtype)
        a_ref[0, :, 1:2] = jnp.mean(p1, axis=1, keepdims=True).astype(a_ref.dtype)


def ea_attention(q, k, v, scale, heads, with_attn=False):
    """q: (Bi, HW, C); k, v: (Bi, 2, C). Returns (out, head-mean attn or None)."""
    Bi, HW, C = q.shape
    in_specs = [pl.BlockSpec((1, HW, C), lambda i: (i, 0, 0)),
                pl.BlockSpec((1, 2, C), lambda i: (i, 0, 0)),
                pl.BlockSpec((1, 2, C), lambda i: (i, 0, 0))]
    out_specs = [pl.BlockSpec((1, HW, C), lambda i: (i, 0, 0))]
    out_shape = [jax.ShapeDtypeStruct((Bi, HW, C), q.dtype)]
    if with_attn:
        out_specs.append(pl.BlockSpec((1, HW, 2), lambda i: (i, 0, 0)))
        out_shape.append(jax.ShapeDtypeStruct((Bi, HW, 2), jnp.float32))
    res = pl.pallas_call(
        functools.partial(_ea_attn_kernel, scale=scale, heads=heads, with_attn=with_attn),
        grid=(Bi,),
        in_specs=in_specs,
        out_specs=out_specs,
        out_shape=out_shape,
        compiler_params=pltpu.CompilerParams(dimension_semantics=("parallel",)),
    )(q, k, v)
    if with_attn:
        return res[0], res[1]
    return res[0], None


# ----------------------------------------------------------------------------
# Layout (mask-gated) self-attention, all heads per grid step, MXU coverage mask
# ----------------------------------------------------------------------------
def _la_attn_kernel(q_ref, k_ref, v_ref, m_ref, o_ref, *, scale, heads):
    q = q_ref[0].astype(jnp.float32)                            # (HW, C)
    k = k_ref[0].astype(jnp.float32)
    v = v_ref[0].astype(jnp.float32)
    gm = m_ref[0].astype(jnp.float32)                           # (P, HW)
    HW, C = q.shape
    d = C // heads
    # token i may attend token j iff some phase mask covers both: gm.T @ gm on the MXU
    cov = lax.dot_general(gm, gm, (((0,), (0,)), ((), ())),
                          preferred_element_type=jnp.float32)   # (HW, HW)
    neg = jnp.where(cov > 0.0, 0.0, -1e30)
    for h in range(heads):                                      # all heads in one grid step
        qh = q[:, h * d:(h + 1) * d]
        kh = k[:, h * d:(h + 1) * d]
        vh = v[:, h * d:(h + 1) * d]
        s = lax.dot_general(qh, kh, (((1,), (1,)), ((), ())),
                            preferred_element_type=jnp.float32) * scale + neg
        s = s - jnp.max(s, axis=-1, keepdims=True)
        e = jnp.exp(s)
        p = e * pl.reciprocal(jnp.sum(e, axis=-1, keepdims=True), approx=True)
        o = jnp.dot(p, vh, preferred_element_type=jnp.float32)
        o_ref[0, :, h * d:(h + 1) * d] = o.astype(o_ref.dtype)


def layout_self_attention(q, k, v, masks, heads, scale):
    """q/k/v: (B, HW, C); masks: (B, P, HW)."""
    B, HW, C = q.shape
    _, P, _ = masks.shape
    return pl.pallas_call(
        functools.partial(_la_attn_kernel, scale=scale, heads=heads),
        grid=(B,),
        in_specs=[pl.BlockSpec((1, HW, C), lambda i: (i, 0, 0)),
                  pl.BlockSpec((1, HW, C), lambda i: (i, 0, 0)),
                  pl.BlockSpec((1, HW, C), lambda i: (i, 0, 0)),
                  pl.BlockSpec((1, P, HW), lambda i: (i, 0, 0))],
        out_specs=pl.BlockSpec((1, HW, C), lambda i: (i, 0, 0)),
        out_shape=jax.ShapeDtypeStruct((B, HW, C), q.dtype),
        compiler_params=pltpu.CompilerParams(dimension_semantics=("parallel",)),
    )(q, k, v, masks)


# ----------------------------------------------------------------------------
# CBAM: channel gate + spatial gate (7x7 conv as banded matmuls)
# ----------------------------------------------------------------------------
def _cbam_channel_kernel(x_ref, w1_ref, b1_ref, w2_ref, b2_ref, o_ref):
    x = x_ref[0].astype(jnp.float32)                            # (P, HW)
    avg = jnp.mean(x, axis=1, keepdims=True)                    # (P, 1)
    mx = jnp.max(x, axis=1, keepdims=True)
    w1 = w1_ref[...].astype(jnp.float32)                        # (P, P), torch (out, in)
    w2 = w2_ref[...].astype(jnp.float32)
    b1 = b1_ref[...].astype(jnp.float32)                        # (P, 1)
    b2 = b2_ref[...].astype(jnp.float32)

    def mlp(pool):
        h = jnp.maximum(jnp.dot(w1, pool, preferred_element_type=jnp.float32) + b1, 0.0)
        return jnp.dot(w2, h, preferred_element_type=jnp.float32) + b2

    att = jax.nn.sigmoid(mlp(avg) + mlp(mx))                    # (P, 1)
    o_ref[0] = (x * att).astype(o_ref.dtype)


def cbam_channel(x, w1, b1, w2, b2):
    """Channel gate. x: (B, P, HW)."""
    B, P, HW = x.shape
    return pl.pallas_call(
        _cbam_channel_kernel,
        grid=(B,),
        in_specs=[pl.BlockSpec((1, P, HW), lambda i: (i, 0, 0)),
                  pl.BlockSpec((P, P), lambda i: (0, 0)),
                  pl.BlockSpec((P, 1), lambda i: (0, 0)),
                  pl.BlockSpec((P, P), lambda i: (0, 0)),
                  pl.BlockSpec((P, 1), lambda i: (0, 0))],
        out_specs=pl.BlockSpec((1, P, HW), lambda i: (i, 0, 0)),
        out_shape=jax.ShapeDtypeStruct((B, P, HW), x.dtype),
        compiler_params=pltpu.CompilerParams(dimension_semantics=("parallel",)),
    )(x, w1, b1.reshape(P, 1), w2, b2.reshape(P, 1))


def _cbam_spatial_kernel(x_ref, xpad_ref, band_ref, b_ref, o_ref, *, H, W, K):
    xp = xpad_ref[0].astype(jnp.float32)                        # (P, H+K-1, W+K-1)
    pooled = (jnp.max(xp, axis=0), jnp.mean(xp, axis=0))        # ChannelPool: [max, mean]
    acc = jnp.zeros((H, W), jnp.float32) + b_ref[0]
    for c in range(2):
        comp = pooled[c]
        for dy in range(K):
            # KxK conv re-expressed as 2*K banded matmuls on the MXU (no dx slice loop)
            acc = acc + jnp.dot(comp[dy:dy + H, :],
                                band_ref[c, dy].astype(jnp.float32),
                                preferred_element_type=jnp.float32)
    # TODO(synk): BatchNorm2d in eval mode with default running stats (mean=0, var=1)
    acc = acc * (1.0 / math.sqrt(1.0 + 1e-5))
    att = jax.nn.sigmoid(acc)
    o_ref[0] = (x_ref[0].astype(jnp.float32) * att[None, :, :]).astype(o_ref.dtype)


def cbam_spatial(x, w_spatial, b, K=7):
    """Spatial gate (KxK conv over [max, mean] channel pool). x: (B, P, H, W)."""
    B, P, H, W = x.shape
    pad = (K - 1) // 2
    Wp = W + K - 1
    xpad = jnp.pad(x, ((0, 0), (0, 0), (pad, pad), (pad, pad)))
    # banded weight matrices: band[c, dy, dx + j, j] = w_spatial[c, dy, dx]
    shift = np.stack([np.eye(Wp, W, k=-dx, dtype=np.float32) for dx in range(K)])
    band = jnp.einsum('cyk,kpw->cypw', w_spatial, jnp.asarray(shift))    # (2, K, Wp, W)
    return pl.pallas_call(
        functools.partial(_cbam_spatial_kernel, H=H, W=W, K=K),
        grid=(B,),
        in_specs=[pl.BlockSpec((1, P, H, W), lambda i: (i, 0, 0, 0)),
                  pl.BlockSpec((1, P, H + K - 1, Wp), lambda i: (i, 0, 0, 0)),
                  pl.BlockSpec((2, K, Wp, W), lambda i: (0, 0, 0, 0)),
                  pl.BlockSpec((1,), lambda i: (0,),
                               memory_space=pltpu.MemorySpace.SMEM)],
        out_specs=pl.BlockSpec((1, P, H, W), lambda i: (i, 0, 0, 0)),
        out_shape=jax.ShapeDtypeStruct((B, P, H, W), x.dtype),
        compiler_params=pltpu.CompilerParams(dimension_semantics=("parallel",)),
    )(x, xpad, band, b)


# ----------------------------------------------------------------------------
# SAC fuse: phase-softmax + weighted sum, tiled over HW
# ----------------------------------------------------------------------------
def _sac_fuse_kernel(x_ref, s_ref, o_ref, p_ref):
    s = s_ref[0].astype(jnp.float32)                            # (P, THW)
    s = s - jnp.max(s, axis=0, keepdims=True)
    e = jnp.exp(s)
    p = e * pl.reciprocal(jnp.sum(e, axis=0, keepdims=True), approx=True)
    x = x_ref[0].astype(jnp.float32)                            # (P, THW, C)
    out = jnp.sum(x * p[:, :, None], axis=0)                    # (THW, C)
    o_ref[0, 0] = out.astype(o_ref.dtype)
    p_ref[0] = p.astype(p_ref.dtype)


def sac_fuse(x, scale):
    """x: (B, P, HW, C), scale: (B, P, HW) -> out (B,1,HW,C), softmaxed scale."""
    B, P, HW, C = x.shape
    THW = _hw_tile(HW)
    return pl.pallas_call(
        _sac_fuse_kernel,
        grid=(B, HW // THW),
        in_specs=[pl.BlockSpec((1, P, THW, C), lambda b, t: (b, 0, t, 0)),
                  pl.BlockSpec((1, P, THW), lambda b, t: (b, 0, t))],
        out_specs=[pl.BlockSpec((1, 1, THW, C), lambda b, t: (b, 0, t, 0)),
                   pl.BlockSpec((1, P, THW), lambda b, t: (b, 0, t))],
        out_shape=(jax.ShapeDtypeStruct((B, 1, HW, C), x.dtype),
                   jax.ShapeDtypeStruct((B, P, HW), jnp.float32)),
        compiler_params=pltpu.CompilerParams(
            dimension_semantics=("parallel", "parallel")),
    )(x, scale)


# ----------------------------------------------------------------------------
# JAX glue (resize, parameter setup, module composition)
# ----------------------------------------------------------------------------
def bilinear_resize(x, out_h, out_w):
    """F.interpolate(mode='bilinear', align_corners=False) equivalent. x: (B,C,H,W)."""
    B, C, H, W = x.shape
    if (H, W) == (out_h, out_w):
        return x

    def coords(out_size, in_size):
        c = (jnp.arange(out_size, dtype=jnp.float32) + 0.5) * (in_size / out_size) - 0.5
        c = jnp.clip(c, 0.0, in_size - 1)
        lo = jnp.floor(c).astype(jnp.int32)
        hi = jnp.minimum(lo + 1, in_size - 1)
        return lo, hi, c - lo

    y0, y1, wy = coords(out_h, H)
    x0, x1, wx = coords(out_w, W)
    g = lambda yy, xx: x[:, :, yy[:, None], xx[None, :]]
    top = g(y0, x0) * (1 - wx)[None, None, None, :] + g(y0, x1) * wx[None, None, None, :]
    bot = g(y1, x0) * (1 - wx)[None, None, None, :] + g(y1, x1) * wx[None, None, None, :]
    return top * (1 - wy)[None, None, :, None] + bot * wy[None, None, :, None]


def init_params(key, C=32, context_dim=768, number_pro=30, fourier_freqs=8):
    ks = jax.random.split(key, 12)
    w = lambda k, shape: 0.02 * jax.random.normal(k, shape, jnp.float32)
    p = {}
    p['ln_g'] = jnp.ones((C,), jnp.float32)
    p['ln_b'] = jnp.zeros((C,), jnp.float32)
    # EA cross-attention (weights stored (in, out) for x @ W; to_q/k/v have no bias)
    p['ea_wq'] = w(ks[0], (C, C))
    p['ea_wkv'] = w(ks[1], (context_dim, 2 * C))        # fused [to_k | to_v]
    p['ea_wo'] = w(ks[2], (C, C)); p['ea_bo'] = jnp.zeros((C,), jnp.float32)
    # Layout attention, fused [to_q | to_k | to_v]
    p['la_wqkv'] = w(ks[3], (C, 3 * C))
    p['la_wo'] = w(ks[4], (C, C)); p['la_bo'] = jnp.zeros((C,), jnp.float32)
    # SAC conv2: Conv2d(C, 1, 1, 1) -> channels-last matmul (C, 1)
    p['sac_conv_w'] = w(ks[5], (C, 1)); p['sac_conv_b'] = jnp.zeros((1,), jnp.float32)
    # CBAM(number_pro, reduction_ratio=1): channel MLP (torch (out,in)) + 7x7 spatial conv
    p['cbam_w1'] = w(ks[6], (number_pro, number_pro)); p['cbam_b1'] = jnp.zeros((number_pro,), jnp.float32)
    p['cbam_w2'] = w(ks[7], (number_pro, number_pro)); p['cbam_b2'] = jnp.zeros((number_pro,), jnp.float32)
    p['cbam_sw'] = w(ks[8], (2, 7, 7)); p['cbam_sb'] = jnp.zeros((1,), jnp.float32)
    # PositionNet: 64 -> 512 -> 512 -> 768
    pos_dim = fourier_freqs * 2 * 4
    p['pos_w1'] = w(ks[9], (pos_dim, 512)); p['pos_b1'] = jnp.zeros((512,), jnp.float32)
    p['pos_w2'] = w(ks[10], (512, 512)); p['pos_b2'] = jnp.zeros((512,), jnp.float32)
    p['pos_w3'] = w(ks[11], (512, context_dim)); p['pos_b3'] = jnp.zeros((context_dim,), jnp.float32)
    # matches reference nn.Parameter(torch.zeros(1)); load real value from checkpoint
    p['gamma'] = jnp.zeros((1,), jnp.float32)
    return p


def sac_forward(p, x, other_info, sac_scale=None, number_pro=30):
    """x: (B, phase_num, HW, C)."""
    B, phase_num, HW, C = x.shape
    H = other_info['feature_height']
    W = other_info['feature_width']
    null_x = jnp.zeros_like(x[:, :1])
    x = jnp.concatenate([x, null_x], axis=1)
    phase_num += 1
    # 1x1 conv C -> 1 as a channels-last matmul (Pallas, M-tiled)
    scale = linear(x.reshape(B * phase_num * HW, C), p['sac_conv_w'], p['sac_conv_b'])
    scale = scale.reshape(B, phase_num, H, W)
    null_scale = scale[:, -1:]
    scale = scale[:, :-1]
    x = x[:, :-1]
    pad_num = number_pro - phase_num + 1
    assert pad_num >= 0, "number_pro must be >= instance_num + 2"
    ori_phase_num = scale.shape[1] - 1
    phase_scale = jnp.concatenate(
        [scale[:, :-1], jnp.tile(null_scale, (1, pad_num, 1, 1))], axis=1)
    # TODO(synk): torch.randperm -> deterministic permutation
    shuffled = np.random.RandomState(0).permutation(phase_scale.shape[1])
    inv_shuffled = np.argsort(shuffled)
    random_phase_scale = phase_scale[:, shuffled]
    scale = jnp.concatenate([random_phase_scale, scale[:, -1:]], axis=1)  # (B, 30, H, W)
    # CBAM: channel gate + spatial gate (both Pallas)
    scale = cbam_channel(scale.reshape(B, number_pro, H * W),
                         p['cbam_w1'], p['cbam_b1'], p['cbam_w2'], p['cbam_b2'])
    scale = cbam_spatial(scale.reshape(B, number_pro, H, W), p['cbam_sw'], p['cbam_sb'])
    scale = scale.reshape(B, number_pro, HW)
    random_phase_scale = scale[:, :-1]
    phase_scale = random_phase_scale[:, inv_shuffled[:ori_phase_num]]
    if sac_scale is not None:
        ss = jnp.asarray(sac_scale, jnp.float32).reshape(1, -1, 1)
        phase_scale = phase_scale * ss
    scale = jnp.concatenate([phase_scale, scale[:, -1:]], axis=1)         # (B, inst+1, HW)
    out, scale_sm = sac_fuse(x, scale)   # Pallas: softmax over phases + weighted sum
    return out, scale_sm[..., None]


def migc_forward(p, ca_x, guidance_mask, other_info, heads=8, return_fuser_info=False):
    ea_scale = other_info.get('ea_scale', None)
    sac_scale = other_info.get('sac_scale', None)
    mig_ca_x = ca_x[:, :1]
    full_H, full_W = other_info['height'], other_info['width']
    B, _, HW, C = ca_x.shape
    instance_num = guidance_mask.shape[1]
    down_scale = int(math.sqrt(full_H * full_W // HW))
    H, W = full_H // down_scale, full_W // down_scale
    other_info = dict(other_info)
    other_info['feature_height'] = H
    other_info['feature_width'] = W
    guidance_mask = bilinear_resize(guidance_mask, H, W)
    supplement_mask = bilinear_resize(other_info['supplement_mask'], H, W)
    image_token = other_info['image_token']
    assert image_token.shape == ca_x.shape
    context_pooler = other_info['context_pooler']
    box = other_info['box']
    Bi = B * instance_num
    d = C // heads

    # PositionNet on boxes (single fused-MLP kernel)
    box_token = position_net(p, box.reshape(Bi, 1, -1))                   # (Bi, 1, 768)
    if context_pooler.ndim == 3:
        ctx0 = context_pooler[1:].reshape(Bi, 1, -1)
    else:
        ctx0 = context_pooler[:, 1:].reshape(Bi, 1, -1)
    context = jnp.concatenate([ctx0, box_token], axis=1)                  # (Bi, 2, 768)

    # ---- EA: fused LN+q proj, fused k|v proj, 2-key attention,
    #          fused out-proj * (guidance mask * ea_scale)
    flat_img = image_token[:, 1:].reshape(Bi * HW, C)
    q = ln_linear(flat_img, p['ln_g'], p['ln_b'], p['ea_wq']).reshape(Bi, HW, C)
    kv = linear(context.reshape(Bi * 2, -1), p['ea_wkv'])                 # (Bi*2, 2C)
    kv = kv.reshape(Bi, 2, 2 * C)
    k = kv[:, :, :C]
    v = kv[:, :, C:]
    ea_out, ea_attn_mean = ea_attention(q, k, v, scale=d ** -0.5, heads=heads,
                                        with_attn=return_fuser_info)
    gmask_flat = guidance_mask.reshape(B, instance_num, HW)
    row_scale = gmask_flat
    if ea_scale is not None:
        row_scale = row_scale * jnp.asarray(ea_scale, jnp.float32).reshape(1, instance_num, 1)
    row_scale = row_scale.reshape(Bi * HW, 1)
    ea_x = linear_rowscale(ea_out.reshape(Bi * HW, C), p['ea_wo'], p['ea_bo'], row_scale)
    ea_x = ea_x.reshape(B, instance_num, HW, C)

    # ---- LA: fused q|k|v projection, layout (mask-gated) self-attention, out proj
    ori_image_token = image_token[:, 0]                                   # (B, HW, C)
    # TODO(synk): cov>0 with soft (bilinear) masks; hard/binary masks in the reference
    la_mask = jnp.concatenate([guidance_mask, supplement_mask], axis=1).reshape(
        B, instance_num + 1, HW)
    qkv = linear(ori_image_token.reshape(B * HW, C), p['la_wqkv'])        # (B*HW, 3C)
    lq = qkv[:, :C].reshape(B, HW, C)
    lk = qkv[:, C:2 * C].reshape(B, HW, C)
    lv = qkv[:, 2 * C:].reshape(B, HW, C)
    la_out = layout_self_attention(lq, lk, lv, la_mask, heads, d ** -0.5)
    fusion_template = linear(la_out.reshape(B * HW, C), p['la_wo'], p['la_bo'])
    fusion_template = fusion_template.reshape(B, 1, HW, C)

    # ---- SAC fusion
    shading = jnp.concatenate([ea_x, fusion_template], axis=1)            # (B, inst+1, HW, C)
    out_sac, sac_scale_out = sac_forward(p, shading, other_info, sac_scale=sac_scale)
    out_migc = mig_ca_x + out_sac * jnp.tanh(p['gamma']) * other_info.get('gamma_scale', 1.0)

    if return_fuser_info:
        fuser_info = {
            'sac_scale': sac_scale_out.reshape(B, instance_num + 1, H, W),
            'ea_attn': ea_attn_mean.reshape(B, instance_num, H, W, 2),
        }
        return out_migc, fuser_info
    return out_migc


# ----------------------------------------------------------------------------
if __name__ == "__main__":
    key = jax.random.PRNGKey(0)
    B, instance_num, C, heads = 2, 2, 32, 8
    H = W = 8
    HW = H * W
    context_dim = 768

    kp, k1, k2, k3, k4, k5 = jax.random.split(key, 6)
    params = init_params(kp, C=C, context_dim=context_dim)

    ca_x = jax.random.normal(k1, (B, instance_num + 1, HW, C), jnp.float32)
    guidance_mask = (jax.random.uniform(k2, (B, instance_num, H, W)) > 0.5).astype(jnp.float32)
    supplement_mask = jnp.clip(1.0 - jnp.sum(guidance_mask, axis=1, keepdims=True), 0.0, 1.0)
    image_token = jax.random.normal(k3, (B, instance_num + 1, HW, C), jnp.float32)
    context_pooler = jax.random.normal(k4, (B * instance_num + 1, 1, context_dim), jnp.float32)
    box = jax.random.uniform(k5, (B, instance_num, 4), jnp.float32)

    other_info = {
        'height': H, 'width': W,
        'supplement_mask': supplement_mask,
        'image_token': image_token,
        'context_pooler': context_pooler,
        'box': box,
        'gamma_scale': 1.0,
    }

    out, fuser_info = migc_forward(params, ca_x, guidance_mask, other_info,
                                   heads=heads, return_fuser_info=True)
    out = jax.block_until_ready(out)
    assert out.shape == (B, 1, HW, C), out.shape
    assert bool(jnp.all(jnp.isfinite(out)))
    assert fuser_info['sac_scale'].shape == (B, instance_num + 1, H, W)
    assert fuser_info['ea_attn'].shape == (B, instance_num, H, W, 2)
    assert bool(jnp.all(jnp.isfinite(fuser_info['sac_scale'])))
    assert bool(jnp.all(jnp.isfinite(fuser_info['ea_attn'])))
    print("KERNEL_OK")
</pallas_src>

<mosaic_0001>
module attributes {stable_mosaic.version = 11 : i64} {
  func.func @_pos_mlp_kernel(%arg0: i32, %arg1: memref<4x64xf32, #tpu.memory_space<vmem>>, %arg2: memref<64x512xf32, #tpu.memory_space<vmem>>, %arg3: memref<1x512xf32, #tpu.memory_space<vmem>>, %arg4: memref<512x512xf32, #tpu.memory_space<vmem>>, %arg5: memref<1x512xf32, #tpu.memory_space<vmem>>, %arg6: memref<512x768xf32, #tpu.memory_space<vmem>>, %arg7: memref<1x768xf32, #tpu.memory_space<vmem>>, %arg8: memref<4x768xf32, #tpu.memory_space<vmem>>) attributes {dimension_semantics = [#tpu.dimension_semantics<arbitrary>], iteration_bounds = array<i64: 1>, scalar_prefetch = 0 : i64, scratch_operands = 0 : i64, tpu.core_type = #tpu.core_type<tc>, window_params = [{pipeline_mode = #tpu.pipeline_mode<synchronous>, transform_indices = @transform_0, window_bounds = array<i64: 4, 64>}, {pipeline_mode = #tpu.pipeline_mode<synchronous>, transform_indices = @transform_1, window_bounds = array<i64: 64, 512>}, {pipeline_mode = #tpu.pipeline_mode<synchronous>, transform_indices = @transform_2, window_bounds = array<i64: 1, 512>}, {pipeline_mode = #tpu.pipeline_mode<synchronous>, transform_indices = @transform_3, window_bounds = array<i64: 512, 512>}, {pipeline_mode = #tpu.pipeline_mode<synchronous>, transform_indices = @transform_4, window_bounds = array<i64: 1, 512>}, {pipeline_mode = #tpu.pipeline_mode<synchronous>, transform_indices = @transform_5, window_bounds = array<i64: 512, 768>}, {pipeline_mode = #tpu.pipeline_mode<synchronous>, transform_indices = @transform_6, window_bounds = array<i64: 1, 768>}, {pipeline_mode = #tpu.pipeline_mode<synchronous>, transform_indices = @transform_7, window_bounds = array<i64: 4, 768>}]} {
    %c0 = arith.constant 0 : index
    %c0_0 = arith.constant 0 : index
    %0 = vector.load %arg1[%c0, %c0_0] : memref<4x64xf32, #tpu.memory_space<vmem>>, vector<4x64xf32>
    %c0_1 = arith.constant 0 : index
    %c0_2 = arith.constant 0 : index
    %1 = vector.load %arg2[%c0_1, %c0_2] : memref<64x512xf32, #tpu.memory_space<vmem>>, vector<64x512xf32>
    %cst = arith.constant dense<0.000000e+00> : vector<4x512xf32>
    %2 = tpu.matmul %0, %1, %cst {dimension_numbers = #tpu.dot_dimension_numbers<[1], [0], [0], [1], [0, 0, 1, 1], [], []>} : vector<4x64xf32>, vector<64x512xf32>, vector<4x512xf32> -> vector<4x512xf32>
    %c0_3 = arith.constant 0 : index
    %c0_4 = arith.constant 0 : index
    %3 = vector.load %arg3[%c0_3, %c0_4] : memref<1x512xf32, #tpu.memory_space<vmem>>, vector<1x512xf32>
    %4 = vector.broadcast %3 : vector<1x512xf32> to vector<4x512xf32>
    %5 = arith.addf %2, %4 : vector<4x512xf32>
    %6 = arith.negf %5 : vector<4x512xf32>
    %7 = math.exp %6 : vector<4x512xf32>
    %cst_5 = arith.constant 1.000000e+00 : f32
    %8 = vector.broadcast %cst_5 : f32 to vector<4x512xf32>
    %9 = arith.addf %8, %7 : vector<4x512xf32>
    %10 = arith.divf %8, %9 : vector<4x512xf32>
    %11 = arith.mulf %5, %10 : vector<4x512xf32>
    %c0_6 = arith.constant 0 : index
    %c0_7 = arith.constant 0 : index
    %12 = vector.load %arg4[%c0_6, %c0_7] : memref<512x512xf32, #tpu.memory_space<vmem>>, vector<512x512xf32>
    %cst_8 = arith.constant dense<0.000000e+00> : vector<4x512xf32>
    %13 = tpu.matmul %11, %12, %cst_8 {dimension_numbers = #tpu.dot_dimension_numbers<[1], [0], [0], [1], [0, 0, 1, 1], [], []>} : vector<4x512xf32>, vector<512x512xf32>, vector<4x512xf32> -> vector<4x512xf32>
    %c0_9 = arith.constant 0 : index
    %c0_10 = arith.constant 0 : index
    %14 = vector.load %arg5[%c0_9, %c0_10] : memref<1x512xf32, #tpu.memory_space<vmem>>, vector<1x512xf32>
    %15 = vector.broadcast %14 : vector<1x512xf32> to vector<4x512xf32>
    %16 = arith.addf %13, %15 : vector<4x512xf32>
    %17 = arith.negf %16 : vector<4x512xf32>
    %18 = math.exp %17 : vector<4x512xf32>
    %cst_11 = arith.constant 1.000000e+00 : f32
    %19 = vector.broadcast %cst_11 : f32 to vector<4x512xf32>
    %20 = arith.addf %19, %18 : vector<4x512xf32>
    %21 = arith.divf %19, %20 : vector<4x512xf32>
    %22 = arith.mulf %16, %21 : vector<4x512xf32>
    %c0_12 = arith.constant 0 : index
    %c0_13 = arith.constant 0 : index
    %23 = vector.load %arg6[%c0_12, %c0_13] : memref<512x768xf32, #tpu.memory_space<vmem>>, vector<512x768xf32>
    %cst_14 = arith.constant dense<0.000000e+00> : vector<4x768xf32>
    %24 = tpu.matmul %22, %23, %cst_14 {dimension_numbers = #tpu.dot_dimension_numbers<[1], [0], [0], [1], [0, 0, 1, 1], [], []>} : vector<4x512xf32>, vector<512x768xf32>, vector<4x768xf32> -> vector<4x768xf32>
    %c0_15 = arith.constant 0 : index
    %c0_16 = arith.constant 0 : index
    %25 = vector.load %arg7[%c0_15, %c0_16] : memref<1x768xf32, #tpu.memory_space<vmem>>, vector<1x768xf32>
    %26 = vector.broadcast %25 : vector<1x768xf32> to vector<4x768xf32>
    %27 = arith.addf %24, %26 : vector<4x768xf32>
    %c0_17 = arith.constant 0 : index
    %c0_18 = arith.constant 0 : index
    %28 = vector.load %arg8[%c0_17, %c0_18] : memref<4x768xf32, #tpu.memory_space<vmem>>, vector<4x768xf32>
    tpu.vector_store %arg8[%c0_17, %c0_18], %27 {strides = array<i32>} : memref<4x768xf32, #tpu.memory_space<vmem>>, vector<4x768xf32>,
    return
  }
  func.func @transform_0(%arg0: i32) -> (i32, i32) {
    %c0_i32 = arith.constant 0 : i32
    %c0_i32_0 = arith.constant 0 : i32
    %c0_i32_1 = arith.constant 0 : i32
    return %c0_i32, %c0_i32_0 : i32, i32
  }
  func.func @transform_1(%arg0: i32) -> (i32, i32) {
    %c0_i32 = arith.constant 0 : i32
    %c0_i32_0 = arith.constant 0 : i32
    %c0_i32_1 = arith.constant 0 : i32
    return %c0_i32, %c0_i32_0 : i32, i32
  }
  func.func @transform_2(%arg0: i32) -> (i32, i32) {
    %c0_i32 = arith.constant 0 : i32
    %c0_i32_0 = arith.constant 0 : i32
    %c0_i32_1 = arith.constant 0 : i32
    return %c0_i32, %c0_i32_0 : i32, i32
  }
  func.func @transform_3(%arg0: i32) -> (i32, i32) {
    %c0_i32 = arith.constant 0 : i32
    %c0_i32_0 = arith.constant 0 : i32
    %c0_i32_1 = arith.constant 0 : i32
    return %c0_i32, %c0_i32_0 : i32, i32
  }
  func.func @transform_4(%arg0: i32) -> (i32, i32) {
    %c0_i32 = arith.constant 0 : i32
    %c0_i32_0 = arith.constant 0 : i32
    %c0_i32_1 = arith.constant 0 : i32
    return %c0_i32, %c0_i32_0 : i32, i32
  }
  func.func @transform_5(%arg0: i32) -> (i32, i32) {
    %c0_i32 = arith.constant 0 : i32
    %c0_i32_0 = arith.constant 0 : i32
    %c0_i32_1 = arith.constant 0 : i32
    return %c0_i32, %c0_i32_0 : i32, i32
  }
  func.func @transform_6(%arg0: i32) -> (i32, i32) {
    %c0_i32 = arith.constant 0 : i32
    %c0_i32_0 = arith.constant 0 : i32
    %c0_i32_1 = arith.constant 0 : i32
    return %c0_i32, %c0_i32_0 : i32, i32
  }
  func.func @transform_7(%arg0: i32) -> (i32, i32) {
    %c0_i32 = arith.constant 0 : i32
    %c0_i32_0 = arith.constant 0 : i32
    %c0_i32_1 = arith.constant 0 : i32
    return %c0_i32, %c0_i32_0 : i32, i32
  }
}

</mosaic_0001>

<bundles_post_ra>
// kernel: tpu_custom_call.1
= control target key start
LH: loop header
LB: loop body
LE: loop exit
PB: predicated region body
PF: predicated region fallthrough
CT: control target
= control target key end

     0   :  { %12 = vsyncpa [#allocation3], 0  ;;  %s2958_s0 = inlined_call_operand.hbm [shape: f32[4,64], index: 0, kind: input, shape index: {}]   ;;  %s2959_s1 = inlined_call_operand.hbm [shape: f32[64,512], index: 1, kind: input, shape index: {}]   ;;  %s2960_s2 = inlined_call_operand.hbm [shape: f32[1,512], index: 2, kind: input, shape index: {}]   ;;  %s2961_s3 = inlined_call_operand.hbm [shape: f32[512,512], index: 3, kind: input, shape index: {}]   ;;  %s2962_s4 = inlined_call_operand.hbm [shape: f32[1,512], index: 4, kind: input, shape index: {}]   ;;  %s2963_s5 = inlined_call_operand.hbm [shape: f32[512,768], index: 5, kind: input, shape index: {}]   ;;  %s2964_s6 = inlined_call_operand.hbm [shape: f32[1,768], index: 6, kind: input, shape index: {}]   ;;  %s2965_s7 = inlined_call_operand.hbm [shape: f32[4,768], index: 7, kind: output, shape index: {}]  }
   0x1   :  { %13 = vsyncpa [#allocation6], 0 }
   0x2   :  { %14 = vsyncpa [#allocation9], 0 }
   0x3   :  { %15 = vsyncpa [#allocation12], 0 }
   0x4   :  { %16 = vsyncpa [#allocation4], 0  ;;  %s2741_s24 = smov [#allocation5]   ;;  %s2555_s28 = scalar_lea.hbm %s2959_s1, 4096 }
   0x5   :  { %s32_s25 = sshll.u32 %s2741_s24, 4  ;;  %p2556_p0 = scmp.ne.s32.totalorder %s2959_s1, %s2555_s28  ;;  %s33_s25 = int_to_ptr.vmem [resolvable:$true] %s32_s25 }
   0x6   :  { %p2559_p1 = scmp.lt.u32.totalorder %s2555_s28, %s2959_s1 }
   0x8   :  { %p2561_p2 = pnand %p2559_p1, %p2556_p0 }
   0xa   :  { %2564 = shalt.err (!%p2561_p2)
}
   0xb   :  { %s2565_s10 = scalar_lea.vmem %s33_s25, 4096  ;;  %p2570_p4 = scmp.lt.s32.totalorder %s33_s25, %s33_s25 }
   0xc   :  { %p2566_p3 = scmp.ne.s32.totalorder %s33_s25, %s2565_s10  ;;  %p2571_p5 = scmp.lt.s32.totalorder %s2565_s10, %s2565_s10 }
   0xe   :  { %p2572_p6 = por %p2571_p5, %p2570_p4 }
  0x10   :  { %p2573_p7 = pnand %p2572_p6, %p2566_p3 }
  0x12   :  { %2576 = shalt.err (!%p2573_p7)
}
  0x13   :  { %s2742_s11 = smov 512   ;;  %s2743_s12 = smov 32  }
  0x14   :  { %38 = dma.hbm_to_vmem [thread:$0]  %s2959_s1, 4096, %s33_s25, [#allocation6], %s2742_s11, %s2742_s11, %s2743_s12  }
  0x15   :  { %s2744_s15 = smov [#allocation8]   ;;  %s2745_s17 = smov [#allocation11]  }
  0x16   :  { %s54_s16 = sshll.u32 %s2744_s15, 4  ;;  %s76_s18 = sshll.u32 %s2745_s17, 4  ;;  %s55_s16 = int_to_ptr.vmem [resolvable:$true] %s54_s16  ;;  %s77_s18 = int_to_ptr.vmem [resolvable:$true] %s76_s18 }
  0x17   :  { %s2577_s21 = scalar_lea.hbm %s2961_s3, 32768 }
  0x18   :  { %p2578_p8 = scmp.ne.s32.totalorder %s2961_s3, %s2577_s21  ;;  %p2581_p9 = scmp.lt.u32.totalorder %s2577_s21, %s2961_s3 }
  0x1a   :  { %p2583_p10 = pnand %p2581_p9, %p2578_p8 }
  0x1c   :  { %2586 = shalt.err (!%p2583_p10)
}
  0x1d   :  { %s2587_s1 = scalar_lea.vmem %s55_s16, 32768  ;;  %p2592_p12 = scmp.lt.s32.totalorder %s55_s16, %s55_s16 }
  0x1e   :  { %p2588_p11 = scmp.ne.s32.totalorder %s55_s16, %s2587_s1  ;;  %p2593_p13 = scmp.lt.s32.totalorder %s2587_s1, %s2587_s1 }
  0x20   :  { %p2594_p0 = por %p2593_p13, %p2592_p12 }
  0x22   :  { %p2595_p1 = pnand %p2594_p0, %p2588_p11 }
  0x24   :  { %2598 = shalt.err (!%p2595_p1)
}
  0x25   :  { %60 = dma.hbm_to_vmem [thread:$0]  %s2961_s3, 32768, %s55_s16, [#allocation9], %s2742_s11, %s2742_s11, %s2743_s12  }
  0x26   :  { %s2599_s30 = scalar_lea.hbm %s2963_s5, 49152 }
  0x27   :  { %p2600_p2 = scmp.ne.s32.totalorder %s2963_s5, %s2599_s30  ;;  %p2603_p3 = scmp.lt.u32.totalorder %s2599_s30, %s2963_s5 }
  0x29   :  { %p2605_p4 = pnand %p2603_p3, %p2600_p2 }
  0x2b   :  { %2608 = shalt.err (!%p2605_p4)
}
  0x2c   :  { %s2609_s14 = scalar_lea.vmem %s77_s18, 49152  ;;  %p2614_p6 = scmp.lt.s32.totalorder %s77_s18, %s77_s18 }
  0x2d   :  { %p2610_p5 = scmp.ne.s32.totalorder %s77_s18, %s2609_s14  ;;  %p2615_p7 = scmp.lt.s32.totalorder %s2609_s14, %s2609_s14 }
  0x2f   :  { %p2616_p8 = por %p2615_p7, %p2614_p6 }
  0x31   :  { %p2617_p9 = pnand %p2616_p8, %p2610_p5 }
  0x33   :  { %2620 = shalt.err (!%p2617_p9)
}
  0x34   :  { %s2746_s3 = smov 768   ;;  %s2747_s11 = smov 48  }
  0x35   :  { %82 = dma.hbm_to_vmem [thread:$0]  %s2963_s5, 49152, %s77_s18, [#allocation12], %s2746_s3, %s2746_s3, %s2747_s11  }
  0x36   :  { %s2748_s16 = smov [#allocation2]   ;;  %s2749_s19 = smov [#allocation7]  }
  0x37   :  { %s23_s17 = sshll.u32 %s2748_s16, 4  ;;  %s45_s20 = sshll.u32 %s2749_s19, 4  ;;  %s24_s17 = int_to_ptr.vmem [resolvable:$true] %s23_s17  ;;  %s46_s20 = int_to_ptr.vmem [resolvable:$true] %s45_s20 }
  0x38   :  { %s2621_s23 = scalar_lea.hbm %s2958_s0, 64 }
  0x39   :  { %p2622_p10 = scmp.ne.s32.totalorder %s2958_s0, %s2621_s23  ;;  %p2625_p11 = scmp.lt.u32.totalorder %s2621_s23, %s2958_s0 }
  0x3b   :  { %p2627_p12 = pnand %p2625_p11, %p2622_p10 }
  0x3d   :  { %2630 = shalt.err (!%p2627_p12)
}
  0x3e   :  { %s2631_s5 = scalar_lea.vmem %s24_s17, 64  ;;  %p2636_p0 = scmp.lt.s32.totalorder %s24_s17, %s24_s17 }
  0x3f   :  { %p2632_p13 = scmp.ne.s32.totalorder %s24_s17, %s2631_s5  ;;  %p2637_p1 = scmp.lt.s32.totalorder %s2631_s5, %s2631_s5 }
  0x41   :  { %p2638_p2 = por %p2637_p1, %p2636_p0 }
  0x43   :  { %p2639_p3 = pnand %p2638_p2, %p2632_p13 }
  0x45   :  { %2642 = shalt.err (!%p2639_p3)
}
  0x46   :  { %26 = dma.hbm_to_vmem [thread:$0]  %s2958_s0, 64, %s24_s17, [#allocation3]  }
  0x47   :  { %s2643_s30 = scalar_lea.hbm %s2960_s2, 64 }
  0x48   :  { %p2644_p4 = scmp.ne.s32.totalorder %s2960_s2, %s2643_s30  ;;  %p2647_p5 = scmp.lt.u32.totalorder %s2643_s30, %s2960_s2 }
  0x4a   :  { %p2649_p6 = pnand %p2647_p5, %p2644_p4 }
  0x4c   :  { %2652 = shalt.err (!%p2649_p6)
}
  0x4d   :  { %s2653_s14 = scalar_lea.vmem %s46_s20, 64  ;;  %p2658_p8 = scmp.lt.s32.totalorder %s46_s20, %s46_s20 }
  0x4e   :  { %p2654_p7 = scmp.ne.s32.totalorder %s46_s20, %s2653_s14  ;;  %p2659_p9 = scmp.lt.s32.totalorder %s2653_s14, %s2653_s14 }
  0x50   :  { %p2660_p10 = por %p2659_p9, %p2658_p8 }
  0x52   :  { %p2661_p11 = pnand %p2660_p10, %p2654_p7 }
  0x54   :  { %2664 = shalt.err (!%p2661_p11)
}
  0x55   :  { %48 = dma.hbm_to_vmem [thread:$0]  %s2960_s2, 64, %s46_s20, [#allocation6]  }
  0x56   :  { %s2750_s11 = smov [#allocation10]   ;;  %s2751_s15 = smov [#allocation13]  }
  0x57   :  { %s67_s12 = sshll.u32 %s2750_s11, 4  ;;  %s89_s16 = sshll.u32 %s2751_s15, 4  ;;  %s68_s12 = int_to_ptr.vmem [resolvable:$true] %s67_s12  ;;  %s90_s16 = int_to_ptr.vmem [resolvable:$true] %s89_s16 }
  0x58   :  { %s2665_s21 = scalar_lea.hbm %s2962_s4, 64 }
  0x59   :  { %p2666_p12 = scmp.ne.s32.totalorder %s2962_s4, %s2665_s21  ;;  %p2669_p13 = scmp.lt.u32.totalorder %s2665_s21, %s2962_s4 }
  0x5b   :  { %p2671_p0 = pnand %p2669_p13, %p2666_p12 }
  0x5d   :  { %2674 = shalt.err (!%p2671_p0)
}
  0x5e   :  { %s2675_s2 = scalar_lea.vmem %s68_s12, 64  ;;  %p2680_p2 = scmp.lt.s32.totalorder %s68_s12, %s68_s12 }
  0x5f   :  { %p2676_p1 = scmp.ne.s32.totalorder %s68_s12, %s2675_s2  ;;  %p2681_p3 = scmp.lt.s32.totalorder %s2675_s2, %s2675_s2 }
  0x61   :  { %p2682_p4 = por %p2681_p3, %p2680_p2 }
  0x63   :  { %p2683_p5 = pnand %p2682_p4, %p2676_p1 }
  0x65   :  { %2686 = shalt.err (!%p2683_p5)
}
  0x66   :  { %70 = dma.hbm_to_vmem [thread:$0]  %s2962_s4, 64, %s68_s12, [#allocation9]  }
  0x67   :  { %s2687_s18 = scalar_lea.hbm %s2964_s6, 96 }
  0x68   :  { %p2688_p6 = scmp.ne.s32.totalorder %s2964_s6, %s2687_s18  ;;  %p2691_p7 = scmp.lt.u32.totalorder %s2687_s18, %s2964_s6 }
  0x6a   :  { %p2693_p8 = pnand %p2691_p7, %p2688_p6 }
  0x6c   :  { %2696 = shalt.err (!%p2693_p8)
}
  0x6d   :  { %s2697_s8 = scalar_lea.vmem %s90_s16, 96  ;;  %p2702_p10 = scmp.lt.s32.totalorder %s90_s16, %s90_s16 }
  0x6e   :  { %p2698_p9 = scmp.ne.s32.totalorder %s90_s16, %s2697_s8  ;;  %p2703_p11 = scmp.lt.s32.totalorder %s2697_s8, %s2697_s8 }
  0x70   :  { %p2704_p12 = por %p2703_p11, %p2702_p10 }
  0x72   :  { %p2705_p13 = pnand %p2704_p12, %p2698_p9 }
  0x74   :  { %2708 = shalt.err (!%p2705_p13)
}
  0x75   :  { %92 = dma.hbm_to_vmem [thread:$0]  %s2964_s6, 96, %s90_s16, [#allocation12]  }
  0x76   :  { %2731 = dma.done.wait [#allocation3], 64  }
  0x77   :  { %2732 = vsyncadd [#allocation3], 4294967232 }
  0x78   :  { %2733 = dma.done.wait [#allocation6], 4160  }
  0x79   :  { %2734 = vsyncadd [#allocation6], 4294963136 }
  0x7a   :  { %2735 = dma.done.wait [#allocation9], 32832  }
  0x7b   :  { %2736 = vsyncadd [#allocation9], 4294934464 }
  0x7c   :  { %2737 = dma.done.wait [#allocation12], 49248  }
  0x7d   :  { %2738 = vsyncadd [#allocation12], 4294918048  ;;  %v2752_v0 = vmov 0.0   ;;  %v116_v1 = vld [vmem:[#allocation5 + $0x8] sm:$0xff]  ;;  %v115_v3 = vld [vmem:[#allocation5] sm:$0xff]  ;;  %vm169_vm0 = vcmask 523264  }
  0x7e   :  { %237 = vmatprep.mubr.f32.mxu0 %v2752_v0  ;;  %308 = vmatprep.mubr.f32.mxu1 %v2752_v0  ;;  %v120_v2 = vld [vmem:[#allocation5 + $0x28] sm:$0xff]  ;;  %v119_v5 = vld [vmem:[#allocation5 + $0x20] sm:$0xff]  ;;  %v118_v6 = vld [vmem:[#allocation5 + $0x18] sm:$0xff]  ;;  %s2753_s6 = smov [#allocation14]  }
  0x7f   :  { %v1818_v4 = vpack.c.bf16 %v120_v2, %v116_v1  ;;  %v122_v7 = vld [vmem:[#allocation5 + $0x38] sm:$0xff]  ;;  %v1820_v8 = vpack.c.bf16 %v119_v5, %v115_v3  ;;  %v117_v10 = vld [vmem:[#allocation5 + $0x10] sm:$0xff]  ;;  %v124_v12 = vld [vmem:[#allocation5 + $0x48] sm:$0xff]  ;;  %s1796_s10 = sshll.u32 %s2753_s6, 4  ;;  %s1797_s10 = int_to_ptr.vmem [resolvable:$true] %s1796_s10 }
  0x80   :  { %v1834_v9 = vpack.c.bf16 %v122_v7, %v118_v6  ;;  %v121_v11 = vld [vmem:[#allocation5 + $0x30] sm:$0xff]  ;;  %v128_v14 = vld [vmem:[#allocation5 + $0x68] sm:$0xff]  ;;  %v123_v15 = vld [vmem:[#allocation5 + $0x40] sm:$0xff]  ;;  %s2709_s13 = scalar_lea.vmem %s1797_s10, 384  ;;  %p2714_p1 = scmp.lt.s32.totalorder %s1797_s10, %s1797_s10 }
  0x81   :  { %1819 = vmatprep.subr.bf16.mxu0 %v1818_v4  ;;  %v1836_v13 = vpack.c.bf16 %v121_v11, %v117_v10  ;;  %v127_v16 = vld [vmem:[#allocation5 + $0x60] sm:$0xff]  ;;  %v1822_v17 = vpack.c.bf16 %v128_v14, %v124_v12  ;;  %v126_v19 = vld [vmem:[#allocation5 + $0x58] sm:$0xff]  ;;  %v125_v21 = vld [vmem:[#allocation5 + $0x50] sm:$0xff]  ;;  %p2710_p0 = scmp.ne.s32.totalorder %s1797_s10, %s2709_s13  ;;  %p2715_p2 = scmp.lt.s32.totalorder %s2709_s13, %s2709_s13 }
  0x82   :  { %1821 = vmatpush1.bf16.msra.mxu0 %v1820_v8  ;;  %1835 = vmatprep.subr.bf16.mxu1 %v1834_v9  ;;  %v1824_v18 = vpack.c.bf16 %v127_v16, %v123_v15  ;;  %v130_v20 = vld [vmem:[#allocation5 + $0x78] sm:$0xff]  ;;  %v129_v23 = vld [vmem:[#allocation5 + $0x70] sm:$0xff]  ;;  %v132_v24 = vld [vmem:[#allocation5 + $0x88] sm:$0xff] }
  0x83   :  { %1837 = vmatpush1.bf16.msra.mxu1 %v1836_v13  ;;  %v1838_v22 = vpack.c.bf16 %v130_v20, %v126_v19  ;;  %v136_v25 = vld [vmem:[#allocation5 + $0xa8] sm:$0xff]  ;;  %1823 = vmatprep.subr.bf16.mxu0 %v1822_v17  ;;  %v1840_v26 = vpack.c.bf16 %v129_v23, %v125_v21  ;;  %v131_v28 = vld [vmem:[#allocation5 + $0x80] sm:$0xff]  ;;  %v134_v30 = vld [vmem:[#allocation5 + $0x98] sm:$0xff]  ;;  %p2716_p3 = por %p2715_p2, %p2714_p1 }
  0x84   :  { %v1826_v27 = vpack.c.bf16 %v136_v25, %v132_v24  ;;  %v135_v29 = vld [vmem:[#allocation5 + $0xa0] sm:$0xff]  ;;  %v138_v31 = vld [vmem:[#allocation5 + $0xb8] sm:$0xff]  ;;  %v133_v32 = vld [vmem:[#allocation5 + $0x90] sm:$0xff] }
  0x85   :  { %1839 = vmatprep.subr.bf16.mxu1 %v1838_v22  ;;  %v137_v33 = vld [vmem:[#allocation5 + $0xb0] sm:$0xff]  ;;  %v1828_v34 = vpack.c.bf16 %v135_v29, %v131_v28  ;;  %v1842_v35 = vpack.c.bf16 %v138_v31, %v134_v30  ;;  %v140_v36 = vld [vmem:[#allocation5 + $0xc8] sm:$0xff]  ;;  %v139_v38 = vld [vmem:[#allocation5 + $0xc0] sm:$0xff]  ;;  %p2717_p4 = pnand %p2716_p3, %p2710_p0 }
  0x86   :  { %1825 = vmatpush1.bf16.msra.mxu0 %v1824_v18  ;;  %v144_v37 = vld [vmem:[#allocation5 + $0xe8] sm:$0xff]  ;;  %v1844_v39 = vpack.c.bf16 %v137_v33, %v133_v32  ;;  %v143_v41 = vld [vmem:[#allocation5 + $0xe0] sm:$0xff]  ;;  %v142_v42 = vld [vmem:[#allocation5 + $0xd8] sm:$0xff] }
  0x87   :  { %1841 = vmatpush1.bf16.msra.mxu1 %v1840_v26  ;;  %1827 = vmatprep.subr.bf16.mxu0 %v1826_v27  ;;  %v1830_v40 = vpack.c.bf16 %v144_v37, %v140_v36  ;;  %v146_v43 = vld [vmem:[#allocation5 + $0xf8] sm:$0xff]  ;;  %v141_v45 = vld [vmem:[#allocation5 + $0xd0] sm:$0xff]  ;;  %v1832_v49 = vpack.c.bf16 %v143_v41, %v139_v38  ;;  %v343_v53 = vld [vmem:[#allocation8] sm:$0xff] }
  0x88   :  { %1843 = vmatprep.subr.bf16.mxu1 %v1842_v35  ;;  %v1846_v44 = vpack.c.bf16 %v146_v43, %v142_v42  ;;  %v145_v46 = vld [vmem:[#allocation5 + $0xf0] sm:$0xff]  ;;  %v471_v55 = vld [vmem:[#allocation8 + $0x400] sm:$0xff]  ;;  %v114_v63 = vld [vmem:[#allocation2] sm:$0xf] }
  0x89   :  { %v344_v47 = vld [vmem:[#allocation8 + $0x8] sm:$0xff]  ;;  %v1848_v52 = vpack.c.bf16 %v145_v46, %v141_v45  ;;  %v347_v57 = vld [vmem:[#allocation8 + $0x20] sm:$0xff] }
  0x8a   :  { %v348_v48 = vld [vmem:[#allocation8 + $0x28] sm:$0xff]  ;;  %1829 = vmatpush1.bf16.msra.mxu0 %v1828_v34  ;;  %v475_v59 = vld [vmem:[#allocation8 + $0x420] sm:$0xff]  ;;  %v1852_v1 = vpack.c.bf16 %v347_v57, %v343_v53 }
  0x8b   :  { %v472_v50 = vld [vmem:[#allocation8 + $0x408] sm:$0xff]  ;;  %1845 = vmatpush1.bf16.msra.mxu1 %v1844_v39  ;;  %1831 = vmatprep.subr.bf16.mxu0 %v1830_v40  ;;  %v1850_v56 = vpack.c.bf16 %v348_v48, %v344_v47  ;;  %v1916_v0 = vpack.c.bf16 %v475_v59, %v471_v55  ;;  %v351_v2 = vld [vmem:[#allocation8 + $0x40] sm:$0xff] }
  0x8c   :  { %v476_v51 = vld [vmem:[#allocation8 + $0x428] sm:$0xff]  ;;  %1847 = vmatprep.subr.bf16.mxu1 %v1846_v44  ;;  %v479_v4 = vld [vmem:[#allocation8 + $0x440] sm:$0xff] }
  0x8d   :  { %v1914_v54 = vpack.c.bf16 %v476_v51, %v472_v50  ;;  %v352_v58 = vld [vmem:[#allocation8 + $0x48] sm:$0xff]  ;;  %v483_v5 = vld [vmem:[#allocation8 + $0x460] sm:$0xff] }
  0x8e   :  { %v356_v60 = vld [vmem:[#allocation8 + $0x68] sm:$0xff]  ;;  %1833 = vmatpush1.bf16.msra.mxu0 %v1832_v49  ;;  %v355_v7 = vld [vmem:[#allocation8 + $0x60] sm:$0xff]  ;;  %v1920_v12 = vpack.c.bf16 %v483_v5, %v479_v4 }
  0x8f   :  { %v480_v61 = vld [vmem:[#allocation8 + $0x448] sm:$0xff]  ;;  %1849 = vmatpush1.bf16.msra.mxu1 %v1848_v52  ;;  %1915 = vmatprep.subr.bf16.mxu0 %v1914_v54  ;;  %v1854_v6 = vpack.c.bf16 %v356_v60, %v352_v58  ;;  %v1856_v13 = vpack.c.bf16 %v355_v7, %v351_v2  ;;  %v359_v14 = vld [vmem:[#allocation8 + $0x80] sm:$0xff] }
  0x90   :  { %v484_v62 = vld [vmem:[#allocation8 + $0x468] sm:$0xff]  ;;  %1851 = vmatprep.subr.bf16.mxu1 %v1850_v56  ;;  %v487_v16 = vld [vmem:[#allocation8 + $0x480] sm:$0xff] }
  0x91   :  { %v1918_v3 = vpack.c.bf16 %v484_v62, %v480_v61  ;;  %v488_v8 = vld [vmem:[#allocation8 + $0x488] sm:$0xff]  ;;  %1808 = vmatmul.mubr.msk.f32.vlgmr.msra.gmra.mrb[0].mxu0 %vm169_vm0, %v114_v63  ;;  %v491_v17 = vld [vmem:[#allocation8 + $0x4a0] sm:$0xff] }
  0x92   :  { %v492_v9 = vld [vmem:[#allocation8 + $0x4a8] sm:$0xff]  ;;  %1809 = vmatmul.mubr.msk.f32.vlgmr.msra.gmra.mrb[0].mxu1 %vm169_vm0, %v114_v63  ;;  %1917 = vmatpush1.bf16.msra.mxu0 %v1916_v0  ;;  %v363_v19 = vld [vmem:[#allocation8 + $0xa0] sm:$0xff]  ;;  %v1924_v24 = vpack.c.bf16 %v491_v17, %v487_v16 }
  0x93   :  { %v360_v10 = vld [vmem:[#allocation8 + $0x88] sm:$0xff]  ;;  %1853 = vmatpush1.bf16.msra.mxu1 %v1852_v1  ;;  %1919 = vmatprep.subr.bf16.mxu0 %v1918_v3  ;;  %v1922_v15 = vpack.c.bf16 %v492_v9, %v488_v8  ;;  %v1860_v25 = vpack.c.bf16 %v363_v19, %v359_v14  ;;  %v367_v26 = vld [vmem:[#allocation8 + $0xc0] sm:$0xff] }
  0x94   :  { %v364_v11 = vld [vmem:[#allocation8 + $0xa8] sm:$0xff]  ;;  %1855 = vmatprep.subr.bf16.mxu1 %v1854_v6  ;;  %v495_v28 = vld [vmem:[#allocation8 + $0x4c0] sm:$0xff] }
  0x95   :  { %v1858_v18 = vpack.c.bf16 %v364_v11, %v360_v10  ;;  %v496_v20 = vld [vmem:[#allocation8 + $0x4c8] sm:$0xff]  ;;  %v499_v29 = vld [vmem:[#allocation8 + $0x4e0] sm:$0xff] }
  0x96   :  { %v500_v21 = vld [vmem:[#allocation8 + $0x4e8] sm:$0xff]  ;;  %1921 = vmatpush1.bf16.msra.mxu0 %v1920_v12  ;;  %v371_v31 = vld [vmem:[#allocation8 + $0xe0] sm:$0xff]  ;;  %v1928_v36 = vpack.c.bf16 %v499_v29, %v495_v28 }
  0x97   :  { %v368_v22 = vld [vmem:[#allocation8 + $0xc8] sm:$0xff]  ;;  %1857 = vmatpush1.bf16.msra.mxu1 %v1856_v13  ;;  %1923 = vmatprep.subr.bf16.mxu0 %v1922_v15  ;;  %v1926_v27 = vpack.c.bf16 %v500_v21, %v496_v20  ;;  %v1864_v37 = vpack.c.bf16 %v371_v31, %v367_v26  ;;  %v375_v38 = vld [vmem:[#allocation8 + $0x100] sm:$0xff] }
  0x98   :  { %v372_v23 = vld [vmem:[#allocation8 + $0xe8] sm:$0xff]  ;;  %1859 = vmatprep.subr.bf16.mxu1 %v1858_v18  ;;  %v503_v40 = vld [vmem:[#allocation8 + $0x500] sm:$0xff] }
  0x99   :  { %v1862_v30 = vpack.c.bf16 %v372_v23, %v368_v22  ;;  %v504_v32 = vld [vmem:[#allocation8 + $0x508] sm:$0xff]  ;;  %v507_v41 = vld [vmem:[#allocation8 + $0x520] sm:$0xff] }
  0x9a   :  { %v508_v33 = vld [vmem:[#allocation8 + $0x528] sm:$0xff]  ;;  %1925 = vmatpush1.bf16.msra.mxu0 %v1924_v24  ;;  %v379_v43 = vld [vmem:[#allocation8 + $0x120] sm:$0xff]  ;;  %v1932_v48 = vpack.c.bf16 %v507_v41, %v503_v40 }
  0x9b   :  { %v376_v34 = vld [vmem:[#allocation8 + $0x108] sm:$0xff]  ;;  %1861 = vmatpush1.bf16.msra.mxu1 %v1860_v25  ;;  %1927 = vmatprep.subr.bf16.mxu0 %v1926_v27  ;;  %v1930_v39 = vpack.c.bf16 %v508_v33, %v504_v32  ;;  %v1868_v49 = vpack.c.bf16 %v379_v43, %v375_v38  ;;  %v383_v50 = vld [vmem:[#allocation8 + $0x140] sm:$0xff] }
  0x9c   :  { %v380_v35 = vld [vmem:[#allocation8 + $0x128] sm:$0xff]  ;;  %1863 = vmatprep.subr.bf16.mxu1 %v1862_v30  ;;  %v511_v52 = vld [vmem:[#allocation8 + $0x540] sm:$0xff] }
  0x9d   :  { %v1866_v42 = vpack.c.bf16 %v380_v35, %v376_v34  ;;  %v512_v44 = vld [vmem:[#allocation8 + $0x548] sm:$0xff]  ;;  %v515_v53 = vld [vmem:[#allocation8 + $0x560] sm:$0xff] }
  0x9e   :  { %v516_v45 = vld [vmem:[#allocation8 + $0x568] sm:$0xff]  ;;  %1929 = vmatpush1.bf16.msra.mxu0 %v1928_v36  ;;  %v387_v55 = vld [vmem:[#allocation8 + $0x160] sm:$0xff]  ;;  %v1936_v60 = vpack.c.bf16 %v515_v53, %v511_v52 }
  0x9f   :  { %v384_v46 = vld [vmem:[#allocation8 + $0x148] sm:$0xff]  ;;  %1865 = vmatpush1.bf16.msra.mxu1 %v1864_v37  ;;  %1931 = vmatprep.subr.bf16.mxu0 %v1930_v39  ;;  %v1934_v51 = vpack.c.bf16 %v516_v45, %v512_v44  ;;  %v1872_v61 = vpack.c.bf16 %v387_v55, %v383_v50  ;;  %v391_v62 = vld [vmem:[#allocation8 + $0x180] sm:$0xff] }
  0xa0   :  { %v388_v47 = vld [vmem:[#allocation8 + $0x168] sm:$0xff]  ;;  %1867 = vmatprep.subr.bf16.mxu1 %v1866_v42  ;;  %v519_v0 = vld [vmem:[#allocation8 + $0x580] sm:$0xff] }
  0xa1   :  { %v1870_v54 = vpack.c.bf16 %v388_v47, %v384_v46  ;;  %v520_v56 = vld [vmem:[#allocation8 + $0x588] sm:$0xff]  ;;  %v523_v1 = vld [vmem:[#allocation8 + $0x5a0] sm:$0xff] }
  0xa2   :  { %v524_v57 = vld [vmem:[#allocation8 + $0x5a8] sm:$0xff]  ;;  %1933 = vmatpush1.bf16.msra.mxu0 %v1932_v48  ;;  %v395_v3 = vld [vmem:[#allocation8 + $0x1a0] sm:$0xff]  ;;  %v1940_v8 = vpack.c.bf16 %v523_v1, %v519_v0 }
  0xa3   :  { %v392_v58 = vld [vmem:[#allocation8 + $0x188] sm:$0xff]  ;;  %1869 = vmatpush1.bf16.msra.mxu1 %v1868_v49  ;;  %1935 = vmatprep.subr.bf16.mxu0 %v1934_v51  ;;  %v1938_v63 = vpack.c.bf16 %v524_v57, %v520_v56  ;;  %v1876_v9 = vpack.c.bf16 %v395_v3, %v391_v62  ;;  %v399_v12 = vld [vmem:[#allocation8 + $0x1c0] sm:$0xff] }
  0xa4   :  { %v396_v59 = vld [vmem:[#allocation8 + $0x1a8] sm:$0xff]  ;;  %1871 = vmatprep.subr.bf16.mxu1 %v1870_v54  ;;  %v403_v13 = vld [vmem:[#allocation8 + $0x1e0] sm:$0xff] }
  0xa5   :  { %v1874_v2 = vpack.c.bf16 %v396_v59, %v392_v58  ;;  %v528_v4 = vld [vmem:[#allocation8 + $0x5c8] sm:$0xff]  ;;  %v1880_v14 = vpack.c.bf16 %v403_v13, %v399_v12  ;;  %v527_v17 = vld [vmem:[#allocation8 + $0x5c0] sm:$0xff] }
  0xa6   :  { %v532_v5 = vld [vmem:[#allocation8 + $0x5e8] sm:$0xff]  ;;  %1937 = vmatpush1.bf16.msra.mxu0 %v1936_v60  ;;  %v531_v19 = vld [vmem:[#allocation8 + $0x5e0] sm:$0xff] }
  0xa7   :  { %v400_v6 = vld [vmem:[#allocation8 + $0x1c8] sm:$0xff]  ;;  %1873 = vmatpush1.bf16.msra.mxu1 %v1872_v61  ;;  %1939 = vmatprep.subr.bf16.mxu0 %v1938_v63  ;;  %v1942_v10 = vpack.c.bf16 %v532_v5, %v528_v4  ;;  %v407_v20 = vld [vmem:[#allocation8 + $0x200] sm:$0xff]  ;;  %v1944_v22 = vpack.c.bf16 %v531_v19, %v527_v17 }
  0xa8   :  { %v404_v7 = vld [vmem:[#allocation8 + $0x1e8] sm:$0xff]  ;;  %1875 = vmatprep.subr.bf16.mxu1 %v1874_v2  ;;  %v411_v21 = vld [vmem:[#allocation8 + $0x220] sm:$0xff] }
  0xa9   :  { %v1878_v11 = vpack.c.bf16 %v404_v7, %v400_v6  ;;  %v408_v15 = vld [vmem:[#allocation8 + $0x208] sm:$0xff]  ;;  %v1884_v23 = vpack.c.bf16 %v411_v21, %v407_v20  ;;  %v535_v29 = vld [vmem:[#allocation8 + $0x600] sm:$0xff] }
  0xaa   :  { %1941 = vmatpush1.bf16.msra.mxu0 %v1940_v8  ;;  %v412_v16 = vld [vmem:[#allocation8 + $0x228] sm:$0xff]  ;;  %v539_v31 = vld [vmem:[#allocation8 + $0x620] sm:$0xff] }
  0xab   :  { %1877 = vmatpush1.bf16.msra.mxu1 %v1876_v9  ;;  %1943 = vmatprep.subr.bf16.mxu0 %v1942_v10  ;;  %v1882_v18 = vpack.c.bf16 %v412_v16, %v408_v15  ;;  %v536_v24 = vld [vmem:[#allocation8 + $0x608] sm:$0xff]  ;;  %v415_v32 = vld [vmem:[#allocation8 + $0x240] sm:$0xff]  ;;  %v1948_v34 = vpack.c.bf16 %v539_v31, %v535_v29 }
  0xac   :  { %1879 = vmatprep.subr.bf16.mxu1 %v1878_v11  ;;  %v540_v25 = vld [vmem:[#allocation8 + $0x628] sm:$0xff]  ;;  %v419_v33 = vld [vmem:[#allocation8 + $0x260] sm:$0xff] }
  0xad   :  { %v1946_v26 = vpack.c.bf16 %v540_v25, %v536_v24  ;;  %v416_v27 = vld [vmem:[#allocation8 + $0x248] sm:$0xff]  ;;  %v1888_v35 = vpack.c.bf16 %v419_v33, %v415_v32  ;;  %v543_v41 = vld [vmem:[#allocation8 + $0x640] sm:$0xff] }
  0xae   :  { %1945 = vmatpush1.bf16.msra.mxu0 %v1944_v22  ;;  %v420_v28 = vld [vmem:[#allocation8 + $0x268] sm:$0xff]  ;;  %v547_v43 = vld [vmem:[#allocation8 + $0x660] sm:$0xff] }
  0xaf   :  { %1881 = vmatpush1.bf16.msra.mxu1 %v1880_v14  ;;  %v1886_v30 = vpack.c.bf16 %v420_v28, %v416_v27  ;;  %1947 = vmatprep.subr.bf16.mxu0 %v1946_v26  ;;  %v544_v36 = vld [vmem:[#allocation8 + $0x648] sm:$0xff]  ;;  %v423_v44 = vld [vmem:[#allocation8 + $0x280] sm:$0xff]  ;;  %v1952_v46 = vpack.c.bf16 %v547_v43, %v543_v41 }
  0xb0   :  { %1883 = vmatprep.subr.bf16.mxu1 %v1882_v18  ;;  %v548_v37 = vld [vmem:[#allocation8 + $0x668] sm:$0xff]  ;;  %v427_v45 = vld [vmem:[#allocation8 + $0x2a0] sm:$0xff] }
  0xb1   :  { %v1950_v38 = vpack.c.bf16 %v548_v37, %v544_v36  ;;  %v424_v39 = vld [vmem:[#allocation8 + $0x288] sm:$0xff]  ;;  %v1892_v47 = vpack.c.bf16 %v427_v45, %v423_v44  ;;  %v551_v53 = vld [vmem:[#allocation8 + $0x680] sm:$0xff] }
  0xb2   :  { %1949 = vmatpush1.bf16.msra.mxu0 %v1948_v34  ;;  %v428_v40 = vld [vmem:[#allocation8 + $0x2a8] sm:$0xff]  ;;  %v555_v55 = vld [vmem:[#allocation8 + $0x6a0] sm:$0xff] }
  0xb3   :  { %1885 = vmatpush1.bf16.msra.mxu1 %v1884_v23  ;;  %v1890_v42 = vpack.c.bf16 %v428_v40, %v424_v39  ;;  %1951 = vmatprep.subr.bf16.mxu0 %v1950_v38  ;;  %v552_v48 = vld [vmem:[#allocation8 + $0x688] sm:$0xff]  ;;  %v431_v56 = vld [vmem:[#allocation8 + $0x2c0] sm:$0xff]  ;;  %v1956_v58 = vpack.c.bf16 %v555_v55, %v551_v53  ;;  %v149_v53 = vlaneseq }
  0xb4   :  { %1887 = vmatprep.subr.bf16.mxu1 %v1886_v30  ;;  %v556_v49 = vld [vmem:[#allocation8 + $0x6a8] sm:$0xff]  ;;  %v435_v57 = vld [vmem:[#allocation8 + $0x2e0] sm:$0xff] }
  0xb5   :  { %v1954_v50 = vpack.c.bf16 %v556_v49, %v552_v48  ;;  %v432_v51 = vld [vmem:[#allocation8 + $0x2c8] sm:$0xff]  ;;  %v1896_v59 = vpack.c.bf16 %v435_v57, %v431_v56  ;;  %v559_v1 = vld [vmem:[#allocation8 + $0x6c0] sm:$0xff]  ;;  %v346_v49 = vld [vmem:[#allocation8 + $0x18] sm:$0xff] }
  0xb6   :  { %1953 = vmatpush1.bf16.msra.mxu0 %v1952_v46  ;;  %v436_v52 = vld [vmem:[#allocation8 + $0x2e8] sm:$0xff]  ;;  %v563_v3 = vld [vmem:[#allocation8 + $0x6e0] sm:$0xff]  ;;  %v147_v56 = vld [vmem:[#allocation7] sm:$0xf] }
  0xb7   :  { %1889 = vmatpush1.bf16.msra.mxu1 %v1888_v35  ;;  %v1894_v54 = vpack.c.bf16 %v436_v52, %v432_v51  ;;  %1955 = vmatprep.subr.bf16.mxu0 %v1954_v50  ;;  %v560_v60 = vld [vmem:[#allocation8 + $0x6c8] sm:$0xff]  ;;  %v439_v4 = vld [vmem:[#allocation8 + $0x300] sm:$0xff]  ;;  %v1960_v6 = vpack.c.bf16 %v563_v3, %v559_v1  ;;  %v350_v51 = vld [vmem:[#allocation8 + $0x38] sm:$0xff] }
  0xb8   :  { %1891 = vmatprep.subr.bf16.mxu1 %v1890_v42  ;;  %v564_v61 = vld [vmem:[#allocation8 + $0x6e8] sm:$0xff]  ;;  %v443_v5 = vld [vmem:[#allocation8 + $0x320] sm:$0xff]  ;;  %v1978_v52 = vpack.c.bf16 %v350_v51, %v346_v49  ;;  %v370_v49 = vld [vmem:[#allocation8 + $0xd8] sm:$0xff] }
  0xb9   :  { %v1958_v62 = vpack.c.bf16 %v564_v61, %v560_v60  ;;  %v440_v63 = vld [vmem:[#allocation8 + $0x308] sm:$0xff]  ;;  %v1900_v7 = vpack.c.bf16 %v443_v5, %v439_v4  ;;  %v567_v13 = vld [vmem:[#allocation8 + $0x700] sm:$0xff] }
  0xba   :  { %1957 = vmatpush1.bf16.msra.mxu0 %v1956_v58  ;;  %v444_v0 = vld [vmem:[#allocation8 + $0x328] sm:$0xff]  ;;  %v571_v15 = vld [vmem:[#allocation8 + $0x720] sm:$0xff] }
  0xbb   :  { %1893 = vmatpush1.bf16.msra.mxu1 %v1892_v47  ;;  %v1898_v2 = vpack.c.bf16 %v444_v0, %v440_v63  ;;  %1959 = vmatprep.subr.bf16.mxu0 %v1958_v62  ;;  %v568_v8 = vld [vmem:[#allocation8 + $0x708] sm:$0xff]  ;;  %v447_v16 = vld [vmem:[#allocation8 + $0x340] sm:$0xff]  ;;  %v1964_v18 = vpack.c.bf16 %v571_v15, %v567_v13 }
  0xbc   :  { %1895 = vmatprep.subr.bf16.mxu1 %v1894_v54  ;;  %v572_v9 = vld [vmem:[#allocation8 + $0x728] sm:$0xff]  ;;  %v451_v17 = vld [vmem:[#allocation8 + $0x360] sm:$0xff]  ;;  %v2880_v54 = vshrl.u32 %v149_v53, 7 }
  0xbd   :  { %v1962_v10 = vpack.c.bf16 %v572_v9, %v568_v8  ;;  %v448_v11 = vld [vmem:[#allocation8 + $0x348] sm:$0xff]  ;;  %v1904_v19 = vpack.c.bf16 %v451_v17, %v447_v16  ;;  %v575_v25 = vld [vmem:[#allocation8 + $0x740] sm:$0xff] }
  0xbe   :  { %1961 = vmatpush1.bf16.msra.mxu0 %v1960_v6  ;;  %v452_v12 = vld [vmem:[#allocation8 + $0x368] sm:$0xff]  ;;  %v579_v27 = vld [vmem:[#allocation8 + $0x760] sm:$0xff]  ;;  %v2883_v55 = vsub.s32 0, %v2880_v54  ;;  %v2886_v57 = vsub.s32 1, %v2880_v54  ;;  %v2889_v58 = vsub.s32 2, %v2880_v54 }
  0xbf   :  { %1897 = vmatpush1.bf16.msra.mxu1 %v1896_v59  ;;  %v1902_v14 = vpack.c.bf16 %v452_v12, %v448_v11  ;;  %1963 = vmatprep.subr.bf16.mxu0 %v1962_v10  ;;  %v576_v20 = vld [vmem:[#allocation8 + $0x748] sm:$0xff]  ;;  %v455_v28 = vld [vmem:[#allocation8 + $0x380] sm:$0xff]  ;;  %v1968_v30 = vpack.c.bf16 %v579_v27, %v575_v25  ;;  %v2892_v59 = vsub.s32 3, %v2880_v54  ;;  %v358_v25 = vld [vmem:[#allocation8 + $0x78] sm:$0xff] }
  0xc0   :  { %1899 = vmatprep.subr.bf16.mxu1 %v1898_v2  ;;  %v580_v21 = vld [vmem:[#allocation8 + $0x768] sm:$0xff]  ;;  %v459_v29 = vld [vmem:[#allocation8 + $0x3a0] sm:$0xff]  ;;  %v152_v60 = vrot.slane %v147_v56, %v2883_v55  ;;  %v156_v61 = vrot.slane %v147_v56, %v2886_v57  ;;  %v160_v62 = vrot.slane %v147_v56, %v2889_v58 }
  0xc1   :  { %v1966_v22 = vpack.c.bf16 %v580_v21, %v576_v20  ;;  %v456_v23 = vld [vmem:[#allocation8 + $0x388] sm:$0xff]  ;;  %v1908_v31 = vpack.c.bf16 %v459_v29, %v455_v28  ;;  %v583_v37 = vld [vmem:[#allocation8 + $0x780] sm:$0xff]  ;;  %v164_v63 = vrot.slane %v147_v56, %v2892_v59  ;;  %v345_v20 = vld [vmem:[#allocation8 + $0x10] sm:$0xff] }
  0xc2   :  { %1965 = vmatpush1.bf16.msra.mxu0 %v1964_v18  ;;  %v460_v24 = vld [vmem:[#allocation8 + $0x3a8] sm:$0xff]  ;;  %v587_v39 = vld [vmem:[#allocation8 + $0x7a0] sm:$0xff]  ;;  %v349_v21 = vld [vmem:[#allocation8 + $0x30] sm:$0xff] }
  0xc3   :  { %1901 = vmatpush1.bf16.msra.mxu1 %v1900_v7  ;;  %v1906_v26 = vpack.c.bf16 %v460_v24, %v456_v23  ;;  %1967 = vmatprep.subr.bf16.mxu0 %v1966_v22  ;;  %v584_v32 = vld [vmem:[#allocation8 + $0x788] sm:$0xff]  ;;  %v463_v40 = vld [vmem:[#allocation8 + $0x3c0] sm:$0xff]  ;;  %v1972_v42 = vpack.c.bf16 %v587_v39, %v583_v37  ;;  %v354_v24 = vld [vmem:[#allocation8 + $0x58] sm:$0xff]  ;;  %v1980_v28 = vpack.c.bf16 %v349_v21, %v345_v20 }
  0xc4   :  { %1903 = vmatprep.subr.bf16.mxu1 %v1902_v14  ;;  %v588_v33 = vld [vmem:[#allocation8 + $0x7a8] sm:$0xff]  ;;  %v467_v41 = vld [vmem:[#allocation8 + $0x3e0] sm:$0xff]  ;;  %v366_v37 = vld [vmem:[#allocation8 + $0xb8] sm:$0xff] }
  0xc5   :  { %v1970_v34 = vpack.c.bf16 %v588_v33, %v584_v32  ;;  %v464_v35 = vld [vmem:[#allocation8 + $0x3c8] sm:$0xff]  ;;  %v1912_v43 = vpack.c.bf16 %v467_v41, %v463_v40  ;;  %v591_v47 = vld [vmem:[#allocation8 + $0x7c0] sm:$0xff]  ;;  %v353_v32 = vld [vmem:[#allocation8 + $0x50] sm:$0xff] }
  0xc6   :  { %1969 = vmatpush1.bf16.msra.mxu0 %v1968_v30  ;;  %v468_v36 = vld [vmem:[#allocation8 + $0x3e8] sm:$0xff]  ;;  %v595_v48 = vld [vmem:[#allocation8 + $0x7e0] sm:$0xff]  ;;  %v357_v33 = vld [vmem:[#allocation8 + $0x70] sm:$0xff] }
  0xc7   :  { %1905 = vmatpush1.bf16.msra.mxu1 %v1904_v19  ;;  %v1910_v38 = vpack.c.bf16 %v468_v36, %v464_v35  ;;  %1971 = vmatprep.subr.bf16.mxu0 %v1970_v34  ;;  %v592_v44 = vld [vmem:[#allocation8 + $0x7c8] sm:$0xff]  ;;  %v1976_v50 = vpack.c.bf16 %v595_v48, %v591_v47  ;;  %v1982_v35 = vpack.c.bf16 %v358_v25, %v354_v24  ;;  %v362_v36 = vld [vmem:[#allocation8 + $0x98] sm:$0xff] }
  0xc8   :  { %1907 = vmatprep.subr.bf16.mxu1 %v1906_v26  ;;  %v596_v45 = vld [vmem:[#allocation8 + $0x7e8] sm:$0xff]  ;;  %v940_v39 = vld [vmem:[#allocation11 + $0x38] sm:$0xff]  ;;  %v1984_v40 = vpack.c.bf16 %v357_v33, %v353_v32  ;;  %v951_v56 = vld [vmem:[#allocation11 + $0x90] sm:$0xff] }
  0xc9   :  { %v1974_v46 = vpack.c.bf16 %v596_v45, %v592_v44  ;;  %v1986_v44 = vpack.c.bf16 %v366_v37, %v362_v36  ;;  %v361_v45 = vld [vmem:[#allocation8 + $0x90] sm:$0xff]  ;;  %v952_v51 = vld [vmem:[#allocation11 + $0x98] sm:$0xff]  ;;  %v945_v53 = vld [vmem:[#allocation11 + $0x60] sm:$0xff] }
  0xca   :  { %1973 = vmatpush1.bf16.msra.mxu0 %v1972_v42  ;;  %v933_v42 = vld [vmem:[#allocation11] sm:$0xff]  ;;  %v946_v48 = vld [vmem:[#allocation11 + $0x68] sm:$0xff]  ;;  %v988_v24 = vld [vmem:[#allocation11 + $0x1b8] sm:$0xff] }
  0xcb   :  { %1909 = vmatpush1.bf16.msra.mxu1 %v1908_v31  ;;  %1975 = vmatprep.subr.bf16.mxu0 %v1974_v46  ;;  %v365_v46 = vld [vmem:[#allocation8 + $0xb0] sm:$0xff]  ;;  %v394_v32 = vld [vmem:[#allocation8 + $0x198] sm:$0xff] }
  0xcc   :  { %1911 = vmatprep.subr.bf16.mxu1 %v1910_v38  ;;  %v934_v38 = vld [vmem:[#allocation11 + $0x8] sm:$0xff]  ;;  %v398_v33 = vld [vmem:[#allocation8 + $0x1b8] sm:$0xff] }
  0xcd   :  { %v2106_v41 = vpack.c.bf16 %v940_v39, %v934_v38  ;;  %v393_v37 = vld [vmem:[#allocation8 + $0x190] sm:$0xff]  ;;  %v1000_v39 = vld [vmem:[#allocation11 + $0x218] sm:$0xff] }
  0xce   :  { %1977 = vmatpush1.bf16.msra.mxu0 %v1976_v50  ;;  %v374_v50 = vld [vmem:[#allocation8 + $0xf8] sm:$0xff]  ;;  %v994_v38 = vld [vmem:[#allocation11 + $0x1e8] sm:$0xff] }
  0xcf   :  { %1913 = vmatpush1.bf16.msra.mxu1 %v1912_v43  ;;  %v939_v43 = vld [vmem:[#allocation11 + $0x30] sm:$0xff]  ;;  %2107 = vmatprep.subr.bf16.mxu0 %v2106_v41 }
  0xd0   :  { %1979 = vmatprep.subr.bf16.mxu1 %v1978_v52  ;;  %v2108_v47 = vpack.c.bf16 %v939_v43, %v933_v42  ;;  %v2110_v52 = vpack.c.bf16 %v952_v51, %v946_v48  ;;  %v397_v41 = vld [vmem:[#allocation8 + $0x1b0] sm:$0xff]  ;;  %v2126_v42 = vpack.c.bf16 %v1000_v39, %v994_v38  ;;  %v993_v43 = vld [vmem:[#allocation11 + $0x1e0] sm:$0xff]  ;;  %v1012_v51 = vld [vmem:[#allocation11 + $0x278] sm:$0xff] }
  0xd1   :  { %v2004_v48 = vpack.c.bf16 %v397_v41, %v393_v37  ;;  %v449_v39 = vld [vmem:[#allocation8 + $0x350] sm:$0xff]  ;;  %v458_v41 = vld [vmem:[#allocation8 + $0x398] sm:$0xff] }
 0x164   :  { %v239_v0 = vpop.f32.mrb[0].mxu0 }
 0x165   :  { %v240_v1 = vadd.f32 %v239_v0, %v152_v60  ;;  %v241_v2 = vpop.f32.mrb[1].mxu0  ;;  %v310_v3 = vpop.f32.mrb[0].mxu1  ;;  %v1988_v60 = vpack.c.bf16 %v365_v46, %v361_v45  ;;  %v1990_v0 = vpack.c.bf16 %v374_v50, %v370_v49  ;;  %v402_v45 = vld [vmem:[#allocation8 + $0x1d8] sm:$0xff]  ;;  %v401_v49 = vld [vmem:[#allocation8 + $0x1d0] sm:$0xff] }
 0x166   :  { %v242_v4 = vadd.f32 %v241_v2, %v156_v61  ;;  %v311_v5 = vadd.f32 %v310_v3, %v160_v62  ;;  %v312_v6 = vpop.f32.mrb[1].mxu1  ;;  %v2112_v61 = vpack.c.bf16 %v951_v56, %v945_v53  ;;  %v958_v62 = vld [vmem:[#allocation11 + $0xc8] sm:$0xff]  ;;  %v406_v46 = vld [vmem:[#allocation8 + $0x1f8] sm:$0xff] }
 0x167   :  { %v1810_v7 = vmul.f32 -1.442695, %v240_v1  ;;  %v313_v8 = vadd.f32 %v312_v6, %v164_v63  ;;  %v964_v63 = vld [vmem:[#allocation11 + $0xf8] sm:$0xff]  ;;  %v373_v2 = vld [vmem:[#allocation8 + $0xf0] sm:$0xff] }
 0x168   :  { %v1811_v9 = vmul.f32 -1.442695, %v242_v4  ;;  %v1812_v10 = vmul.f32 -1.442695, %v311_v5  ;;  %v2114_v3 = vpack.c.bf16 %v964_v63, %v958_v62  ;;  %v382_v6 = vld [vmem:[#allocation8 + $0x138] sm:$0xff]  ;;  %v1006_v50 = vld [vmem:[#allocation11 + $0x248] sm:$0xff] }
 0x169   :  { %2523 = vpow2.f32 %v1810_v7  ;;  %v1813_v11 = vmul.f32 -1.442695, %v313_v8  ;;  %v963_v7 = vld [vmem:[#allocation11 + $0xf0] sm:$0xff]  ;;  %v2130_v56 = vpack.c.bf16 %v1012_v51, %v1006_v50 }
 0x16a   :  { %2525 = vpow2.f32 %v1811_v9  ;;  %v405_v53 = vld [vmem:[#allocation8 + $0x1f0] sm:$0xff]  ;;  %v410_v62 = vld [vmem:[#allocation8 + $0x218] sm:$0xff] }
 0x16b   :  { %2527 = vpow2.f32 %v1812_v10  ;;  %v377_v10 = vld [vmem:[#allocation8 + $0x110] sm:$0xff]  ;;  %v414_v63 = vld [vmem:[#allocation8 + $0x238] sm:$0xff] }
 0x16c   :  { %2529 = vpow2.f32 %v1813_v11  ;;  %v970_v11 = vld [vmem:[#allocation11 + $0x128] sm:$0xff] }
 0x16d   :  { %v465_v51 = vld [vmem:[#allocation8 + $0x3d0] sm:$0xff] }
 0x173   :  { %v2524_v12 = vpop.eup %2523 }
 0x174   :  { %v2526_v13 = vpop.eup %2525  ;;  %v327_v14 = vadd.f32 1.0, %v2524_v12  ;;  %v976_v12 = vld [vmem:[#allocation11 + $0x158] sm:$0xff] }
 0x175   :  { %v2528_v15 = vpop.eup %2527  ;;  %v328_v16 = vadd.f32 1.0, %v2526_v13 }
 0x176   :  { %v2530_v17 = vpop.eup %2529  ;;  %2531 = vrcp.f32 %v327_v14  ;;  %v329_v18 = vadd.f32 1.0, %v2528_v15  ;;  %v381_v14 = vld [vmem:[#allocation8 + $0x130] sm:$0xff]  ;;  %v2118_v15 = vpack.c.bf16 %v976_v12, %v970_v11 }
 0x177   :  { %2533 = vrcp.f32 %v328_v16  ;;  %v330_v19 = vadd.f32 1.0, %v2530_v17  ;;  %v969_v16 = vld [vmem:[#allocation11 + $0x120] sm:$0xff]  ;;  %v975_v17 = vld [vmem:[#allocation11 + $0x150] sm:$0xff]  ;;  %v1996_v21 = vpack.c.bf16 %v381_v14, %v377_v10 }
 0x178   :  { %2535 = vrcp.f32 %v329_v18  ;;  %v386_v18 = vld [vmem:[#allocation8 + $0x158] sm:$0xff]  ;;  %v2120_v20 = vpack.c.bf16 %v975_v17, %v969_v16  ;;  %v417_v12 = vld [vmem:[#allocation8 + $0x250] sm:$0xff] }
 0x179   :  { %2537 = vrcp.f32 %v330_v19  ;;  %v390_v19 = vld [vmem:[#allocation8 + $0x178] sm:$0xff] }
 0x17a   :  { %v1998_v25 = vpack.c.bf16 %v390_v19, %v386_v18  ;;  %v426_v14 = vld [vmem:[#allocation8 + $0x298] sm:$0xff]  ;;  %v425_v18 = vld [vmem:[#allocation8 + $0x290] sm:$0xff] }
 0x17b   :  { %v429_v19 = vld [vmem:[#allocation8 + $0x2b0] sm:$0xff] }
 0x180   :  { %v2532_v22 = vpop.eup %2531 }
 0x181   :  { %v2534_v23 = vpop.eup %2533  ;;  %v2898_v30 = vmul.f32 %v2532_v22, %v240_v1  ;;  %v369_v1 = vld [vmem:[#allocation8 + $0xd0] sm:$0xff] }
 0x182   :  { %v2536_v26 = vpop.eup %2535  ;;  %v340_v27 = vmul.f32 %v2534_v23, %v242_v4  ;;  %v957_v4 = vld [vmem:[#allocation11 + $0xc0] sm:$0xff]  ;;  %v1992_v9 = vpack.c.bf16 %v373_v2, %v369_v1  ;;  %v385_v22 = vld [vmem:[#allocation8 + $0x150] sm:$0xff]  ;;  %v2008_v1 = vpack.c.bf16 %v405_v53, %v401_v49  ;;  %v474_v53 = vld [vmem:[#allocation8 + $0x418] sm:$0xff] }
 0x183   :  { %v2538_v29 = vpop.eup %2537  ;;  %v2900_v31 = vmul.f32 %v2536_v26, %v311_v5  ;;  %v378_v5 = vld [vmem:[#allocation8 + $0x118] sm:$0xff]  ;;  %v982_v23 = vld [vmem:[#allocation11 + $0x188] sm:$0xff] }
 0x184   :  { %v2902_v34 = vmul.f32 %v2538_v29, %v313_v8  ;;  %685 = vmatprep.mubr.f32.mxu1 %v340_v27  ;;  %v2116_v8 = vpack.c.bf16 %v963_v7, %v957_v4  ;;  %v1994_v13 = vpack.c.bf16 %v382_v6, %v378_v5  ;;  %v389_v26 = vld [vmem:[#allocation8 + $0x170] sm:$0xff]  ;;  %v2010_v4 = vpack.c.bf16 %v414_v63, %v410_v62 }
 0x185   :  { %686 = vmatmul.mubr.f32.vlgmr.msra.gmra.mrb[2].mxu1 %v2898_v30  ;;  %v987_v29 = vld [vmem:[#allocation11 + $0x1b0] sm:$0xff]  ;;  %v2000_v36 = vpack.c.bf16 %v389_v26, %v385_v22  ;;  %v1018_v2 = vld [vmem:[#allocation11 + $0x2a8] sm:$0xff]  ;;  %v2020_v22 = vpack.c.bf16 %v429_v19, %v425_v18 }
 0x186   :  { %1981 = vmatpush1.bf16.msra.mxu1 %v1980_v28  ;;  %756 = vmatprep.mubr.f32.mxu0 %v2902_v34  ;;  %v981_v28 = vld [vmem:[#allocation11 + $0x180] sm:$0xff]  ;;  %v409_v5 = vld [vmem:[#allocation8 + $0x210] sm:$0xff]  ;;  %v442_v26 = vld [vmem:[#allocation8 + $0x318] sm:$0xff] }
 0x187   :  { %827 = vmatprep.mubr.f32.mxu1 %v340_v27  ;;  %757 = vmatmul.mubr.f32.vlgmr.msra.gmra.mrb[2].mxu0 %v2900_v31  ;;  %v2122_v27 = vpack.c.bf16 %v988_v24, %v982_v23  ;;  %v413_v6 = vld [vmem:[#allocation8 + $0x230] sm:$0xff]  ;;  %v506_v18 = vld [vmem:[#allocation8 + $0x518] sm:$0xff] }
 0x188   :  { %1983 = vmatprep.subr.bf16.mxu1 %v1982_v35  ;;  %2109 = vmatpush1.bf16.msra.mxu0 %v2108_v47  ;;  %v2124_v35 = vpack.c.bf16 %v987_v29, %v981_v28  ;;  %v2012_v10 = vpack.c.bf16 %v413_v6, %v409_v5  ;;  %v433_v24 = vld [vmem:[#allocation8 + $0x2d0] sm:$0xff]  ;;  %v490_v6 = vld [vmem:[#allocation8 + $0x498] sm:$0xff] }
 0x189   :  { %2111 = vmatprep.subr.bf16.mxu0 %v2110_v52  ;;  %v2006_v52 = vpack.c.bf16 %v406_v46, %v402_v45  ;;  %v457_v45 = vld [vmem:[#allocation8 + $0x390] sm:$0xff]  ;;  %v510_v19 = vld [vmem:[#allocation8 + $0x538] sm:$0xff] }
 0x18a   :  { %1985 = vmatpush1.bf16.msra.mxu1 %v1984_v40  ;;  %v2002_v40 = vpack.c.bf16 %v398_v33, %v394_v32  ;;  %v441_v32 = vld [vmem:[#allocation8 + $0x310] sm:$0xff] }
 0x18b   :  { %1987 = vmatprep.subr.bf16.mxu1 %v1986_v44  ;;  %v999_v44 = vld [vmem:[#allocation11 + $0x210] sm:$0xff] }
 0x18c   :  { %2113 = vmatpush1.bf16.msra.mxu0 %v2112_v61  ;;  %v2128_v47 = vpack.c.bf16 %v999_v44, %v993_v43  ;;  %v1011_v61 = vld [vmem:[#allocation11 + $0x270] sm:$0xff] }
 0x18d   :  { %2115 = vmatprep.subr.bf16.mxu0 %v2114_v3  ;;  %v1024_v3 = vld [vmem:[#allocation11 + $0x2d8] sm:$0xff]  ;;  %v445_v33 = vld [vmem:[#allocation8 + $0x330] sm:$0xff] }
 0x18e   :  { %1989 = vmatpush1.bf16.msra.mxu1 %v1988_v60  ;;  %v1005_v60 = vld [vmem:[#allocation11 + $0x240] sm:$0xff]  ;;  %v2134_v7 = vpack.c.bf16 %v1024_v3, %v1018_v2  ;;  %v2028_v37 = vpack.c.bf16 %v445_v33, %v441_v32  ;;  %v461_v46 = vld [vmem:[#allocation8 + $0x3b0] sm:$0xff] }
 0x18f   :  { %1991 = vmatprep.subr.bf16.mxu1 %v1990_v0  ;;  %v2132_v0 = vpack.c.bf16 %v1011_v61, %v1005_v60  ;;  %v2036_v49 = vpack.c.bf16 %v461_v46, %v457_v45  ;;  %v473_v62 = vld [vmem:[#allocation8 + $0x410] sm:$0xff]  ;;  %v1017_v33 = vld [vmem:[#allocation11 + $0x2a0] sm:$0xff] }
 0x190   :  { %2117 = vmatpush1.bf16.msra.mxu0 %v2116_v8  ;;  %v418_v8 = vld [vmem:[#allocation8 + $0x258] sm:$0xff]  ;;  %v477_v63 = vld [vmem:[#allocation8 + $0x430] sm:$0xff]  ;;  %v1029_v46 = vld [vmem:[#allocation11 + $0x300] sm:$0xff] }
 0x191   :  { %2119 = vmatprep.subr.bf16.mxu0 %v2118_v15  ;;  %v430_v15 = vld [vmem:[#allocation8 + $0x2b8] sm:$0xff]  ;;  %v2044_v2 = vpack.c.bf16 %v477_v63, %v473_v62  ;;  %v485_v5 = vld [vmem:[#allocation8 + $0x470] sm:$0xff]  ;;  %v1041_v63 = vld [vmem:[#allocation11 + $0x360] sm:$0xff] }
 0x192   :  { %1993 = vmatpush1.bf16.msra.mxu1 %v1992_v9  ;;  %v422_v9 = vld [vmem:[#allocation8 + $0x278] sm:$0xff]  ;;  %v2018_v17 = vpack.c.bf16 %v430_v15, %v426_v14 }
 0x193   :  { %1995 = vmatprep.subr.bf16.mxu1 %v1994_v13  ;;  %v2014_v11 = vpack.c.bf16 %v422_v9, %v418_v8  ;;  %v421_v13 = vld [vmem:[#allocation8 + $0x270] sm:$0xff] }
 0x194   :  { %2121 = vmatpush1.bf16.msra.mxu0 %v2120_v20  ;;  %v2016_v16 = vpack.c.bf16 %v421_v13, %v417_v12  ;;  %v434_v20 = vld [vmem:[#allocation8 + $0x2d8] sm:$0xff] }
 0x195   :  { %2123 = vmatprep.subr.bf16.mxu0 %v2122_v27  ;;  %v446_v27 = vld [vmem:[#allocation8 + $0x338] sm:$0xff] }
 0x196   :  { %1997 = vmatpush1.bf16.msra.mxu1 %v1996_v21  ;;  %v438_v21 = vld [vmem:[#allocation8 + $0x2f8] sm:$0xff]  ;;  %v2026_v29 = vpack.c.bf16 %v446_v27, %v442_v26  ;;  %v513_v26 = vld [vmem:[#allocation8 + $0x550] sm:$0xff] }
 0x197   :  { %1999 = vmatprep.subr.bf16.mxu1 %v1998_v25  ;;  %v2022_v23 = vpack.c.bf16 %v438_v21, %v434_v20  ;;  %v437_v25 = vld [vmem:[#allocation8 + $0x2f0] sm:$0xff]  ;;  %v498_v12 = vld [vmem:[#allocation8 + $0x4d8] sm:$0xff]  ;;  %v2058_v20 = vpack.c.bf16 %v510_v19, %v506_v18 }
 0x198   :  { %2125 = vmatpush1.bf16.msra.mxu0 %v2124_v35  ;;  %v2024_v28 = vpack.c.bf16 %v437_v25, %v433_v24  ;;  %v450_v35 = vld [vmem:[#allocation8 + $0x358] sm:$0xff]  ;;  %v509_v21 = vld [vmem:[#allocation8 + $0x530] sm:$0xff] }
 0x199   :  { %2127 = vmatprep.subr.bf16.mxu0 %v2126_v42  ;;  %v462_v42 = vld [vmem:[#allocation8 + $0x3b8] sm:$0xff]  ;;  %v517_v27 = vld [vmem:[#allocation8 + $0x570] sm:$0xff] }
 0x19a   :  { %2001 = vmatpush1.bf16.msra.mxu1 %v2000_v36  ;;  %v454_v36 = vld [vmem:[#allocation8 + $0x378] sm:$0xff]  ;;  %v2034_v44 = vpack.c.bf16 %v462_v42, %v458_v41  ;;  %v2064_v32 = vpack.c.bf16 %v517_v27, %v513_v26  ;;  %v1030_v42 = vld [vmem:[#allocation11 + $0x308] sm:$0xff] }
 0x19b   :  { %2003 = vmatprep.subr.bf16.mxu1 %v2002_v40  ;;  %v2030_v38 = vpack.c.bf16 %v454_v36, %v450_v35  ;;  %v453_v40 = vld [vmem:[#allocation8 + $0x370] sm:$0xff]  ;;  %v502_v13 = vld [vmem:[#allocation8 + $0x4f8] sm:$0xff] }
 0x19c   :  { %2129 = vmatpush1.bf16.msra.mxu0 %v2128_v47  ;;  %v2032_v43 = vpack.c.bf16 %v453_v40, %v449_v39  ;;  %v466_v47 = vld [vmem:[#allocation8 + $0x3d8] sm:$0xff]  ;;  %v2054_v15 = vpack.c.bf16 %v502_v13, %v498_v12  ;;  %v1066_v19 = vld [vmem:[#allocation11 + $0x428] sm:$0xff] }
 0x19d   :  { %2131 = vmatprep.subr.bf16.mxu0 %v2130_v56  ;;  %v478_v56 = vld [vmem:[#allocation8 + $0x438] sm:$0xff] }
 0x19e   :  { %2005 = vmatpush1.bf16.msra.mxu1 %v2004_v48  ;;  %v470_v48 = vld [vmem:[#allocation8 + $0x3f8] sm:$0xff]  ;;  %v2042_v61 = vpack.c.bf16 %v478_v56, %v474_v53  ;;  %v1042_v56 = vld [vmem:[#allocation11 + $0x368] sm:$0xff] }
 0x19f   :  { %2007 = vmatprep.subr.bf16.mxu1 %v2006_v52  ;;  %v2038_v50 = vpack.c.bf16 %v470_v48, %v466_v47  ;;  %v469_v52 = vld [vmem:[#allocation8 + $0x3f0] sm:$0xff]  ;;  %v530_v40 = vld [vmem:[#allocation8 + $0x5d8] sm:$0xff] }
 0x1a0   :  { %2133 = vmatpush1.bf16.msra.mxu0 %v2132_v0  ;;  %v2040_v60 = vpack.c.bf16 %v469_v52, %v465_v51  ;;  %v482_v0 = vld [vmem:[#allocation8 + $0x458] sm:$0xff] }
 0x1a1   :  { %2135 = vmatprep.subr.bf16.mxu0 %v2134_v7  ;;  %v494_v7 = vld [vmem:[#allocation8 + $0x4b8] sm:$0xff] }
 0x1a2   :  { %2009 = vmatpush1.bf16.msra.mxu1 %v2008_v1  ;;  %v486_v1 = vld [vmem:[#allocation8 + $0x478] sm:$0xff]  ;;  %v2050_v9 = vpack.c.bf16 %v494_v7, %v490_v6  ;;  %v1054_v7 = vld [vmem:[#allocation11 + $0x3c8] sm:$0xff] }
 0x1a3   :  { %2011 = vmatprep.subr.bf16.mxu1 %v2010_v4  ;;  %v2046_v3 = vpack.c.bf16 %v486_v1, %v482_v0  ;;  %v481_v4 = vld [vmem:[#allocation8 + $0x450] sm:$0xff]  ;;  %v534_v41 = vld [vmem:[#allocation8 + $0x5f8] sm:$0xff] }
 0x1a4   :  { %v2048_v8 = vpack.c.bf16 %v485_v5, %v481_v4  ;;  %v1023_v35 = vld [vmem:[#allocation11 + $0x2d0] sm:$0xff]  ;;  %v2070_v48 = vpack.c.bf16 %v534_v41, %v530_v40 }
 0x1a5   :  { %v2136_v39 = vpack.c.bf16 %v1023_v35, %v1017_v33  ;;  %v1035_v47 = vld [vmem:[#allocation11 + $0x330] sm:$0xff] }
 0x1a6   :  { %2013 = vmatpush1.bf16.msra.mxu1 %v2012_v10  ;;  %v489_v10 = vld [vmem:[#allocation8 + $0x490] sm:$0xff]  ;;  %v2140_v51 = vpack.c.bf16 %v1035_v47, %v1029_v46  ;;  %v538_v52 = vld [vmem:[#allocation8 + $0x618] sm:$0xff] }
 0x1a7   :  { %2015 = vmatprep.subr.bf16.mxu1 %v2014_v11  ;;  %v493_v11 = vld [vmem:[#allocation8 + $0x4b0] sm:$0xff]  ;;  %2137 = vmatpush1.bf16.msra.mxu0 %v2136_v39  ;;  %v542_v53 = vld [vmem:[#allocation8 + $0x638] sm:$0xff] }
 0x1a8   :  { %v2052_v14 = vpack.c.bf16 %v493_v11, %v489_v10  ;;  %v1047_v0 = vld [vmem:[#allocation11 + $0x390] sm:$0xff]  ;;  %v2074_v1 = vpack.c.bf16 %v542_v53, %v538_v52  ;;  %v1053_v11 = vld [vmem:[#allocation11 + $0x3c0] sm:$0xff] }
 0x1a9   :  { %v2144_v4 = vpack.c.bf16 %v1047_v0, %v1041_v63  ;;  %v546_v5 = vld [vmem:[#allocation8 + $0x658] sm:$0xff]  ;;  %v561_v39 = vld [vmem:[#allocation8 + $0x6d0] sm:$0xff] }
 0x1aa   :  { %2017 = vmatpush1.bf16.msra.mxu1 %v2016_v16  ;;  %v497_v16 = vld [vmem:[#allocation8 + $0x4d0] sm:$0xff]  ;;  %v550_v6 = vld [vmem:[#allocation8 + $0x678] sm:$0xff] }
 0x1ab   :  { %2019 = vmatprep.subr.bf16.mxu1 %v2018_v17  ;;  %v501_v17 = vld [vmem:[#allocation8 + $0x4f0] sm:$0xff]  ;;  %v2078_v13 = vpack.c.bf16 %v550_v6, %v546_v5  ;;  %v558_v18 = vld [vmem:[#allocation8 + $0x6b8] sm:$0xff] }
 0x1ac   :  { %v1059_v12 = vld [vmem:[#allocation11 + $0x3f0] sm:$0xff] }
 0x1ad   :  { %v562_v27 = vld [vmem:[#allocation8 + $0x6d8] sm:$0xff]  ;;  %v565_v40 = vld [vmem:[#allocation8 + $0x6f0] sm:$0xff] }
 0x1ae   :  { %2021 = vmatpush1.bf16.msra.mxu1 %v2020_v22  ;;  %v514_v22 = vld [vmem:[#allocation8 + $0x558] sm:$0xff]  ;;  %v2088_v46 = vpack.c.bf16 %v565_v40, %v561_v39  ;;  %v573_v52 = vld [vmem:[#allocation8 + $0x730] sm:$0xff]  ;;  %v953_v40 = vld [vmem:[#allocation11 + $0xa0] sm:$0xff] }
 0x1af   :  { %2023 = vmatprep.subr.bf16.mxu1 %v2022_v23  ;;  %v518_v23 = vld [vmem:[#allocation8 + $0x578] sm:$0xff]  ;;  %v581_v5 = vld [vmem:[#allocation8 + $0x770] sm:$0xff] }
 0x1b0   :  { %v2062_v25 = vpack.c.bf16 %v518_v23, %v514_v22  ;;  %v1071_v22 = vld [vmem:[#allocation11 + $0x450] sm:$0xff] }
 0x1b1   :  { %v947_v39 = vld [vmem:[#allocation11 + $0x70] sm:$0xff] }
 0x1b2   :  { %2025 = vmatpush1.bf16.msra.mxu1 %v2024_v28  ;;  %v522_v28 = vld [vmem:[#allocation8 + $0x598] sm:$0xff] }
 0x1b3   :  { %2027 = vmatprep.subr.bf16.mxu1 %v2026_v29  ;;  %v526_v29 = vld [vmem:[#allocation8 + $0x5b8] sm:$0xff] }
 0x1b4   :  { %v2066_v36 = vpack.c.bf16 %v526_v29, %v522_v28  ;;  %v566_v28 = vld [vmem:[#allocation8 + $0x6f8] sm:$0xff]  ;;  %v1078_v29 = vld [vmem:[#allocation11 + $0x488] sm:$0xff] }
 0x1b6   :  { %2029 = vmatpush1.bf16.msra.mxu1 %v2028_v37  ;;  %v521_v37 = vld [vmem:[#allocation8 + $0x590] sm:$0xff] }
 0x1b7   :  { %2031 = vmatprep.subr.bf16.mxu1 %v2030_v38  ;;  %v525_v38 = vld [vmem:[#allocation8 + $0x5b0] sm:$0xff] }
 0x1ba   :  { %2033 = vmatpush1.bf16.msra.mxu1 %v2032_v43  ;;  %v1036_v43 = vld [vmem:[#allocation11 + $0x338] sm:$0xff] }
 0x1bb   :  { %2035 = vmatprep.subr.bf16.mxu1 %v2034_v44  ;;  %v2068_v44 = vpack.c.bf16 %v525_v38, %v521_v37  ;;  %v2138_v45 = vpack.c.bf16 %v1036_v43, %v1030_v42  ;;  %v1083_v37 = vld [vmem:[#allocation11 + $0x4b0] sm:$0xff]  ;;  %v2086_v38 = vpack.c.bf16 %v566_v28, %v562_v27 }
 0x1bc   :  { %v570_v42 = vld [vmem:[#allocation8 + $0x718] sm:$0xff] }
 0x1bd   :  { %2139 = vmatprep.subr.bf16.mxu0 %v2138_v45  ;;  %v574_v43 = vld [vmem:[#allocation8 + $0x738] sm:$0xff] }
 0x1be   :  { %2037 = vmatpush1.bf16.msra.mxu1 %v2036_v49  ;;  %v529_v49 = vld [vmem:[#allocation8 + $0x5d0] sm:$0xff]  ;;  %2141 = vmatpush1.bf16.msra.mxu0 %v2140_v51  ;;  %v1096_v45 = vld [vmem:[#allocation11 + $0x518] sm:$0xff] }
 0x1bf   :  { %2039 = vmatprep.subr.bf16.mxu1 %v2038_v50  ;;  %v533_v50 = vld [vmem:[#allocation8 + $0x5f0] sm:$0xff] }
 0x1c0   :  { %v569_v51 = vld [vmem:[#allocation8 + $0x710] sm:$0xff] }
 0x1c1   :  { %v2092_v63 = vpack.c.bf16 %v573_v52, %v569_v51  ;;  %v971_v51 = vld [vmem:[#allocation11 + $0x130] sm:$0xff]  ;;  %v977_v52 = vld [vmem:[#allocation11 + $0x160] sm:$0xff] }
 0x1c2   :  { %2041 = vmatpush1.bf16.msra.mxu1 %v2040_v60  ;;  %v1048_v60 = vld [vmem:[#allocation11 + $0x398] sm:$0xff] }
 0x1c3   :  { %2043 = vmatprep.subr.bf16.mxu1 %v2042_v61  ;;  %v2072_v61 = vpack.c.bf16 %v533_v50, %v529_v49  ;;  %v2142_v62 = vpack.c.bf16 %v1048_v60, %v1042_v56  ;;  %v1095_v49 = vld [vmem:[#allocation11 + $0x510] sm:$0xff]  ;;  %v2090_v50 = vpack.c.bf16 %v574_v43, %v570_v42  ;;  %v966_v42 = vld [vmem:[#allocation11 + $0x108] sm:$0xff]  ;;  %v2240_v43 = vpack.c.bf16 %v953_v40, %v947_v39 }
 0x1c4   :  { %v578_v56 = vld [vmem:[#allocation8 + $0x758] sm:$0xff] }
 0x1c5   :  { %828 = vmatmul.mubr.f32.vlgmr.msra.gmra.mrb[4].mxu1 %v2898_v30  ;;  %v2056_v30 = vpack.c.bf16 %v501_v17, %v497_v16  ;;  %2143 = vmatprep.subr.bf16.mxu0 %v2142_v62  ;;  %v2148_v16 = vpack.c.bf16 %v1059_v12, %v1053_v11  ;;  %v554_v17 = vld [vmem:[#allocation8 + $0x698] sm:$0xff] }
 0x1c6   :  { %2045 = vmatpush1.bf16.msra.mxu1 %v2044_v2  ;;  %898 = vmatprep.mubr.f32.mxu1 %v2902_v34  ;;  %v505_v34 = vld [vmem:[#allocation8 + $0x510] sm:$0xff]  ;;  %v2082_v23 = vpack.c.bf16 %v558_v18, %v554_v17  ;;  %v582_v60 = vld [vmem:[#allocation8 + $0x778] sm:$0xff] }
 0x1c7   :  { %2047 = vmatprep.subr.bf16.mxu1 %v2046_v3  ;;  %v2060_v24 = vpack.c.bf16 %v509_v21, %v505_v34  ;;  %v537_v2 = vld [vmem:[#allocation8 + $0x610] sm:$0xff]  ;;  %2145 = vmatpush1.bf16.msra.mxu0 %v2144_v4  ;;  %v1065_v21 = vld [vmem:[#allocation11 + $0x420] sm:$0xff]  ;;  %v1108_v62 = vld [vmem:[#allocation11 + $0x578] sm:$0xff] }
 0x1c8   :  { %v541_v3 = vld [vmem:[#allocation8 + $0x630] sm:$0xff]  ;;  %v2152_v26 = vpack.c.bf16 %v1071_v22, %v1065_v21 }
 0x1c9   :  { %v577_v4 = vld [vmem:[#allocation8 + $0x750] sm:$0xff] }
 0x1ca   :  { %2049 = vmatpush1.bf16.msra.mxu1 %v2048_v8  ;;  %v1060_v8 = vld [vmem:[#allocation11 + $0x3f8] sm:$0xff]  ;;  %v2096_v11 = vpack.c.bf16 %v581_v5, %v577_v4  ;;  %v589_v17 = vld [vmem:[#allocation8 + $0x7b0] sm:$0xff]  ;;  %v1001_v4 = vld [vmem:[#allocation11 + $0x220] sm:$0xff] }
 0x1cb   :  { %2051 = vmatprep.subr.bf16.mxu1 %v2050_v9  ;;  %v2076_v9 = vpack.c.bf16 %v541_v3, %v537_v2  ;;  %v2146_v10 = vpack.c.bf16 %v1060_v8, %v1054_v7  ;;  %v1107_v2 = vld [vmem:[#allocation11 + $0x570] sm:$0xff]  ;;  %v2094_v3 = vpack.c.bf16 %v582_v60, %v578_v56  ;;  %v990_v56 = vld [vmem:[#allocation11 + $0x1c8] sm:$0xff]  ;;  %v2248_v60 = vpack.c.bf16 %v977_v52, %v971_v51  ;;  %v1008_v5 = vld [vmem:[#allocation11 + $0x258] sm:$0xff] }
 0x1cc   :  { %v586_v7 = vld [vmem:[#allocation8 + $0x798] sm:$0xff]  ;;  %v597_v22 = vld [vmem:[#allocation8 + $0x7f0] sm:$0xff] }
 0x1cd   :  { %2147 = vmatprep.subr.bf16.mxu0 %v2146_v10  ;;  %v590_v8 = vld [vmem:[#allocation8 + $0x7b8] sm:$0xff] }
 0x1ce   :  { %2053 = vmatpush1.bf16.msra.mxu1 %v2052_v14  ;;  %v545_v14 = vld [vmem:[#allocation8 + $0x650] sm:$0xff]  ;;  %2149 = vmatpush1.bf16.msra.mxu0 %v2148_v16  ;;  %v1120_v10 = vld [vmem:[#allocation11 + $0x5d8] sm:$0xff] }
 0x1cf   :  { %2055 = vmatprep.subr.bf16.mxu1 %v2054_v15  ;;  %v549_v15 = vld [vmem:[#allocation8 + $0x670] sm:$0xff] }
 0x1d0   :  { %v585_v16 = vld [vmem:[#allocation8 + $0x790] sm:$0xff] }
 0x1d1   :  { %v1067_v40 = vld [vmem:[#allocation11 + $0x430] sm:$0xff] }
 0x1d2   :  { %2057 = vmatpush1.bf16.msra.mxu1 %v2056_v30  ;;  %v1072_v30 = vld [vmem:[#allocation11 + $0x458] sm:$0xff]  ;;  %v1091_v52 = vld [vmem:[#allocation11 + $0x4f0] sm:$0xff] }
 0x1d3   :  { %2059 = vmatprep.subr.bf16.mxu1 %v2058_v20  ;;  %v2080_v20 = vpack.c.bf16 %v549_v15, %v545_v14  ;;  %v2150_v34 = vpack.c.bf16 %v1072_v30, %v1066_v19  ;;  %v1119_v14 = vld [vmem:[#allocation11 + $0x5d0] sm:$0xff]  ;;  %v2098_v15 = vpack.c.bf16 %v590_v8, %v586_v7 }
 0x1d4   :  { %v594_v19 = vld [vmem:[#allocation8 + $0x7d8] sm:$0xff] }
 0x1d5   :  { %2151 = vmatprep.subr.bf16.mxu0 %v2150_v34  ;;  %v598_v30 = vld [vmem:[#allocation8 + $0x7f8] sm:$0xff]  ;;  %v593_v34 = vld [vmem:[#allocation8 + $0x7d0] sm:$0xff] }
 0x1d6   :  { %2061 = vmatpush1.bf16.msra.mxu1 %v2060_v24  ;;  %v553_v24 = vld [vmem:[#allocation8 + $0x690] sm:$0xff]  ;;  %2153 = vmatpush1.bf16.msra.mxu0 %v2152_v26  ;;  %v2102_v21 = vpack.c.bf16 %v598_v30, %v594_v19  ;;  %v2104_v28 = vpack.c.bf16 %v597_v22, %v593_v34  ;;  %v1037_v34 = vld [vmem:[#allocation11 + $0x340] sm:$0xff] }
 0x1d7   :  { %2063 = vmatprep.subr.bf16.mxu1 %v2062_v25  ;;  %v557_v25 = vld [vmem:[#allocation8 + $0x6b0] sm:$0xff] }
 0x1d8   :  { %v2084_v33 = vpack.c.bf16 %v557_v25, %v553_v24  ;;  %v1132_v24 = vld [vmem:[#allocation11 + $0x638] sm:$0xff]  ;;  %v942_v26 = vld [vmem:[#allocation11 + $0x48] sm:$0xff] }
 0x1d9   :  { %v936_v25 = vld [vmem:[#allocation11 + $0x18] sm:$0xff]  ;;  %v1050_v22 = vld [vmem:[#allocation11 + $0x3a8] sm:$0xff] }
 0x1da   :  { %2065 = vmatpush1.bf16.msra.mxu1 %v2064_v32  ;;  %v1084_v32 = vld [vmem:[#allocation11 + $0x4b8] sm:$0xff] }
 0x1db   :  { %2067 = vmatprep.subr.bf16.mxu1 %v2066_v36  ;;  %v2154_v35 = vpack.c.bf16 %v1084_v32, %v1078_v29  ;;  %v1077_v36 = vld [vmem:[#allocation11 + $0x480] sm:$0xff]  ;;  %v2234_v29 = vpack.c.bf16 %v942_v26, %v936_v25  ;;  %v935_v32 = vld [vmem:[#allocation11 + $0x10] sm:$0xff] }
 0x1dc   :  { %v2156_v41 = vpack.c.bf16 %v1083_v37, %v1077_v36  ;;  %v954_v36 = vld [vmem:[#allocation11 + $0xa8] sm:$0xff]  ;;  %v1043_v25 = vld [vmem:[#allocation11 + $0x370] sm:$0xff]  ;;  %v1049_v26 = vld [vmem:[#allocation11 + $0x3a0] sm:$0xff] }
 0x1dd   :  { %2155 = vmatprep.subr.bf16.mxu0 %v2154_v35  ;;  %v948_v35 = vld [vmem:[#allocation11 + $0x78] sm:$0xff] }
 0x1de   :  { %2069 = vmatpush1.bf16.msra.mxu1 %v2068_v44  ;;  %2157 = vmatpush1.bf16.msra.mxu0 %v2156_v41  ;;  %v1090_v44 = vld [vmem:[#allocation11 + $0x4e8] sm:$0xff]  ;;  %v960_v41 = vld [vmem:[#allocation11 + $0xd8] sm:$0xff] }
 0x1df   :  { %2071 = vmatprep.subr.bf16.mxu1 %v2070_v48  ;;  %v2158_v47 = vpack.c.bf16 %v1096_v45, %v1090_v44  ;;  %v1089_v48 = vld [vmem:[#allocation11 + $0x4e0] sm:$0xff]  ;;  %v2242_v44 = vpack.c.bf16 %v966_v42, %v960_v41  ;;  %v959_v45 = vld [vmem:[#allocation11 + $0xd0] sm:$0xff]  ;;  %v1080_v42 = vld [vmem:[#allocation11 + $0x498] sm:$0xff] }
 0x1e0   :  { %v2160_v53 = vpack.c.bf16 %v1095_v49, %v1089_v48  ;;  %v978_v48 = vld [vmem:[#allocation11 + $0x168] sm:$0xff]  ;;  %v1073_v41 = vld [vmem:[#allocation11 + $0x460] sm:$0xff] }
 0x1e1   :  { %2159 = vmatprep.subr.bf16.mxu0 %v2158_v47  ;;  %v972_v47 = vld [vmem:[#allocation11 + $0x138] sm:$0xff] }
 0x1e2   :  { %2073 = vmatpush1.bf16.msra.mxu1 %v2072_v61  ;;  %2161 = vmatpush1.bf16.msra.mxu0 %v2160_v53  ;;  %v1102_v61 = vld [vmem:[#allocation11 + $0x548] sm:$0xff]  ;;  %v984_v53 = vld [vmem:[#allocation11 + $0x198] sm:$0xff] }
 0x1e3   :  { %2075 = vmatprep.subr.bf16.mxu1 %v2074_v1  ;;  %v2162_v0 = vpack.c.bf16 %v1108_v62, %v1102_v61  ;;  %v1101_v1 = vld [vmem:[#allocation11 + $0x540] sm:$0xff]  ;;  %v983_v61 = vld [vmem:[#allocation11 + $0x190] sm:$0xff] }
 0x1e4   :  { %v2164_v6 = vpack.c.bf16 %v1107_v2, %v1101_v1  ;;  %v989_v62 = vld [vmem:[#allocation11 + $0x1c0] sm:$0xff] }
 0x1e5   :  { %2163 = vmatprep.subr.bf16.mxu0 %v2162_v0  ;;  %v1002_v0 = vld [vmem:[#allocation11 + $0x228] sm:$0xff]  ;;  %v2252_v1 = vpack.c.bf16 %v989_v62, %v983_v61  ;;  %v1103_v62 = vld [vmem:[#allocation11 + $0x550] sm:$0xff] }
 0x1e6   :  { %2077 = vmatpush1.bf16.msra.mxu1 %v2076_v9  ;;  %2165 = vmatpush1.bf16.msra.mxu0 %v2164_v6  ;;  %v1114_v9 = vld [vmem:[#allocation11 + $0x5a8] sm:$0xff] }
 0x1e7   :  { %2079 = vmatprep.subr.bf16.mxu1 %v2078_v13  ;;  %v2166_v12 = vpack.c.bf16 %v1120_v10, %v1114_v9  ;;  %v1113_v13 = vld [vmem:[#allocation11 + $0x5a0] sm:$0xff]  ;;  %v1014_v6 = vld [vmem:[#allocation11 + $0x288] sm:$0xff]  ;;  %v1007_v9 = vld [vmem:[#allocation11 + $0x250] sm:$0xff] }
 0x1e8   :  { %v2168_v18 = vpack.c.bf16 %v1119_v14, %v1113_v13  ;;  %v2258_v8 = vpack.c.bf16 %v1014_v6, %v1008_v5  ;;  %v1013_v10 = vld [vmem:[#allocation11 + $0x280] sm:$0xff]  ;;  %v1128_v6 = vld [vmem:[#allocation11 + $0x618] sm:$0xff] }
 0x1e9   :  { %2167 = vmatprep.subr.bf16.mxu0 %v2166_v12  ;;  %v1026_v12 = vld [vmem:[#allocation11 + $0x2e8] sm:$0xff]  ;;  %v2260_v13 = vpack.c.bf16 %v1013_v10, %v1007_v9  ;;  %v1121_v5 = vld [vmem:[#allocation11 + $0x5e0] sm:$0xff]  ;;  %v2910_v10 = vld [vmem:[#allocation10] sm:$0xf] }
 0x1ea   :  { %2081 = vmatpush1.bf16.msra.mxu1 %v2080_v20  ;;  %2169 = vmatpush1.bf16.msra.mxu0 %v2168_v18  ;;  %v2100_v20 = vpack.c.bf16 %v589_v17, %v585_v16  ;;  %v1025_v16 = vld [vmem:[#allocation11 + $0x2e0] sm:$0xff]  ;;  %v1032_v17 = vld [vmem:[#allocation11 + $0x318] sm:$0xff]  ;;  %v1038_v18 = vld [vmem:[#allocation11 + $0x348] sm:$0xff] }
 0x1eb   :  { %2083 = vmatprep.subr.bf16.mxu1 %v2082_v23  ;;  %v1126_v23 = vld [vmem:[#allocation11 + $0x608] sm:$0xff]  ;;  %v2266_v30 = vpack.c.bf16 %v1038_v18, %v1032_v17 }
 0x1ec   :  { %v2170_v27 = vpack.c.bf16 %v1132_v24, %v1126_v23 }
 0x1ee   :  { %2085 = vmatpush1.bf16.msra.mxu1 %v2084_v33  ;;  %2171 = vmatprep.subr.bf16.mxu0 %v2170_v27  ;;  %v941_v33 = vld [vmem:[#allocation11 + $0x40] sm:$0xff]  ;;  %v1056_v27 = vld [vmem:[#allocation11 + $0x3d8] sm:$0xff] }
 0x1ef   :  { %2087 = vmatprep.subr.bf16.mxu1 %v2086_v38  ;;  %v2236_v37 = vpack.c.bf16 %v941_v33, %v935_v32  ;;  %v2238_v38 = vpack.c.bf16 %v954_v36, %v948_v35  ;;  %v1055_v33 = vld [vmem:[#allocation11 + $0x3d0] sm:$0xff]  ;;  %v1061_v35 = vld [vmem:[#allocation11 + $0x400] sm:$0xff]  ;;  %v1068_v36 = vld [vmem:[#allocation11 + $0x438] sm:$0xff] }
 0x1f2   :  { %2089 = vmatpush1.bf16.msra.mxu1 %v2088_v46  ;;  %v965_v46 = vld [vmem:[#allocation11 + $0x100] sm:$0xff] }
 0x1f3   :  { %2091 = vmatprep.subr.bf16.mxu1 %v2090_v50  ;;  %v2244_v49 = vpack.c.bf16 %v965_v46, %v959_v45  ;;  %v2246_v50 = vpack.c.bf16 %v978_v48, %v972_v47  ;;  %v1079_v46 = vld [vmem:[#allocation11 + $0x490] sm:$0xff]  ;;  %v1085_v47 = vld [vmem:[#allocation11 + $0x4c0] sm:$0xff]  ;;  %v1092_v48 = vld [vmem:[#allocation11 + $0x4f8] sm:$0xff] }
 0x1f6   :  { %2093 = vmatpush1.bf16.msra.mxu1 %v2092_v63  ;;  %v996_v63 = vld [vmem:[#allocation11 + $0x1f8] sm:$0xff] }
 0x1f7   :  { %2095 = vmatprep.subr.bf16.mxu1 %v2094_v3  ;;  %v2254_v2 = vpack.c.bf16 %v1002_v0, %v996_v63  ;;  %v995_v3 = vld [vmem:[#allocation11 + $0x1f0] sm:$0xff]  ;;  %v1109_v63 = vld [vmem:[#allocation11 + $0x580] sm:$0xff]  ;;  %v1116_v0 = vld [vmem:[#allocation11 + $0x5b8] sm:$0xff] }
 0x1f8   :  { %v2256_v7 = vpack.c.bf16 %v1001_v4, %v995_v3  ;;  %v1115_v4 = vld [vmem:[#allocation11 + $0x5b0] sm:$0xff] }
 0x1fa   :  { %2097 = vmatpush1.bf16.msra.mxu1 %v2096_v11  ;;  %v1020_v11 = vld [vmem:[#allocation11 + $0x2b8] sm:$0xff] }
 0x1fb   :  { %2099 = vmatprep.subr.bf16.mxu1 %v2098_v15  ;;  %v2262_v14 = vpack.c.bf16 %v1026_v12, %v1020_v11  ;;  %v1019_v15 = vld [vmem:[#allocation11 + $0x2b0] sm:$0xff]  ;;  %v604_v11 = vrot.slane %v2910_v10, %v2883_v55  ;;  %v608_v12 = vrot.slane %v2910_v10, %v2886_v57 }
 0x1fc   :  { %v2264_v19 = vpack.c.bf16 %v1025_v16, %v1019_v15 }
 0x1fe   :  { %2101 = vmatpush1.bf16.msra.mxu1 %v2100_v20  ;;  %v1031_v20 = vld [vmem:[#allocation11 + $0x310] sm:$0xff] }
 0x1ff   :  { %2103 = vmatprep.subr.bf16.mxu1 %v2102_v21  ;;  %v1044_v21 = vld [vmem:[#allocation11 + $0x378] sm:$0xff]  ;;  %v2268_v23 = vpack.c.bf16 %v1037_v34, %v1031_v20 }
 0x200   :  { %v2270_v24 = vpack.c.bf16 %v1050_v22, %v1044_v21 }
 0x202   :  { %2105 = vmatpush1.bf16.msra.mxu1 %v2104_v28  ;;  %v1062_v28 = vld [vmem:[#allocation11 + $0x408] sm:$0xff] }
 0x203   :  { %2235 = vmatprep.subr.bf16.mxu1 %v2234_v29  ;;  %v2272_v29 = vpack.c.bf16 %v1049_v26, %v1043_v25  ;;  %v2274_v32 = vpack.c.bf16 %v1062_v28, %v1056_v27  ;;  %v1125_v25 = vld [vmem:[#allocation11 + $0x600] sm:$0xff]  ;;  %v1131_v26 = vld [vmem:[#allocation11 + $0x630] sm:$0xff] }
 0x204   :  { %v1127_v27 = vld [vmem:[#allocation11 + $0x610] sm:$0xff]  ;;  %v1133_v28 = vld [vmem:[#allocation11 + $0x640] sm:$0xff] }
 0x205   :  { %899 = vmatmul.mubr.f32.vlgmr.msra.gmra.mrb[4].mxu1 %v2900_v31  ;;  %v2250_v31 = vpack.c.bf16 %v990_v56, %v984_v53  ;;  %v1097_v53 = vld [vmem:[#allocation11 + $0x520] sm:$0xff]  ;;  %v1104_v56 = vld [vmem:[#allocation11 + $0x558] sm:$0xff] }
 0x206   :  { %2237 = vmatpush1.bf16.msra.mxu1 %v2236_v37  ;;  %v1074_v37 = vld [vmem:[#allocation11 + $0x468] sm:$0xff] }
 0x207   :  { %2239 = vmatprep.subr.bf16.mxu1 %v2238_v38  ;;  %v2276_v38 = vpack.c.bf16 %v1061_v35, %v1055_v33  ;;  %v2278_v39 = vpack.c.bf16 %v1074_v37, %v1068_v36  ;;  %v1144_v33 = vld [vmem:[#allocation11 + $0x698] sm:$0xff]  ;;  %v1146_v36 = vld [vmem:[#allocation11 + $0x6a8] sm:$0xff] }
 0x208   :  { %v1140_v35 = vld [vmem:[#allocation11 + $0x678] sm:$0xff] }
 0x20a   :  { %2241 = vmatpush1.bf16.msra.mxu1 %v2240_v43  ;;  %v1086_v43 = vld [vmem:[#allocation11 + $0x4c8] sm:$0xff] }
 0x20b   :  { %2243 = vmatprep.subr.bf16.mxu1 %v2242_v44  ;;  %v2280_v44 = vpack.c.bf16 %v1073_v41, %v1067_v40  ;;  %v2282_v45 = vpack.c.bf16 %v1086_v43, %v1080_v42  ;;  %v2300_v40 = vpack.c.bf16 %v1133_v28, %v1127_v27  ;;  %v1137_v41 = vld [vmem:[#allocation11 + $0x660] sm:$0xff]  ;;  %v1143_v42 = vld [vmem:[#allocation11 + $0x690] sm:$0xff] }
 0x20e   :  { %2245 = vmatpush1.bf16.msra.mxu1 %v2244_v49  ;;  %v1098_v49 = vld [vmem:[#allocation11 + $0x528] sm:$0xff] }
 0x20f   :  { %2247 = vmatprep.subr.bf16.mxu1 %v2246_v50  ;;  %v2284_v50 = vpack.c.bf16 %v1085_v47, %v1079_v46  ;;  %v2286_v51 = vpack.c.bf16 %v1098_v49, %v1092_v48  ;;  %v1139_v46 = vld [vmem:[#allocation11 + $0x670] sm:$0xff]  ;;  %v1145_v47 = vld [vmem:[#allocation11 + $0x6a0] sm:$0xff]  ;;  %v1150_v48 = vld [vmem:[#allocation11 + $0x6c8] sm:$0xff] }
 0x210   :  { %v1156_v49 = vld [vmem:[#allocation11 + $0x6f8] sm:$0xff] }
 0x212   :  { %2249 = vmatpush1.bf16.msra.mxu1 %v2248_v60  ;;  %v1110_v60 = vld [vmem:[#allocation11 + $0x588] sm:$0xff] }
 0x213   :  { %2251 = vmatprep.subr.bf16.mxu1 %v2250_v31  ;;  %v2288_v31 = vpack.c.bf16 %v1097_v53, %v1091_v52  ;;  %v2290_v61 = vpack.c.bf16 %v1110_v60, %v1104_v56  ;;  %v2176_v52 = vpack.c.bf16 %v1143_v42, %v1137_v41  ;;  %v2304_v53 = vpack.c.bf16 %v1145_v47, %v1139_v46  ;;  %v1149_v56 = vld [vmem:[#allocation11 + $0x6c0] sm:$0xff]  ;;  %v1155_v60 = vld [vmem:[#allocation11 + $0x6f0] sm:$0xff]  ;;  %v1200_v41 = vld [vmem:[#allocation11 + $0x858] sm:$0xff] }
 0x214   :  { %v1206_v42 = vld [vmem:[#allocation11 + $0x888] sm:$0xff]  ;;  %v1197_v46 = vld [vmem:[#allocation11 + $0x840] sm:$0xff]  ;;  %v1203_v47 = vld [vmem:[#allocation11 + $0x870] sm:$0xff] }
 0x216   :  { %2253 = vmatpush1.bf16.msra.mxu1 %v2252_v1  ;;  %v1122_v1 = vld [vmem:[#allocation11 + $0x5e8] sm:$0xff] }
 0x217   :  { %2255 = vmatprep.subr.bf16.mxu1 %v2254_v2  ;;  %v2292_v2 = vpack.c.bf16 %v1109_v63, %v1103_v62  ;;  %v2294_v3 = vpack.c.bf16 %v1122_v1, %v1116_v0  ;;  %v1151_v62 = vld [vmem:[#allocation11 + $0x6d0] sm:$0xff]  ;;  %v1157_v63 = vld [vmem:[#allocation11 + $0x700] sm:$0xff]  ;;  %v1162_v0 = vld [vmem:[#allocation11 + $0x728] sm:$0xff] }
 0x218   :  { %v1168_v1 = vld [vmem:[#allocation11 + $0x758] sm:$0xff] }
 0x21a   :  { %2257 = vmatpush1.bf16.msra.mxu1 %v2256_v7  ;;  %v1134_v7 = vld [vmem:[#allocation11 + $0x648] sm:$0xff] }
 0x21b   :  { %2259 = vmatprep.subr.bf16.mxu1 %v2258_v8  ;;  %v2296_v8 = vpack.c.bf16 %v1121_v5, %v1115_v4  ;;  %v2298_v9 = vpack.c.bf16 %v1134_v7, %v1128_v6  ;;  %v2180_v4 = vpack.c.bf16 %v1155_v60, %v1149_v56  ;;  %v2308_v5 = vpack.c.bf16 %v1157_v63, %v1151_v62  ;;  %v1161_v6 = vld [vmem:[#allocation11 + $0x720] sm:$0xff]  ;;  %v1167_v7 = vld [vmem:[#allocation11 + $0x750] sm:$0xff]  ;;  %v1212_v56 = vld [vmem:[#allocation11 + $0x8b8] sm:$0xff] }
 0x21c   :  { %v1218_v60 = vld [vmem:[#allocation11 + $0x8e8] sm:$0xff]  ;;  %v1209_v62 = vld [vmem:[#allocation11 + $0x8a0] sm:$0xff]  ;;  %v1215_v63 = vld [vmem:[#allocation11 + $0x8d0] sm:$0xff] }
 0x21e   :  { %2261 = vmatpush1.bf16.msra.mxu1 %v2260_v13 }
 0x21f   :  { %2263 = vmatprep.subr.bf16.mxu1 %v2262_v14 }
 0x222   :  { %2265 = vmatpush1.bf16.msra.mxu1 %v2264_v19 }
 0x223   :  { %2267 = vmatprep.subr.bf16.mxu1 %v2266_v30 }
 0x226   :  { %2269 = vmatpush1.bf16.msra.mxu1 %v2268_v23 }
 0x227   :  { %2271 = vmatprep.subr.bf16.mxu1 %v2270_v24 }
 0x22a   :  { %2273 = vmatpush1.bf16.msra.mxu1 %v2272_v29  ;;  %v1138_v29 = vld [vmem:[#allocation11 + $0x668] sm:$0xff] }
 0x22b   :  { %2275 = vmatprep.subr.bf16.mxu1 %v2274_v32 }
 0x22e   :  { %2277 = vmatpush1.bf16.msra.mxu1 %v2276_v38 }
 0x22f   :  { %2279 = vmatprep.subr.bf16.mxu1 %v2278_v39  ;;  %v2172_v39 = vpack.c.bf16 %v1131_v26, %v1125_v25  ;;  %v1188_v25 = vld [vmem:[#allocation11 + $0x7f8] sm:$0xff]  ;;  %v1194_v26 = vld [vmem:[#allocation11 + $0x828] sm:$0xff] }
 0x232   :  { %2281 = vmatpush1.bf16.msra.mxu1 %v2280_v44  ;;  %v2174_v44 = vpack.c.bf16 %v1144_v33, %v1138_v29  ;;  %v1185_v29 = vld [vmem:[#allocation11 + $0x7e0] sm:$0xff] }
 0x233   :  { %2283 = vmatprep.subr.bf16.mxu1 %v2282_v45  ;;  %v2302_v45 = vpack.c.bf16 %v1146_v36, %v1140_v35  ;;  %v2318_v35 = vpack.c.bf16 %v1194_v26, %v1188_v25  ;;  %v1187_v36 = vld [vmem:[#allocation11 + $0x7f0] sm:$0xff]  ;;  %v1241_v26 = vld [vmem:[#allocation11 + $0x9a0] sm:$0xff] }
 0x234   :  { %v1235_v25 = vld [vmem:[#allocation11 + $0x970] sm:$0xff] }
 0x236   :  { %2285 = vmatpush1.bf16.msra.mxu1 %v2284_v50  ;;  %v1152_v50 = vld [vmem:[#allocation11 + $0x6d8] sm:$0xff] }
 0x237   :  { %2287 = vmatprep.subr.bf16.mxu1 %v2286_v51  ;;  %v1158_v51 = vld [vmem:[#allocation11 + $0x708] sm:$0xff] }
 0x23a   :  { %2289 = vmatpush1.bf16.msra.mxu1 %v2288_v31  ;;  %v2178_v31 = vpack.c.bf16 %v1156_v49, %v1150_v48  ;;  %v2322_v49 = vpack.c.bf16 %v1206_v42, %v1200_v41  ;;  %v1247_v41 = vld [vmem:[#allocation11 + $0x9d0] sm:$0xff]  ;;  %v1253_v42 = vld [vmem:[#allocation11 + $0xa00] sm:$0xff] }
 0x23b   :  { %2291 = vmatprep.subr.bf16.mxu1 %v2290_v61  ;;  %v2306_v61 = vpack.c.bf16 %v1158_v51, %v1152_v50  ;;  %v1199_v50 = vld [vmem:[#allocation11 + $0x850] sm:$0xff]  ;;  %v1205_v51 = vld [vmem:[#allocation11 + $0x880] sm:$0xff] }
 0x23e   :  { %2293 = vmatpush1.bf16.msra.mxu1 %v2292_v2  ;;  %v1164_v2 = vld [vmem:[#allocation11 + $0x738] sm:$0xff] }
 0x23f   :  { %2295 = vmatprep.subr.bf16.mxu1 %v2294_v3  ;;  %v1170_v3 = vld [vmem:[#allocation11 + $0x768] sm:$0xff] }
 0x242   :  { %2297 = vmatpush1.bf16.msra.mxu1 %v2296_v8  ;;  %v2182_v8 = vpack.c.bf16 %v1168_v1, %v1162_v0  ;;  %v2326_v1 = vpack.c.bf16 %v1218_v60, %v1212_v56  ;;  %v1259_v56 = vld [vmem:[#allocation11 + $0xa30] sm:$0xff]  ;;  %v1265_v60 = vld [vmem:[#allocation11 + $0xa60] sm:$0xff] }
 0x243   :  { %2299 = vmatprep.subr.bf16.mxu1 %v2298_v9  ;;  %v2310_v9 = vpack.c.bf16 %v1170_v3, %v1164_v2  ;;  %v1211_v2 = vld [vmem:[#allocation11 + $0x8b0] sm:$0xff]  ;;  %v1217_v3 = vld [vmem:[#allocation11 + $0x8e0] sm:$0xff] }
 0x258   :  { %v687_v13 = vpop.f32.mrb[2].mxu1 }
 0x259   :  { %v688_v14 = vadd.f32 %v687_v13, %v604_v11  ;;  %v689_v15 = vpop.f32.mrb[3].mxu1  ;;  %v1163_v11 = vld [vmem:[#allocation11 + $0x730] sm:$0xff]  ;;  %v1174_v13 = vld [vmem:[#allocation11 + $0x788] sm:$0xff] }
 0x25a   :  { %v690_v16 = vadd.f32 %v689_v15, %v608_v12  ;;  %v758_v17 = vpop.f32.mrb[2].mxu0  ;;  %v1169_v12 = vld [vmem:[#allocation11 + $0x760] sm:$0xff]  ;;  %v1176_v15 = vld [vmem:[#allocation11 + $0x798] sm:$0xff] }
 0x25b   :  { %v759_v18 = vadd.f32 %v758_v17, %v688_v14  ;;  %v760_v19 = vpop.f32.mrb[3].mxu0  ;;  %v1180_v14 = vld [vmem:[#allocation11 + $0x7b8] sm:$0xff]  ;;  %v2184_v17 = vpack.c.bf16 %v1167_v7, %v1161_v6  ;;  %v1230_v7 = vld [vmem:[#allocation11 + $0x948] sm:$0xff] }
 0x25c   :  { %v761_v30 = vadd.f32 %v760_v19, %v690_v16  ;;  %v1182_v16 = vld [vmem:[#allocation11 + $0x7c8] sm:$0xff]  ;;  %v1173_v19 = vld [vmem:[#allocation11 + $0x780] sm:$0xff]  ;;  %v1224_v6 = vld [vmem:[#allocation11 + $0x918] sm:$0xff] }
 0x25d   :  { %v1814_v20 = vmul.f32 -1.442695, %v759_v18 }
 0x25e   :  { %v1815_v34 = vmul.f32 -1.442695, %v761_v30 }
 0x25f   :  { %2539 = vpow2.f32 %v1814_v20  ;;  %v2186_v20 = vpack.c.bf16 %v1180_v14, %v1174_v13  ;;  %v2330_v14 = vpack.c.bf16 %v1230_v7, %v1224_v6  ;;  %v1271_v6 = vld [vmem:[#allocation11 + $0xa90] sm:$0xff]  ;;  %v1277_v7 = vld [vmem:[#allocation11 + $0xac0] sm:$0xff] }
 0x260   :  { %2541 = vpow2.f32 %v1815_v34  ;;  %v2314_v34 = vpack.c.bf16 %v1182_v16, %v1176_v15  ;;  %v1223_v15 = vld [vmem:[#allocation11 + $0x910] sm:$0xff]  ;;  %v1229_v16 = vld [vmem:[#allocation11 + $0x940] sm:$0xff] }
 0x269   :  { %v2540_v21 = vpop.eup %2539 }
 0x26a   :  { %v2542_v22 = vpop.eup %2541  ;;  %v917_v23 = vadd.f32 1.0, %v2540_v21  ;;  %v1175_v21 = vld [vmem:[#allocation11 + $0x790] sm:$0xff] }
 0x26b   :  { %v918_v24 = vadd.f32 1.0, %v2542_v22  ;;  %v1181_v22 = vld [vmem:[#allocation11 + $0x7c0] sm:$0xff] }
 0x26c   :  { %2543 = vrcp.f32 %v917_v23  ;;  %v1186_v23 = vld [vmem:[#allocation11 + $0x7e8] sm:$0xff]  ;;  %v2316_v28 = vpack.c.bf16 %v1181_v22, %v1175_v21  ;;  %v1233_v21 = vld [vmem:[#allocation11 + $0x960] sm:$0xff]  ;;  %v1239_v22 = vld [vmem:[#allocation11 + $0x990] sm:$0xff] }
 0x26d   :  { %2545 = vrcp.f32 %v918_v24  ;;  %v1192_v24 = vld [vmem:[#allocation11 + $0x818] sm:$0xff] }
 0x26e   :  { %v2190_v33 = vpack.c.bf16 %v1192_v24, %v1186_v23 }
 0x276   :  { %v2544_v32 = vpop.eup %2543 }
 0x277   :  { %v2546_v37 = vpop.eup %2545  ;;  %v2918_v43 = vmul.f32 %v2544_v32, %v759_v18  ;;  %v2312_v18 = vpack.c.bf16 %v1169_v12, %v1163_v11  ;;  %v1191_v32 = vld [vmem:[#allocation11 + $0x810] sm:$0xff]  ;;  %v1221_v11 = vld [vmem:[#allocation11 + $0x900] sm:$0xff] }
 0x278   :  { %v2916_v38 = vmul.f32 %v2546_v37, %v761_v30  ;;  %v1179_v30 = vld [vmem:[#allocation11 + $0x7b0] sm:$0xff]  ;;  %v1193_v37 = vld [vmem:[#allocation11 + $0x820] sm:$0xff] }
 0x279   :  { %v2188_v27 = vpack.c.bf16 %v1179_v30, %v1173_v19  ;;  %v1227_v12 = vld [vmem:[#allocation11 + $0x930] sm:$0xff]  ;;  %v1236_v19 = vld [vmem:[#allocation11 + $0x978] sm:$0xff]  ;;  %v1242_v30 = vld [vmem:[#allocation11 + $0x9a8] sm:$0xff] }
 0x27a   :  { %1413 = vmatprep.mubr.f32.mxu0 %v2916_v38  ;;  %1555 = vmatprep.mubr.f32.mxu1 %v2916_v38  ;;  %v2334_v24 = vpack.c.bf16 %v1242_v30, %v1236_v19  ;;  %v1283_v19 = vld [vmem:[#allocation11 + $0xaf0] sm:$0xff]  ;;  %v1289_v30 = vld [vmem:[#allocation11 + $0xb20] sm:$0xff] }
 0x27b   :  { %1414 = vmatmul.mubr.f32.vlgmr.msra.gmra.mrb[4].mxu0 %v2918_v43  ;;  %1556 = vmatmul.mubr.f32.vlgmr.msra.gmra.mrb[6].mxu1 %v2918_v43 }
 0x27c   :  { %2173 = vmatpush1.bf16.msra.mxu0 %v2172_v39  ;;  %2301 = vmatpush1.bf16.msra.mxu1 %v2300_v40  ;;  %v1198_v39 = vld [vmem:[#allocation11 + $0x848] sm:$0xff]  ;;  %v1204_v40 = vld [vmem:[#allocation11 + $0x878] sm:$0xff] }
 0x27d   :  { %2175 = vmatprep.subr.bf16.mxu0 %v2174_v44  ;;  %2303 = vmatprep.subr.bf16.mxu1 %v2302_v45  ;;  %v2192_v44 = vpack.c.bf16 %v1191_v32, %v1185_v29  ;;  %v2320_v45 = vpack.c.bf16 %v1193_v37, %v1187_v36  ;;  %v2194_v48 = vpack.c.bf16 %v1204_v40, %v1198_v39  ;;  %v1248_v29 = vld [vmem:[#allocation11 + $0x9d8] sm:$0xff]  ;;  %v1254_v32 = vld [vmem:[#allocation11 + $0xa08] sm:$0xff]  ;;  %v1245_v36 = vld [vmem:[#allocation11 + $0x9c0] sm:$0xff] }
 0x27e   :  { %v1251_v37 = vld [vmem:[#allocation11 + $0x9f0] sm:$0xff]  ;;  %v2338_v40 = vpack.c.bf16 %v1254_v32, %v1248_v29  ;;  %v1301_v32 = vld [vmem:[#allocation11 + $0xb80] sm:$0xff] }
 0x27f   :  { %v1295_v29 = vld [vmem:[#allocation11 + $0xb50] sm:$0xff] }
 0x280   :  { %2177 = vmatpush1.bf16.msra.mxu0 %v2176_v52  ;;  %2305 = vmatpush1.bf16.msra.mxu1 %v2304_v53  ;;  %v1210_v52 = vld [vmem:[#allocation11 + $0x8a8] sm:$0xff]  ;;  %v1216_v53 = vld [vmem:[#allocation11 + $0x8d8] sm:$0xff] }
 0x281   :  { %2179 = vmatprep.subr.bf16.mxu0 %v2178_v31  ;;  %2307 = vmatprep.subr.bf16.mxu1 %v2306_v61  ;;  %v2196_v31 = vpack.c.bf16 %v1203_v47, %v1197_v46  ;;  %v2324_v61 = vpack.c.bf16 %v1205_v51, %v1199_v50  ;;  %v2198_v0 = vpack.c.bf16 %v1216_v53, %v1210_v52  ;;  %v1260_v46 = vld [vmem:[#allocation11 + $0xa38] sm:$0xff]  ;;  %v1266_v47 = vld [vmem:[#allocation11 + $0xa68] sm:$0xff]  ;;  %v1257_v50 = vld [vmem:[#allocation11 + $0xa20] sm:$0xff] }
 0x282   :  { %v1263_v51 = vld [vmem:[#allocation11 + $0xa50] sm:$0xff]  ;;  %v2342_v53 = vpack.c.bf16 %v1266_v47, %v1260_v46  ;;  %v1313_v47 = vld [vmem:[#allocation11 + $0xbe0] sm:$0xff] }
 0x283   :  { %v1307_v46 = vld [vmem:[#allocation11 + $0xbb0] sm:$0xff] }
 0x284   :  { %2181 = vmatpush1.bf16.msra.mxu0 %v2180_v4  ;;  %2309 = vmatpush1.bf16.msra.mxu1 %v2308_v5  ;;  %v1222_v4 = vld [vmem:[#allocation11 + $0x908] sm:$0xff]  ;;  %v1228_v5 = vld [vmem:[#allocation11 + $0x938] sm:$0xff] }
 0x285   :  { %2183 = vmatprep.subr.bf16.mxu0 %v2182_v8  ;;  %2311 = vmatprep.subr.bf16.mxu1 %v2310_v9  ;;  %v2200_v8 = vpack.c.bf16 %v1215_v63, %v1209_v62  ;;  %v2328_v9 = vpack.c.bf16 %v1217_v3, %v1211_v2  ;;  %v2202_v13 = vpack.c.bf16 %v1228_v5, %v1222_v4  ;;  %v1272_v62 = vld [vmem:[#allocation11 + $0xa98] sm:$0xff]  ;;  %v1278_v63 = vld [vmem:[#allocation11 + $0xac8] sm:$0xff]  ;;  %v1269_v2 = vld [vmem:[#allocation11 + $0xa80] sm:$0xff] }
 0x286   :  { %v1275_v3 = vld [vmem:[#allocation11 + $0xab0] sm:$0xff]  ;;  %v2346_v5 = vpack.c.bf16 %v1278_v63, %v1272_v62 }
 0x288   :  { %2185 = vmatpush1.bf16.msra.mxu0 %v2184_v17  ;;  %2313 = vmatpush1.bf16.msra.mxu1 %v2312_v18  ;;  %v1234_v17 = vld [vmem:[#allocation11 + $0x968] sm:$0xff]  ;;  %v1240_v18 = vld [vmem:[#allocation11 + $0x998] sm:$0xff] }
 0x289   :  { %2187 = vmatprep.subr.bf16.mxu0 %v2186_v20  ;;  %2315 = vmatprep.subr.bf16.mxu1 %v2314_v34  ;;  %v2204_v20 = vpack.c.bf16 %v1227_v12, %v1221_v11  ;;  %v2332_v34 = vpack.c.bf16 %v1229_v16, %v1223_v15  ;;  %v2206_v23 = vpack.c.bf16 %v1240_v18, %v1234_v17  ;;  %v1284_v11 = vld [vmem:[#allocation11 + $0xaf8] sm:$0xff]  ;;  %v1290_v12 = vld [vmem:[#allocation11 + $0xb28] sm:$0xff]  ;;  %v1281_v15 = vld [vmem:[#allocation11 + $0xae0] sm:$0xff] }
 0x28a   :  { %v1287_v16 = vld [vmem:[#allocation11 + $0xb10] sm:$0xff]  ;;  %v2350_v18 = vpack.c.bf16 %v1290_v12, %v1284_v11 }
 0x28c   :  { %2189 = vmatpush1.bf16.msra.mxu0 %v2188_v27  ;;  %2317 = vmatpush1.bf16.msra.mxu1 %v2316_v28  ;;  %v1246_v27 = vld [vmem:[#allocation11 + $0x9c8] sm:$0xff]  ;;  %v1252_v28 = vld [vmem:[#allocation11 + $0x9f8] sm:$0xff] }
 0x28d   :  { %2191 = vmatprep.subr.bf16.mxu0 %v2190_v33  ;;  %2319 = vmatprep.subr.bf16.mxu1 %v2318_v35  ;;  %v2208_v33 = vpack.c.bf16 %v1239_v22, %v1233_v21  ;;  %v2336_v35 = vpack.c.bf16 %v1241_v26, %v1235_v25  ;;  %v2210_v39 = vpack.c.bf16 %v1252_v28, %v1246_v27  ;;  %v1296_v21 = vld [vmem:[#allocation11 + $0xb58] sm:$0xff]  ;;  %v1302_v22 = vld [vmem:[#allocation11 + $0xb88] sm:$0xff]  ;;  %v1293_v25 = vld [vmem:[#allocation11 + $0xb40] sm:$0xff] }
 0x28e   :  { %v1299_v26 = vld [vmem:[#allocation11 + $0xb70] sm:$0xff]  ;;  %v2354_v28 = vpack.c.bf16 %v1302_v22, %v1296_v21  ;;  %v974_v21 = vld [vmem:[#allocation11 + $0x148] sm:$0xff]  ;;  %v980_v22 = vld [vmem:[#allocation11 + $0x178] sm:$0xff] }
 0x290   :  { %2193 = vmatpush1.bf16.msra.mxu0 %v2192_v44  ;;  %2321 = vmatpush1.bf16.msra.mxu1 %v2320_v45  ;;  %v1258_v44 = vld [vmem:[#allocation11 + $0xa28] sm:$0xff]  ;;  %v1264_v45 = vld [vmem:[#allocation11 + $0xa58] sm:$0xff] }
 0x291   :  { %2195 = vmatprep.subr.bf16.mxu0 %v2194_v48  ;;  %2323 = vmatprep.subr.bf16.mxu1 %v2322_v49  ;;  %v2212_v48 = vpack.c.bf16 %v1251_v37, %v1245_v36  ;;  %v2340_v49 = vpack.c.bf16 %v1253_v42, %v1247_v41  ;;  %v2214_v52 = vpack.c.bf16 %v1264_v45, %v1258_v44  ;;  %v1308_v36 = vld [vmem:[#allocation11 + $0xbb8] sm:$0xff]  ;;  %v1314_v37 = vld [vmem:[#allocation11 + $0xbe8] sm:$0xff]  ;;  %v1305_v41 = vld [vmem:[#allocation11 + $0xba0] sm:$0xff] }
 0x292   :  { %v1311_v44 = vld [vmem:[#allocation11 + $0xbd0] sm:$0xff]  ;;  %v2358_v45 = vpack.c.bf16 %v1314_v37, %v1308_v36  ;;  %v1004_v36 = vld [vmem:[#allocation11 + $0x238] sm:$0xff] }
 0x294   :  { %2197 = vmatpush1.bf16.msra.mxu0 %v2196_v31  ;;  %2325 = vmatpush1.bf16.msra.mxu1 %v2324_v61  ;;  %v1270_v31 = vld [vmem:[#allocation11 + $0xa88] sm:$0xff]  ;;  %v1276_v61 = vld [vmem:[#allocation11 + $0xab8] sm:$0xff] }
 0x295   :  { %2199 = vmatprep.subr.bf16.mxu0 %v2198_v0  ;;  %2327 = vmatprep.subr.bf16.mxu1 %v2326_v1  ;;  %v2216_v0 = vpack.c.bf16 %v1263_v51, %v1257_v50  ;;  %v2344_v1 = vpack.c.bf16 %v1265_v60, %v1259_v56  ;;  %v2218_v4 = vpack.c.bf16 %v1276_v61, %v1270_v31 }
 0x296   :  { %v2232_v50 = vpack.c.bf16 %v1311_v44, %v1305_v41  ;;  %v2360_v51 = vpack.c.bf16 %v1313_v47, %v1307_v46  ;;  %v616_v56 = vrot.slane %v2910_v10, %v2892_v59  ;;  %v1003_v41 = vld [vmem:[#allocation11 + $0x230] sm:$0xff]  ;;  %v1016_v44 = vld [vmem:[#allocation11 + $0x298] sm:$0xff]  ;;  %v1009_v47 = vld [vmem:[#allocation11 + $0x260] sm:$0xff] }
 0x298   :  { %2201 = vmatpush1.bf16.msra.mxu0 %v2200_v8  ;;  %2329 = vmatpush1.bf16.msra.mxu1 %v2328_v9  ;;  %v1282_v8 = vld [vmem:[#allocation11 + $0xae8] sm:$0xff]  ;;  %v1288_v9 = vld [vmem:[#allocation11 + $0xb18] sm:$0xff] }
 0x299   :  { %2203 = vmatprep.subr.bf16.mxu0 %v2202_v13  ;;  %2331 = vmatprep.subr.bf16.mxu1 %v2330_v14  ;;  %v2220_v13 = vpack.c.bf16 %v1275_v3, %v1269_v2  ;;  %v2348_v14 = vpack.c.bf16 %v1277_v7, %v1271_v6  ;;  %v2222_v17 = vpack.c.bf16 %v1288_v9, %v1282_v8  ;;  %v943_v6 = vld [vmem:[#allocation11 + $0x50] sm:$0xff]  ;;  %v950_v8 = vld [vmem:[#allocation11 + $0x88] sm:$0xff]  ;;  %v956_v9 = vld [vmem:[#allocation11 + $0xb8] sm:$0xff] }
 0x29c   :  { %2205 = vmatpush1.bf16.msra.mxu0 %v2204_v20  ;;  %2333 = vmatpush1.bf16.msra.mxu1 %v2332_v34  ;;  %v1294_v20 = vld [vmem:[#allocation11 + $0xb48] sm:$0xff]  ;;  %v1300_v34 = vld [vmem:[#allocation11 + $0xb78] sm:$0xff] }
 0x29d   :  { %2207 = vmatprep.subr.bf16.mxu0 %v2206_v23  ;;  %2335 = vmatprep.subr.bf16.mxu1 %v2334_v24  ;;  %v2224_v23 = vpack.c.bf16 %v1287_v16, %v1281_v15  ;;  %v2352_v24 = vpack.c.bf16 %v1289_v30, %v1283_v19  ;;  %v2226_v27 = vpack.c.bf16 %v1300_v34, %v1294_v20  ;;  %v949_v15 = vld [vmem:[#allocation11 + $0x80] sm:$0xff]  ;;  %v955_v16 = vld [vmem:[#allocation11 + $0xb0] sm:$0xff] }
 0x29e   :  { %v2368_v19 = vpack.c.bf16 %v955_v16, %v949_v15  ;;  %v961_v20 = vld [vmem:[#allocation11 + $0xe0] sm:$0xff]  ;;  %v967_v34 = vld [vmem:[#allocation11 + $0x110] sm:$0xff]  ;;  %v1070_v15 = vld [vmem:[#allocation11 + $0x448] sm:$0xff] }
 0x29f   :  { %v1076_v16 = vld [vmem:[#allocation11 + $0x478] sm:$0xff] }
 0x2a0   :  { %2209 = vmatpush1.bf16.msra.mxu0 %v2208_v33  ;;  %2337 = vmatpush1.bf16.msra.mxu1 %v2336_v35  ;;  %v1306_v33 = vld [vmem:[#allocation11 + $0xba8] sm:$0xff]  ;;  %v1312_v35 = vld [vmem:[#allocation11 + $0xbd8] sm:$0xff] }
 0x2a1   :  { %2211 = vmatprep.subr.bf16.mxu0 %v2210_v39  ;;  %2339 = vmatprep.subr.bf16.mxu1 %v2338_v40  ;;  %v2228_v39 = vpack.c.bf16 %v1299_v26, %v1293_v25  ;;  %v2356_v40 = vpack.c.bf16 %v1301_v32, %v1295_v29  ;;  %v2230_v42 = vpack.c.bf16 %v1312_v35, %v1306_v33  ;;  %v973_v25 = vld [vmem:[#allocation11 + $0x140] sm:$0xff]  ;;  %v979_v26 = vld [vmem:[#allocation11 + $0x170] sm:$0xff]  ;;  %v998_v35 = vld [vmem:[#allocation11 + $0x208] sm:$0xff] }
 0x2a2   :  { %v2376_v29 = vpack.c.bf16 %v979_v26, %v973_v25  ;;  %v991_v33 = vld [vmem:[#allocation11 + $0x1d0] sm:$0xff]  ;;  %v1094_v25 = vld [vmem:[#allocation11 + $0x508] sm:$0xff]  ;;  %v1100_v26 = vld [vmem:[#allocation11 + $0x538] sm:$0xff] }
 0x2a4   :  { %2213 = vmatpush1.bf16.msra.mxu0 %v2212_v48  ;;  %2341 = vmatpush1.bf16.msra.mxu1 %v2340_v49  ;;  %v938_v48 = vld [vmem:[#allocation11 + $0x28] sm:$0xff]  ;;  %v944_v49 = vld [vmem:[#allocation11 + $0x58] sm:$0xff] }
 0x2a5   :  { %2215 = vmatprep.subr.bf16.mxu0 %v2214_v52  ;;  %2343 = vmatprep.subr.bf16.mxu1 %v2342_v53  ;;  %v2362_v52 = vpack.c.bf16 %v944_v49, %v938_v48  ;;  %v612_v53 = vrot.slane %v2910_v10, %v2889_v58  ;;  %v1015_v48 = vld [vmem:[#allocation11 + $0x290] sm:$0xff]  ;;  %v1022_v49 = vld [vmem:[#allocation11 + $0x2c8] sm:$0xff] }
 0x2a8   :  { %2217 = vmatpush1.bf16.msra.mxu0 %v2216_v0  ;;  %2345 = vmatpush1.bf16.msra.mxu1 %v2344_v1 }
 0x2a9   :  { %2219 = vmatprep.subr.bf16.mxu0 %v2218_v4  ;;  %2347 = vmatprep.subr.bf16.mxu1 %v2346_v5  ;;  %v937_v5 = vld [vmem:[#allocation11 + $0x20] sm:$0xff] }
 0x2aa   :  { %v2364_v12 = vpack.c.bf16 %v943_v6, %v937_v5  ;;  %v1045_v5 = vld [vmem:[#allocation11 + $0x380] sm:$0xff]  ;;  %v1051_v6 = vld [vmem:[#allocation11 + $0x3b0] sm:$0xff] }
 0x2ac   :  { %2221 = vmatpush1.bf16.msra.mxu0 %v2220_v13  ;;  %2349 = vmatpush1.bf16.msra.mxu1 %v2348_v14  ;;  %v2366_v14 = vpack.c.bf16 %v956_v9, %v950_v8  ;;  %v1064_v8 = vld [vmem:[#allocation11 + $0x418] sm:$0xff]  ;;  %v2400_v9 = vpack.c.bf16 %v1051_v6, %v1045_v5  ;;  %v1166_v5 = vld [vmem:[#allocation11 + $0x748] sm:$0xff] }
 0x2ad   :  { %2223 = vmatprep.subr.bf16.mxu0 %v2222_v17  ;;  %2351 = vmatprep.subr.bf16.mxu1 %v2350_v18  ;;  %v962_v17 = vld [vmem:[#allocation11 + $0xe8] sm:$0xff]  ;;  %v968_v18 = vld [vmem:[#allocation11 + $0x118] sm:$0xff] }
 0x2ae   :  { %v2370_v30 = vpack.c.bf16 %v968_v18, %v962_v17  ;;  %v2406_v18 = vpack.c.bf16 %v1076_v16, %v1070_v15  ;;  %v1172_v6 = vld [vmem:[#allocation11 + $0x778] sm:$0xff]  ;;  %v1183_v16 = vld [vmem:[#allocation11 + $0x7d0] sm:$0xff] }
 0x2b0   :  { %2225 = vmatpush1.bf16.msra.mxu0 %v2224_v23  ;;  %2353 = vmatpush1.bf16.msra.mxu1 %v2352_v24  ;;  %v2372_v23 = vpack.c.bf16 %v967_v34, %v961_v20  ;;  %v2374_v24 = vpack.c.bf16 %v980_v22, %v974_v21  ;;  %v1082_v20 = vld [vmem:[#allocation11 + $0x4a8] sm:$0xff]  ;;  %v1088_v34 = vld [vmem:[#allocation11 + $0x4d8] sm:$0xff] }
 0x2b1   :  { %2227 = vmatprep.subr.bf16.mxu0 %v2226_v27  ;;  %2355 = vmatprep.subr.bf16.mxu1 %v2354_v28  ;;  %v986_v27 = vld [vmem:[#allocation11 + $0x1a8] sm:$0xff]  ;;  %v992_v28 = vld [vmem:[#allocation11 + $0x1d8] sm:$0xff]  ;;  %v2410_v22 = vpack.c.bf16 %v1088_v34, %v1082_v20  ;;  %v1189_v20 = vld [vmem:[#allocation11 + $0x800] sm:$0xff] }
 0x2b2   :  { %v2378_v32 = vpack.c.bf16 %v992_v28, %v986_v27  ;;  %v2414_v28 = vpack.c.bf16 %v1100_v26, %v1094_v25  ;;  %v1195_v34 = vld [vmem:[#allocation11 + $0x830] sm:$0xff]  ;;  %v1201_v25 = vld [vmem:[#allocation11 + $0x860] sm:$0xff] }
 0x2b3   :  { %v1207_v26 = vld [vmem:[#allocation11 + $0x890] sm:$0xff] }
 0x2b4   :  { %2229 = vmatpush1.bf16.msra.mxu0 %v2228_v39  ;;  %2357 = vmatpush1.bf16.msra.mxu1 %v2356_v40  ;;  %v2382_v39 = vpack.c.bf16 %v1004_v36, %v998_v35  ;;  %v997_v40 = vld [vmem:[#allocation11 + $0x200] sm:$0xff] }
 0x2b5   :  { %2231 = vmatprep.subr.bf16.mxu0 %v2230_v42  ;;  %2359 = vmatprep.subr.bf16.mxu1 %v2358_v45  ;;  %v1010_v42 = vld [vmem:[#allocation11 + $0x268] sm:$0xff]  ;;  %v2384_v45 = vpack.c.bf16 %v1003_v41, %v997_v40  ;;  %v1124_v41 = vld [vmem:[#allocation11 + $0x5f8] sm:$0xff] }
 0x2b6   :  { %v2386_v46 = vpack.c.bf16 %v1016_v44, %v1010_v42  ;;  %v1118_v40 = vld [vmem:[#allocation11 + $0x5c8] sm:$0xff] }
 0x2b7   :  { %v2422_v44 = vpack.c.bf16 %v1124_v41, %v1118_v40  ;;  %v1225_v40 = vld [vmem:[#allocation11 + $0x920] sm:$0xff]  ;;  %v1231_v41 = vld [vmem:[#allocation11 + $0x950] sm:$0xff] }
 0x2b8   :  { %2233 = vmatpush1.bf16.msra.mxu0 %v2232_v50  ;;  %2361 = vmatpush1.bf16.msra.mxu1 %v2360_v51  ;;  %v1028_v50 = vld [vmem:[#allocation11 + $0x2f8] sm:$0xff]  ;;  %v2388_v51 = vpack.c.bf16 %v1015_v48, %v1009_v47  ;;  %v1130_v47 = vld [vmem:[#allocation11 + $0x628] sm:$0xff] }
 0x2b9   :  { %2363 = vmatprep.subr.bf16.mxu0 %v2362_v52  ;;  %v2390_v52 = vpack.c.bf16 %v1028_v50, %v1022_v49  ;;  %v1136_v48 = vld [vmem:[#allocation11 + $0x658] sm:$0xff] }
 0x2ba   :  { %v2426_v50 = vpack.c.bf16 %v1136_v48, %v1130_v47  ;;  %v1237_v47 = vld [vmem:[#allocation11 + $0x980] sm:$0xff]  ;;  %v1243_v48 = vld [vmem:[#allocation11 + $0x9b0] sm:$0xff] }
 0x2d8   :  { %v900_v60 = vpop.f32.mrb[4].mxu1 }
 0x2d9   :  { %v2494_v31 = vadd.f32 %v900_v60, %v612_v53  ;;  %v902_v61 = vpop.f32.mrb[5].mxu1  ;;  %v1021_v53 = vld [vmem:[#allocation11 + $0x2c0] sm:$0xff]  ;;  %v1034_v60 = vld [vmem:[#allocation11 + $0x328] sm:$0xff] }
 0x2da   :  { %v2495_v62 = vadd.f32 %v902_v61, %v616_v56  ;;  %v1027_v56 = vld [vmem:[#allocation11 + $0x2f0] sm:$0xff] }
 0x2db   :  { %v1816_v63 = vmul.f32 -1.442695, %v2494_v31  ;;  %v2392_v61 = vpack.c.bf16 %v1027_v56, %v1021_v53  ;;  %v1142_v53 = vld [vmem:[#allocation11 + $0x688] sm:$0xff]  ;;  %v1148_v56 = vld [vmem:[#allocation11 + $0x6b8] sm:$0xff] }
 0x2dc   :  { %v1817_v0 = vmul.f32 -1.442695, %v2495_v62 }
 0x2dd   :  { %2547 = vpow2.f32 %v1816_v63  ;;  %v1033_v63 = vld [vmem:[#allocation11 + $0x320] sm:$0xff] }
 0x2de   :  { %2549 = vpow2.f32 %v1817_v0  ;;  %v1039_v0 = vld [vmem:[#allocation11 + $0x350] sm:$0xff] }
 0x2e7   :  { %v2548_v1 = vpop.eup %2547 }
 0x2e8   :  { %v2550_v2 = vpop.eup %2549  ;;  %v919_v3 = vadd.f32 1.0, %v2548_v1  ;;  %v1046_v1 = vld [vmem:[#allocation11 + $0x388] sm:$0xff] }
 0x2e9   :  { %v920_v4 = vadd.f32 1.0, %v2550_v2  ;;  %v1052_v2 = vld [vmem:[#allocation11 + $0x3b8] sm:$0xff] }
 0x2ea   :  { %2551 = vrcp.f32 %v919_v3  ;;  %v2396_v3 = vpack.c.bf16 %v1039_v0, %v1033_v63  ;;  %v1154_v63 = vld [vmem:[#allocation11 + $0x6e8] sm:$0xff]  ;;  %v1160_v0 = vld [vmem:[#allocation11 + $0x718] sm:$0xff] }
 0x2eb   :  { %2553 = vrcp.f32 %v920_v4  ;;  %v2398_v4 = vpack.c.bf16 %v1052_v2, %v1046_v1  ;;  %v2434_v2 = vpack.c.bf16 %v1160_v0, %v1154_v63  ;;  %v1261_v63 = vld [vmem:[#allocation11 + $0xa40] sm:$0xff]  ;;  %v1267_v0 = vld [vmem:[#allocation11 + $0xa70] sm:$0xff] }
 0x2f4   :  { %v2552_v7 = vpop.eup %2551 }
 0x2f5   :  { %v2554_v10 = vpop.eup %2553  ;;  %v2930_v13 = vmul.f32 %v2552_v7, %v2494_v31  ;;  %v1040_v31 = vld [vmem:[#allocation11 + $0x358] sm:$0xff]  ;;  %v1058_v7 = vld [vmem:[#allocation11 + $0x3e8] sm:$0xff] }
 0x2f6   :  { %v2928_v11 = vmul.f32 %v2554_v10, %v2495_v62  ;;  %v2394_v62 = vpack.c.bf16 %v1040_v31, %v1034_v60  ;;  %v2402_v10 = vpack.c.bf16 %v1064_v8, %v1058_v7  ;;  %v2430_v31 = vpack.c.bf16 %v1148_v56, %v1142_v53  ;;  %v1249_v53 = vld [vmem:[#allocation11 + $0x9e0] sm:$0xff]  ;;  %v1255_v56 = vld [vmem:[#allocation11 + $0xa10] sm:$0xff] }
 0x2f7   :  { %v2438_v8 = vpack.c.bf16 %v1172_v6, %v1166_v5  ;;  %v1273_v5 = vld [vmem:[#allocation11 + $0xaa0] sm:$0xff]  ;;  %v1279_v6 = vld [vmem:[#allocation11 + $0xad0] sm:$0xff] }
 0x2f8   :  { %1484 = vmatprep.mubr.f32.mxu0 %v2928_v11  ;;  %1626 = vmatprep.mubr.f32.mxu1 %v2928_v11 }
 0x2f9   :  { %1485 = vmatmul.mubr.f32.vlgmr.msra.gmra.mrb[4].mxu0 %v2930_v13  ;;  %1627 = vmatmul.mubr.f32.vlgmr.msra.gmra.mrb[6].mxu1 %v2930_v13 }
 0x2fa   :  { %2365 = vmatpush1.bf16.msra.mxu0 %v2364_v12  ;;  %1697 = vmatprep.mubr.f32.mxu0 %v2916_v38  ;;  %v985_v38 = vld [vmem:[#allocation11 + $0x1a0] sm:$0xff] }
 0x2fb   :  { %2367 = vmatprep.subr.bf16.mxu0 %v2366_v14  ;;  %v2380_v37 = vpack.c.bf16 %v991_v33, %v985_v38  ;;  %v1057_v12 = vld [vmem:[#allocation11 + $0x3e0] sm:$0xff]  ;;  %v1063_v14 = vld [vmem:[#allocation11 + $0x410] sm:$0xff]  ;;  %v1106_v38 = vld [vmem:[#allocation11 + $0x568] sm:$0xff] }
 0x2fc   :  { %v2404_v17 = vpack.c.bf16 %v1063_v14, %v1057_v12  ;;  %v1112_v33 = vld [vmem:[#allocation11 + $0x598] sm:$0xff]  ;;  %v1178_v12 = vld [vmem:[#allocation11 + $0x7a8] sm:$0xff] }
 0x2fd   :  { %v2418_v36 = vpack.c.bf16 %v1112_v33, %v1106_v38  ;;  %v1184_v14 = vld [vmem:[#allocation11 + $0x7d8] sm:$0xff]  ;;  %v1213_v38 = vld [vmem:[#allocation11 + $0x8c0] sm:$0xff]  ;;  %v1219_v33 = vld [vmem:[#allocation11 + $0x8f0] sm:$0xff] }
 0x2fe   :  { %2369 = vmatpush1.bf16.msra.mxu0 %v2368_v19  ;;  %v1069_v19 = vld [vmem:[#allocation11 + $0x440] sm:$0xff]  ;;  %v2442_v15 = vpack.c.bf16 %v1184_v14, %v1178_v12  ;;  %v1291_v14 = vld [vmem:[#allocation11 + $0xb30] sm:$0xff] }
 0x2ff   :  { %2371 = vmatprep.subr.bf16.mxu0 %v2370_v30  ;;  %v1075_v30 = vld [vmem:[#allocation11 + $0x470] sm:$0xff]  ;;  %v1285_v12 = vld [vmem:[#allocation11 + $0xb00] sm:$0xff] }
 0x300   :  { %v2408_v21 = vpack.c.bf16 %v1075_v30, %v1069_v19 }
 0x302   :  { %2373 = vmatpush1.bf16.msra.mxu0 %v2372_v23  ;;  %v1081_v23 = vld [vmem:[#allocation11 + $0x4a0] sm:$0xff] }
 0x303   :  { %2375 = vmatprep.subr.bf16.mxu0 %v2374_v24  ;;  %v1087_v24 = vld [vmem:[#allocation11 + $0x4d0] sm:$0xff] }
 0x304   :  { %v2412_v27 = vpack.c.bf16 %v1087_v24, %v1081_v23  ;;  %v2448_v23 = vpack.c.bf16 %v1195_v34, %v1189_v20 }
 0x306   :  { %2377 = vmatpush1.bf16.msra.mxu0 %v2376_v29  ;;  %v1093_v29 = vld [vmem:[#allocation11 + $0x500] sm:$0xff] }
 0x307   :  { %2379 = vmatprep.subr.bf16.mxu0 %v2378_v32  ;;  %v1099_v32 = vld [vmem:[#allocation11 + $0x530] sm:$0xff] }
 0x308   :  { %v2416_v35 = vpack.c.bf16 %v1099_v32, %v1093_v29  ;;  %v2452_v29 = vpack.c.bf16 %v1207_v26, %v1201_v25 }
 0x30a   :  { %2381 = vmatpush1.bf16.msra.mxu0 %v2380_v37  ;;  %v1105_v37 = vld [vmem:[#allocation11 + $0x560] sm:$0xff] }
 0x30b   :  { %2383 = vmatprep.subr.bf16.mxu0 %v2382_v39  ;;  %v1111_v39 = vld [vmem:[#allocation11 + $0x590] sm:$0xff] }
 0x30c   :  { %v2420_v42 = vpack.c.bf16 %v1111_v39, %v1105_v37  ;;  %v2456_v37 = vpack.c.bf16 %v1219_v33, %v1213_v38 }
 0x30e   :  { %2385 = vmatpush1.bf16.msra.mxu0 %v2384_v45  ;;  %v1117_v45 = vld [vmem:[#allocation11 + $0x5c0] sm:$0xff] }
 0x30f   :  { %2387 = vmatprep.subr.bf16.mxu0 %v2386_v46  ;;  %v1123_v46 = vld [vmem:[#allocation11 + $0x5f0] sm:$0xff] }
 0x310   :  { %v2424_v49 = vpack.c.bf16 %v1123_v46, %v1117_v45  ;;  %v2460_v45 = vpack.c.bf16 %v1231_v41, %v1225_v40 }
 0x312   :  { %2389 = vmatpush1.bf16.msra.mxu0 %v2388_v51  ;;  %v1129_v51 = vld [vmem:[#allocation11 + $0x620] sm:$0xff] }
 0x313   :  { %2391 = vmatprep.subr.bf16.mxu0 %v2390_v52  ;;  %v1135_v52 = vld [vmem:[#allocation11 + $0x650] sm:$0xff] }
 0x314   :  { %v2428_v60 = vpack.c.bf16 %v1135_v52, %v1129_v51  ;;  %v2464_v51 = vpack.c.bf16 %v1243_v48, %v1237_v47 }
 0x316   :  { %2393 = vmatpush1.bf16.msra.mxu0 %v2392_v61  ;;  %v1141_v61 = vld [vmem:[#allocation11 + $0x680] sm:$0xff] }
 0x317   :  { %2395 = vmatprep.subr.bf16.mxu0 %v2394_v62  ;;  %v1147_v62 = vld [vmem:[#allocation11 + $0x6b0] sm:$0xff] }
 0x318   :  { %v2432_v1 = vpack.c.bf16 %v1147_v62, %v1141_v61  ;;  %v2468_v61 = vpack.c.bf16 %v1255_v56, %v1249_v53 }
 0x31a   :  { %2397 = vmatpush1.bf16.msra.mxu0 %v2396_v3  ;;  %v1153_v3 = vld [vmem:[#allocation11 + $0x6e0] sm:$0xff] }
 0x31b   :  { %2399 = vmatprep.subr.bf16.mxu0 %v2398_v4  ;;  %v1159_v4 = vld [vmem:[#allocation11 + $0x710] sm:$0xff] }
 0x31c   :  { %v2436_v7 = vpack.c.bf16 %v1159_v4, %v1153_v3  ;;  %v2472_v3 = vpack.c.bf16 %v1267_v0, %v1261_v63 }
 0x31e   :  { %2401 = vmatpush1.bf16.msra.mxu0 %v2400_v9  ;;  %v1165_v9 = vld [vmem:[#allocation11 + $0x740] sm:$0xff] }
 0x31f   :  { %2403 = vmatprep.subr.bf16.mxu0 %v2402_v10  ;;  %v1171_v10 = vld [vmem:[#allocation11 + $0x770] sm:$0xff] }
 0x322   :  { %2405 = vmatpush1.bf16.msra.mxu0 %v2404_v17  ;;  %v1190_v17 = vld [vmem:[#allocation11 + $0x808] sm:$0xff] }
 0x323   :  { %2407 = vmatprep.subr.bf16.mxu0 %v2406_v18  ;;  %v1196_v18 = vld [vmem:[#allocation11 + $0x838] sm:$0xff] }
 0x324   :  { %v2446_v30 = vpack.c.bf16 %v1196_v18, %v1190_v17  ;;  %v1297_v17 = vld [vmem:[#allocation11 + $0xb60] sm:$0xff]  ;;  %v1303_v18 = vld [vmem:[#allocation11 + $0xb90] sm:$0xff] }
 0x325   :  { %v2484_v20 = vpack.c.bf16 %v1303_v18, %v1297_v17 }
 0x326   :  { %2409 = vmatpush1.bf16.msra.mxu0 %v2408_v21  ;;  %v1202_v21 = vld [vmem:[#allocation11 + $0x868] sm:$0xff] }
 0x327   :  { %2411 = vmatprep.subr.bf16.mxu0 %v2410_v22  ;;  %v1208_v22 = vld [vmem:[#allocation11 + $0x898] sm:$0xff] }
 0x328   :  { %v2450_v24 = vpack.c.bf16 %v1208_v22, %v1202_v21  ;;  %v1309_v21 = vld [vmem:[#allocation11 + $0xbc0] sm:$0xff]  ;;  %v1315_v22 = vld [vmem:[#allocation11 + $0xbf0] sm:$0xff] }
 0x32a   :  { %2413 = vmatpush1.bf16.msra.mxu0 %v2412_v27  ;;  %v1214_v27 = vld [vmem:[#allocation11 + $0x8c8] sm:$0xff] }
 0x32b   :  { %2415 = vmatprep.subr.bf16.mxu0 %v2414_v28  ;;  %v1220_v28 = vld [vmem:[#allocation11 + $0x8f8] sm:$0xff] }
 0x32c   :  { %v2454_v32 = vpack.c.bf16 %v1220_v28, %v1214_v27 }
 0x32e   :  { %2417 = vmatpush1.bf16.msra.mxu0 %v2416_v35  ;;  %v1226_v35 = vld [vmem:[#allocation11 + $0x928] sm:$0xff] }
 0x32f   :  { %2419 = vmatprep.subr.bf16.mxu0 %v2418_v36  ;;  %v1232_v36 = vld [vmem:[#allocation11 + $0x958] sm:$0xff] }
 0x330   :  { %v2458_v39 = vpack.c.bf16 %v1232_v36, %v1226_v35 }
 0x332   :  { %2421 = vmatpush1.bf16.msra.mxu0 %v2420_v42  ;;  %v1238_v42 = vld [vmem:[#allocation11 + $0x988] sm:$0xff] }
 0x333   :  { %2423 = vmatprep.subr.bf16.mxu0 %v2422_v44  ;;  %v1244_v44 = vld [vmem:[#allocation11 + $0x9b8] sm:$0xff] }
 0x334   :  { %v2462_v46 = vpack.c.bf16 %v1244_v44, %v1238_v42 }
 0x336   :  { %2425 = vmatpush1.bf16.msra.mxu0 %v2424_v49  ;;  %v1250_v49 = vld [vmem:[#allocation11 + $0x9e8] sm:$0xff] }
 0x337   :  { %2427 = vmatprep.subr.bf16.mxu0 %v2426_v50  ;;  %v1256_v50 = vld [vmem:[#allocation11 + $0xa18] sm:$0xff] }
 0x338   :  { %v2466_v52 = vpack.c.bf16 %v1256_v50, %v1250_v49 }
 0x339   :  { %1698 = vmatmul.mubr.f32.vlgmr.msra.gmra.mrb[6].mxu0 %v2918_v43  ;;  %v2440_v43 = vpack.c.bf16 %v1171_v10, %v1165_v9  ;;  %v2476_v9 = vpack.c.bf16 %v1279_v6, %v1273_v5 }
 0x33a   :  { %2429 = vmatpush1.bf16.msra.mxu0 %v2428_v60  ;;  %1768 = vmatprep.mubr.f32.mxu0 %v2928_v11  ;;  %v1177_v11 = vld [vmem:[#allocation11 + $0x7a0] sm:$0xff]  ;;  %v1262_v60 = vld [vmem:[#allocation11 + $0xa48] sm:$0xff] }
 0x33b   :  { %2431 = vmatprep.subr.bf16.mxu0 %v2430_v31  ;;  %v2444_v19 = vpack.c.bf16 %v1183_v16, %v1177_v11  ;;  %v1268_v31 = vld [vmem:[#allocation11 + $0xa78] sm:$0xff]  ;;  %v2480_v11 = vpack.c.bf16 %v1291_v14, %v1285_v12 }
 0x33c   :  { %v2470_v62 = vpack.c.bf16 %v1268_v31, %v1262_v60 }
 0x33e   :  { %2433 = vmatpush1.bf16.msra.mxu0 %v2432_v1  ;;  %v1274_v1 = vld [vmem:[#allocation11 + $0xaa8] sm:$0xff] }
 0x33f   :  { %2435 = vmatprep.subr.bf16.mxu0 %v2434_v2  ;;  %v1280_v2 = vld [vmem:[#allocation11 + $0xad8] sm:$0xff] }
 0x340   :  { %v2474_v4 = vpack.c.bf16 %v1280_v2, %v1274_v1 }
 0x342   :  { %2437 = vmatpush1.bf16.msra.mxu0 %v2436_v7  ;;  %v1286_v7 = vld [vmem:[#allocation11 + $0xb08] sm:$0xff] }
 0x343   :  { %2439 = vmatprep.subr.bf16.mxu0 %v2438_v8  ;;  %v1292_v8 = vld [vmem:[#allocation11 + $0xb38] sm:$0xff] }
 0x344   :  { %v2478_v10 = vpack.c.bf16 %v1292_v8, %v1286_v7 }
 0x346   :  { %2441 = vmatpush1.bf16.msra.mxu0 %v2440_v43  ;;  %v1298_v43 = vld [vmem:[#allocation11 + $0xb68] sm:$0xff] }
 0x347   :  { %2443 = vmatprep.subr.bf16.mxu0 %v2442_v15  ;;  %v1304_v15 = vld [vmem:[#allocation11 + $0xb98] sm:$0xff] }
 0x348   :  { %v2482_v16 = vpack.c.bf16 %v1304_v15, %v1298_v43 }
 0x34a   :  { %2445 = vmatpush1.bf16.msra.mxu0 %v2444_v19  ;;  %v1310_v19 = vld [vmem:[#allocation11 + $0xbc8] sm:$0xff] }
 0x34b   :  { %2447 = vmatprep.subr.bf16.mxu0 %v2446_v30  ;;  %v1316_v30 = vld [vmem:[#allocation11 + $0xbf8] sm:$0xff] }
 0x34c   :  { %v2486_v34 = vpack.c.bf16 %v1316_v30, %v1310_v19 }
 0x34e   :  { %2449 = vmatpush1.bf16.msra.mxu0 %v2448_v23  ;;  %v2488_v23 = vpack.c.bf16 %v1315_v22, %v1309_v21 }
 0x34f   :  { %2451 = vmatprep.subr.bf16.mxu0 %v2450_v24  ;;  %v1317_v24 = vld [vmem:[#allocation13] sm:$0x3f] }
 0x350   :  { %v1322_v25 = vrot.slane %v1317_v24, %v2883_v55  ;;  %v1330_v26 = vrot.slane %v1317_v24, %v2889_v58  ;;  %v1326_v27 = vrot.slane %v1317_v24, %v2886_v57  ;;  %v1334_v28 = vrot.slane %v1317_v24, %v2892_v59 }
 0x351   :  { %v1337_v55 = vsub.s32 4, %v2880_v54  ;;  %v1341_v58 = vsub.s32 5, %v2880_v54 }
 0x352   :  { %2453 = vmatpush1.bf16.msra.mxu0 %v2452_v29 }
 0x353   :  { %2455 = vmatprep.subr.bf16.mxu0 %v2454_v32  ;;  %v1342_v57 = vrot.slane %v1317_v24, %v1341_v58 }
 0x356   :  { %2457 = vmatpush1.bf16.msra.mxu0 %v2456_v37 }
 0x357   :  { %2459 = vmatprep.subr.bf16.mxu0 %v2458_v39 }
 0x35a   :  { %2461 = vmatpush1.bf16.msra.mxu0 %v2460_v45 }
 0x35b   :  { %2463 = vmatprep.subr.bf16.mxu0 %v2462_v46 }
 0x35e   :  { %2465 = vmatpush1.bf16.msra.mxu0 %v2464_v51 }
 0x35f   :  { %2467 = vmatprep.subr.bf16.mxu0 %v2466_v52 }
 0x362   :  { %2469 = vmatpush1.bf16.msra.mxu0 %v2468_v61 }
 0x363   :  { %2471 = vmatprep.subr.bf16.mxu0 %v2470_v62 }
 0x366   :  { %2473 = vmatpush1.bf16.msra.mxu0 %v2472_v3 }
 0x367   :  { %2475 = vmatprep.subr.bf16.mxu0 %v2474_v4 }
 0x36a   :  { %2477 = vmatpush1.bf16.msra.mxu0 %v2476_v9 }
 0x36b   :  { %2479 = vmatprep.subr.bf16.mxu0 %v2478_v10 }
 0x36e   :  { %2481 = vmatpush1.bf16.msra.mxu0 %v2480_v11 }
 0x36f   :  { %2483 = vmatprep.subr.bf16.mxu0 %v2482_v16 }
 0x372   :  { %2485 = vmatpush1.bf16.msra.mxu0 %v2484_v20 }
 0x373   :  { %2487 = vmatprep.subr.bf16.mxu0 %v2486_v34 }
 0x376   :  { %2489 = vmatpush1.bf16.msra.mxu0 %v2488_v23 }
 0x379   :  { %1769 = vmatmul.mubr.f32.vlgmr.msra.gmra.mrb[6].mxu0 %v2930_v13  ;;  %v1338_v13 = vrot.slane %v1317_v24, %v1337_v55 }
 0x3cc   :  { %v1486_v29 = vpop.f32.mrb[4].mxu0  ;;  %v1628_v32 = vpop.f32.mrb[6].mxu1 }
 0x3cd   :  { %v2496_v38 = vadd.f32 %v1486_v29, %v1322_v25  ;;  %v2498_v33 = vadd.f32 %v1628_v32, %v1330_v26  ;;  %v1488_v35 = vpop.f32.mrb[5].mxu0  ;;  %v1630_v36 = vpop.f32.mrb[7].mxu1 }
 0x3ce   :  { %v2497_v37 = vadd.f32 %v1488_v35, %v1326_v27  ;;  %v2499_v39 = vadd.f32 %v1630_v36, %v1334_v28 }
 0x3d0   :  { %v1781_v40 = vcombine.low %v2496_v38, %v2497_v37  ;;  %v1782_v41 = vcombine.low %v2498_v33, %v2499_v39 }
 0x3d2   :  { %1787 = vst [vmem:[#allocation14] sm:$0xff] %v1781_v40  ;;  %1788 = vst [vmem:[#allocation14 + $0x8] sm:$0xff] %v1782_v41 }
 0x44c   :  { %v1770_v42 = vpop.f32.mrb[6].mxu0 }
 0x44d   :  { %v2500_v59 = vadd.f32 %v1770_v42, %v1338_v13  ;;  %v1772_v44 = vpop.f32.mrb[7].mxu0 }
 0x44e   :  { %v2501_v45 = vadd.f32 %v1772_v44, %v1342_v57 }
 0x450   :  { %v1783_v46 = vcombine.low %v2500_v59, %v2501_v45 }
 0x452   :  { %1789 = vst [vmem:[#allocation14 + $0x10] sm:$0xff] %v1783_v46 }
 0x453   :  { %2720 = shalt.err (!%p2717_p4)
}
 0x454   :  { %s2721_s3 = scalar_lea.hbm %s2965_s7, 384 }
 0x455   :  { %p2722_p5 = scmp.ne.s32.totalorder %s2965_s7, %s2721_s3  ;;  %p2725_p6 = scmp.lt.u32.totalorder %s2721_s3, %s2965_s7 }
 0x457   :  { %p2727_p7 = pnand %p2725_p6, %p2722_p5 }
 0x459   :  { %2730 = shalt.err (!%p2727_p7)
}
 0x45a   :  { %1799 = dma.vmem_to_hbm [thread:$0]  %s1797_s10, 384, %s2965_s7, [#allocation4]  }
 0x45b   :  { %2739 = dma.done.wait [#allocation4], 384  }
 0x45c   :  { %2740 = vsyncadd [#allocation4], 4294966912 }
 0x45d   :  { %1803 = vsyncpa [#allocation3], 1 }
 0x45e   :  { %1804 = vsyncpa [#allocation6], 1 }
 0x45f   :  { %1805 = vsyncpa [#allocation9], 1 }
 0x460   :  { %1806 = vsyncpa [#allocation12], 1 }
 0x461   :  { %1807 = vsyncpa [#allocation4], 1 }

</bundles_post_ra>
